<compile_context>
chip_gen: v5e
topology: v5e:2x2
jax: 0.10.0
libtpu: 0.0.40
codegen_flags: <defaults>
</compile_context>

<pallas_src>
import math
import jax
import jax.numpy as jnp
from jax.experimental import pallas as pl
from jax.experimental.pallas import tpu as pltpu

NUM_CLASSES = 6


def _ceil_to(x, m):
    return ((x + m - 1) // m) * m


# ----------------------------------------------------------------------------
# Pallas MXU matmul: bf16 operands, f32 accumulate, fused bias + activation.
# ----------------------------------------------------------------------------
def _apply_act(y, act):
    if act == "relu":
        return jnp.maximum(y, 0.0)
    if act == "lrelu":
        # TODO(synk): LeakyReLU slope 0.2 assumed (discriminator source is
        # unavailable; PyTorch nn.LeakyReLU default would be 0.01).
        return jnp.where(y > 0, y, 0.2 * y)
    if act == "tanh":
        return jnp.tanh(y)
    return y


def _make_mm_kernel_direct(act, out_dtype):
    """Single K step: no accumulator scratch, straight store of dot+bias+act."""
    def kernel(a_ref, b_ref, bias_ref, o_ref):
        y = jnp.dot(a_ref[...], b_ref[...], preferred_element_type=jnp.float32)
        y = _apply_act(y + bias_ref[...], act)
        o_ref[...] = y.astype(out_dtype)
    return kernel


def _make_mm_kernel_acc(act, out_dtype):
    """Tiled-K fallback (unused at these sizes, kept for generality)."""
    def kernel(a_ref, b_ref, bias_ref, o_ref, acc_ref):
        @pl.when(pl.program_id(2) == 0)
        def _():
            acc_ref[...] = jnp.zeros_like(acc_ref)

        acc_ref[...] += jnp.dot(a_ref[...], b_ref[...],
                                preferred_element_type=jnp.float32)

        @pl.when(pl.program_id(2) == pl.num_programs(2) - 1)
        def _():
            y = _apply_act(acc_ref[...] + bias_ref[...], act)
            o_ref[...] = y.astype(out_dtype)
    return kernel


def pallas_matmul(a, w_p, b_p, n_out, act=None, out_dtype=jnp.float32):
    """a: (M, K).  w_p: (Kp, Np) bf16 pre-padded at init.  b_p: (1, Np) f32.
    Returns (M, n_out) in out_dtype."""
    M, K = a.shape
    Kp, Np = w_p.shape

    tm = min(512, _ceil_to(M, 8))      # >=2 parallel M-blocks at M>=1024 (v7x)
    Mp = _ceil_to(M, tm)
    tn = 256 if Np % 256 == 0 else 128

    a_p = jnp.pad(a.astype(jnp.bfloat16), ((0, Mp - M), (0, Kp - K)))

    if Kp <= 1024:
        out = pl.pallas_call(
            _make_mm_kernel_direct(act, out_dtype),
            grid=(Mp // tm, Np // tn),
            in_specs=[
                pl.BlockSpec((tm, Kp), lambda i, j: (i, 0)),
                pl.BlockSpec((Kp, tn), lambda i, j: (0, j)),
                pl.BlockSpec((1, tn), lambda i, j: (0, j)),
            ],
            out_specs=pl.BlockSpec((tm, tn), lambda i, j: (i, j)),
            out_shape=jax.ShapeDtypeStruct((Mp, Np), out_dtype),
            compiler_params=pltpu.CompilerParams(
                dimension_semantics=("parallel", "parallel"),
                vmem_limit_bytes=32 * 1024 * 1024),
        )(a_p, w_p, b_p)
    else:
        tk = 512 if Kp % 512 == 0 else (256 if Kp % 256 == 0 else 128)
        out = pl.pallas_call(
            _make_mm_kernel_acc(act, out_dtype),
            grid=(Mp // tm, Np // tn, Kp // tk),
            in_specs=[
                pl.BlockSpec((tm, tk), lambda i, j, k: (i, k)),
                pl.BlockSpec((tk, tn), lambda i, j, k: (k, j)),
                pl.BlockSpec((1, tn), lambda i, j, k: (0, j)),
            ],
            out_specs=pl.BlockSpec((tm, tn), lambda i, j, k: (i, j)),
            out_shape=jax.ShapeDtypeStruct((Mp, Np), out_dtype),
            scratch_shapes=[pltpu.VMEM((tm, tn), jnp.float32)],
            compiler_params=pltpu.CompilerParams(
                dimension_semantics=("parallel", "parallel", "arbitrary"),
                vmem_limit_bytes=32 * 1024 * 1024),
        )(a_p, w_p, b_p)
    return out[:M, :n_out]


# ----------------------------------------------------------------------------
# layers built on the Pallas matmul (NHWC)
# ----------------------------------------------------------------------------
def conv2d(x, p, cout, ksize=3, stride=1, padding=1, act=None,
           out_dtype=jnp.float32):
    """x: (N,H,W,C); p["w"]: pre-padded bf16 (Kp,Np); im2col + Pallas matmul."""
    N, H, W, C = x.shape
    xp = jnp.pad(x, ((0, 0), (padding, padding), (padding, padding), (0, 0)))
    Ho = (H + 2 * padding - ksize) // stride + 1
    Wo = (W + 2 * padding - ksize) // stride + 1
    taps = []
    for i in range(ksize):
        for j in range(ksize):
            taps.append(xp[:, i:i + stride * Ho:stride,
                           j:j + stride * Wo:stride, :])
    cols = jnp.concatenate(taps, axis=-1).reshape(N * Ho * Wo, ksize * ksize * C)
    out = pallas_matmul(cols, p["w"], p["b"], cout, act=act, out_dtype=out_dtype)
    return out.reshape(N, Ho, Wo, cout)


def upsample2x(x):  # NHWC nearest-neighbour
    return jnp.repeat(jnp.repeat(x, 2, axis=1), 2, axis=2)


# ----------------------------------------------------------------------------
# parameters (deterministic); weights pre-reshaped/padded/bf16-cast at init
# ----------------------------------------------------------------------------
def _prep_matmul_params(w_mat, b_vec):
    K, N = w_mat.shape
    Kp, Np = _ceil_to(K, 128), _ceil_to(N, 128)
    return {
        "w": jnp.pad(w_mat, ((0, Kp - K), (0, Np - N))).astype(jnp.bfloat16),
        "b": jnp.pad(b_vec, ((0, Np - N),)).reshape(1, Np).astype(jnp.float32),
    }


def _conv_params(key, cout, cin, k):
    fan = cin * k * k
    w = jax.random.normal(key, (cout, cin, k, k), jnp.float32) / math.sqrt(fan)
    # matmul row index = (i*kw + j)*Cin + c  (matches im2col tap/channel order)
    wmat = jnp.transpose(w, (2, 3, 1, 0)).reshape(k * k * cin, cout)
    return _prep_matmul_params(wmat, jnp.zeros((cout,), jnp.float32))


def _fused_conv_params(key, couts, cins, k):
    """Block-diagonal fusion of per-concept convs along (Cin, Cout)."""
    n = len(couts)
    cin_t, cout_t = sum(cins), sum(couts)
    subkeys = jax.random.split(key, n)
    wmat = jnp.zeros((k * k * cin_t, cout_t), jnp.float32)
    ci, co = 0, 0
    for idx in range(n):
        cin, cout = cins[idx], couts[idx]
        fan = cin * k * k
        w = jax.random.normal(subkeys[idx], (cout, cin, k, k),
                              jnp.float32) / math.sqrt(fan)
        wm = jnp.transpose(w, (2, 3, 1, 0)).reshape(k * k, cin, cout)
        for t in range(k * k):
            wmat = wmat.at[t * cin_t + ci:t * cin_t + ci + cin,
                           co:co + cout].set(wm[t])
        ci += cin
        co += cout
    return _prep_matmul_params(wmat, jnp.zeros((cout_t,), jnp.float32))


def _cls_fc_params(key, num_classes):
    """Classifier (64->6) and the three reconstructor FCs (each 16->256,
    block-diagonal over the head|torso|leg feature blocks) in one matmul."""
    nc = num_classes
    k_cls, k_h, k_t, k_l = jax.random.split(key, 4)
    W = jnp.zeros((64, nc + 3 * 256), jnp.float32)
    w_cls = jax.random.normal(k_cls, (64, nc), jnp.float32) / math.sqrt(64)
    W = W.at[:, :nc].set(w_cls)
    for c, kk in enumerate((k_h, k_t, k_l)):
        w_fc = jax.random.normal(kk, (16, 256), jnp.float32) / math.sqrt(16)
        W = W.at[16 * c:16 * (c + 1), nc + 256 * c:nc + 256 * (c + 1)].set(w_fc)
    return _prep_matmul_params(W, jnp.zeros((nc + 3 * 256,), jnp.float32))


def init_params(num_classes=NUM_CLASSES):
    keys = iter(jax.random.split(jax.random.PRNGKey(0), 16))
    p = {}
    p["shallow"] = _conv_params(next(keys), 8, 3, 3)
    # four concept extractors fused along Cout: [head|torso|leg|shape] x 16
    p["ext_all"] = _conv_params(next(keys), 64, 8, 3)
    # classifier + 3 reconstructor FCs fused into one matmul
    p["cls_fc"] = _cls_fc_params(next(keys), num_classes)
    # head/torso/leg reconstructor conv1 fused block-diagonally (Cin 48 -> 24)
    p["rec_c1"] = _fused_conv_params(next(keys), (8, 8, 8), (16, 16, 16), 3)
    p["rec_shape_c1"] = _conv_params(next(keys), 8, 16, 3)
    # all four reconstructor conv2 layers fused block-diagonally (Cin 32 -> 12)
    p["rec_c2"] = _fused_conv_params(next(keys), (3, 3, 3, 3), (8, 8, 8, 8), 3)
    # four discriminators: conv1 fused along Cout; conv2 block-diag (32 -> 4)
    p["disc_c1"] = _conv_params(next(keys), 32, 3, 3)
    p["disc_c2"] = _fused_conv_params(next(keys), (1, 1, 1, 1), (8, 8, 8, 8), 3)
    return p


# ----------------------------------------------------------------------------
# model forward (mirrors new_resnet.forward + the loss terms) -- fully jit'ed
# ----------------------------------------------------------------------------
def _forward_impl(params, x, label, head, torso, leg, shape):
    to_nhwc = lambda t: jnp.transpose(t, (0, 2, 3, 1)).astype(jnp.float32)
    x = to_nhwc(x)
    head_i, torso_i = to_nhwc(head), to_nhwc(torso)
    leg_i, shape_i = to_nhwc(leg), to_nhwc(shape)
    B = x.shape[0]
    nc = NUM_CLASSES

    # shallow backbone + fused concept extractors (bf16 intermediates)
    shallow = conv2d(x, params["shallow"], 8, act="relu",
                     out_dtype=jnp.bfloat16)                         # (B,16,16,8)
    fmap = conv2d(shallow, params["ext_all"], 64, stride=2, act="relu",
                  out_dtype=jnp.bfloat16)                            # (B,8,8,64)

    # global-avg-pool + feature concat == pooled (XLA-fused, no pallas launch)
    pooled = jnp.mean(fmap.astype(jnp.float32), axis=(1, 2))         # (B,64)
    shape_map = fmap[..., 48:64]                                     # (B,8,8,16)

    # classifier + three reconstructor FCs in a single matmul
    head_out = pallas_matmul(pooled, params["cls_fc"]["w"],
                             params["cls_fc"]["b"], nc + 3 * 256,
                             act=None, out_dtype=jnp.float32)        # (B,774)
    pred_class = head_out[:, :nc]
    fc = jax.nn.relu(head_out[:, nc:]).astype(jnp.bfloat16)          # (B,768)
    fc = fc.reshape(B, 3, 4, 4, 16)
    fc = jnp.transpose(fc, (0, 2, 3, 1, 4)).reshape(B, 4, 4, 48)     # h|t|l blocks

    # reconstructors: head/torso/leg conv1 fused; shape conv1 separate (16x16);
    # all four conv2 layers fused into a single block-diagonal conv.
    h1 = conv2d(upsample2x(fc), params["rec_c1"], 24, act="relu",
                out_dtype=jnp.bfloat16)                              # (B,8,8,24)
    shape_h = conv2d(upsample2x(shape_map), params["rec_shape_c1"], 8,
                     act="relu", out_dtype=jnp.bfloat16)             # (B,16,16,8)
    c2_in = jnp.concatenate([upsample2x(h1), shape_h], axis=-1)      # (B,16,16,32)
    rec_all = conv2d(c2_in, params["rec_c2"], 12, act="tanh",
                     out_dtype=jnp.float32)                          # (B,16,16,12)
    rec_head, rec_torso = rec_all[..., 0:3], rec_all[..., 3:6]
    rec_leg, rec_shape = rec_all[..., 6:9], rec_all[..., 9:12]

    # discriminators: all 8 real/fake passes batched into 2 conv calls
    G = 4  # concept order: head, torso, leg, shape
    imgs = jnp.concatenate([head_i, rec_head, torso_i, rec_torso,
                            leg_i, rec_leg, shape_i, rec_shape], axis=0)
    d1 = conv2d(imgs, params["disc_c1"], 32, stride=2, act="lrelu",
                out_dtype=jnp.bfloat16)                              # (2GB,8,8,32)
    # disc_c2 is block-diagonal over the 4 per-concept 8-channel groups, so d1
    # feeds it directly (no relayout); the concept diagonal is selected once.
    d2 = conv2d(d1, params["disc_c2"], 4, stride=2, act=None,
                out_dtype=jnp.float32)                               # (2GB,4,4,4)
    H2 = d2.shape[1]
    d2 = d2.reshape(G, 2 * B, H2, H2, G)
    disc = jnp.stack([d2[c, :, :, :, c] for c in range(G)], axis=0)  # (G,2B,4,4)
    pred_real, pred_fake = disc[:, :B], disc[:, B:]

    # losses: tiny reductions, plain jnp (fused by XLA under jit)
    mse = lambda p_, t: jnp.mean((p_ - t) ** 2, axis=(1, 2, 3))
    loss_D = 0.5 * (mse(pred_real, 1.0) + mse(pred_fake, 0.0))       # (G,)
    gan_R = mse(pred_fake, 1.0)                                      # (G,)
    # TODO(synk): SimilarityCriterion definition unavailable; L1 used.
    rec_stack = jnp.stack([rec_head, rec_torso, rec_leg, rec_shape])
    ori_stack = jnp.stack([head_i, torso_i, leg_i, shape_i])
    loss_R = gan_R + jnp.mean(jnp.abs(rec_stack - ori_stack), axis=(1, 2, 3, 4))
    logp = jax.nn.log_softmax(pred_class, axis=-1)
    loss_C = -jnp.mean(jnp.take_along_axis(logp, label[:, None], axis=1))

    to_nchw = lambda t: jnp.transpose(t, (0, 3, 1, 2))
    return (pred_class,
            to_nchw(rec_head), to_nchw(rec_torso),
            to_nchw(rec_leg), to_nchw(rec_shape),
            loss_C,
            loss_R[0], loss_D[0],     # head
            loss_R[3], loss_D[3],     # shape
            loss_R[1], loss_D[1],     # torso
            loss_R[2], loss_D[2])     # leg


_forward_jit = jax.jit(_forward_impl)


def forward(params, x, label, head, torso, leg, shape):
    (pred_class, rec_head, rec_torso, rec_leg, rec_shape, loss_C,
     lR_head, lD_head, lR_shape, lD_shape,
     lR_torso, lD_torso, lR_leg, lD_leg) = _forward_jit(
        params, x, label, head, torso, leg, shape)
    reconstruct_result = {
        "head": rec_head, "shape": rec_shape,
        "torso": rec_torso, "leg": rec_leg,
    }
    return (pred_class, reconstruct_result, loss_C,
            lR_head, lD_head, lR_shape, lD_shape,
            lR_torso, lD_torso, lR_leg, lD_leg)


# ----------------------------------------------------------------------------
if __name__ == "__main__":
    key = jax.random.PRNGKey(0)
    kx, kh, kt, kl, ks = jax.random.split(key, 5)

    x = jax.random.normal(kx, (2, 3, 16, 16), jnp.float32)
    head = jax.random.normal(kh, (2, 3, 16, 16), jnp.float32)
    torso = jax.random.normal(kt, (2, 3, 16, 16), jnp.float32)
    leg = jax.random.normal(kl, (2, 3, 16, 16), jnp.float32)
    shape = jax.random.normal(ks, (2, 3, 16, 16), jnp.float32)
    label = jnp.array([1, 4], dtype=jnp.int32)

    params = init_params(NUM_CLASSES)
    outputs = forward(params, x, label, head, torso, leg, shape)

    pred_class = outputs[0]
    recon = outputs[1]
    losses = outputs[2:]

    jax.block_until_ready(pred_class)
    for v in recon.values():
        jax.block_until_ready(v)
    for l in losses:
        jax.block_until_ready(l)

    assert pred_class.shape == (2, NUM_CLASSES)
    assert all(v.shape == (2, 3, 16, 16) for v in recon.values())
    assert all(bool(jnp.isfinite(l)) for l in losses)
    print("KERNEL_OK")
</pallas_src>

<mosaic_0001>
module attributes {stable_mosaic.version = 11 : i64} {
  func.func @kernel(%arg0: i32, %arg1: i32, %arg2: memref<512x128xbf16, #tpu.memory_space<vmem>>, %arg3: memref<128x128xbf16, #tpu.memory_space<vmem>>, %arg4: memref<1x128xf32, #tpu.memory_space<vmem>>, %arg5: memref<512x128xbf16, #tpu.memory_space<vmem>>) attributes {dimension_semantics = [#tpu.dimension_semantics<parallel>, #tpu.dimension_semantics<parallel>], iteration_bounds = array<i64: 1, 1>, scalar_prefetch = 0 : i64, scratch_operands = 0 : i64, tpu.core_type = #tpu.core_type<tc>, window_params = [{transform_indices = @transform_0, window_bounds = array<i64: 512, 128>}, {transform_indices = @transform_1, window_bounds = array<i64: 128, 128>}, {transform_indices = @transform_2, window_bounds = array<i64: 1, 128>}, {transform_indices = @transform_3, window_bounds = array<i64: 512, 128>}]} {
    %c0 = arith.constant 0 : index
    %c0_0 = arith.constant 0 : index
    %0 = vector.load %arg2[%c0, %c0_0] : memref<512x128xbf16, #tpu.memory_space<vmem>>, vector<512x128xbf16>
    %c0_1 = arith.constant 0 : index
    %c0_2 = arith.constant 0 : index
    %1 = vector.load %arg3[%c0_1, %c0_2] : memref<128x128xbf16, #tpu.memory_space<vmem>>, vector<128x128xbf16>
    %cst = arith.constant dense<0.000000e+00> : vector<512x128xf32>
    %2 = tpu.matmul %0, %1, %cst {dimension_numbers = #tpu.dot_dimension_numbers<[1], [0], [0], [1], [0, 0, 1, 1], [], []>} : vector<512x128xbf16>, vector<128x128xbf16>, vector<512x128xf32> -> vector<512x128xf32>
    %c0_3 = arith.constant 0 : index
    %c0_4 = arith.constant 0 : index
    %3 = vector.load %arg4[%c0_3, %c0_4] : memref<1x128xf32, #tpu.memory_space<vmem>>, vector<1x128xf32>
    %4 = vector.broadcast %3 : vector<1x128xf32> to vector<512x128xf32>
    %5 = arith.addf %2, %4 : vector<512x128xf32>
    %cst_5 = arith.constant 0.000000e+00 : f32
    %6 = vector.broadcast %cst_5 : f32 to vector<512x128xf32>
    %7 = arith.maximumf %5, %6 : vector<512x128xf32>
    %8 = arith.truncf %7 : vector<512x128xf32> to vector<512x128xbf16>
    %c0_6 = arith.constant 0 : index
    %c0_7 = arith.constant 0 : index
    %9 = vector.load %arg5[%c0_6, %c0_7] : memref<512x128xbf16, #tpu.memory_space<vmem>>, vector<512x128xbf16>
    tpu.vector_store %arg5[%c0_6, %c0_7], %8 {strides = array<i32>} : memref<512x128xbf16, #tpu.memory_space<vmem>>, vector<512x128xbf16>,
    return
  }
  func.func @transform_0(%arg0: i32, %arg1: i32) -> (i32, i32) {
    %c0_i32 = arith.constant 0 : i32
    %c0_i32_0 = arith.constant 0 : i32
    return %arg0, %c0_i32 : i32, i32
  }
  func.func @transform_1(%arg0: i32, %arg1: i32) -> (i32, i32) {
    %c0_i32 = arith.constant 0 : i32
    %c0_i32_0 = arith.constant 0 : i32
    return %c0_i32, %arg1 : i32, i32
  }
  func.func @transform_2(%arg0: i32, %arg1: i32) -> (i32, i32) {
    %c0_i32 = arith.constant 0 : i32
    %c0_i32_0 = arith.constant 0 : i32
    return %c0_i32, %arg1 : i32, i32
  }
  func.func @transform_3(%arg0: i32, %arg1: i32) -> (i32, i32) {
    %c0_i32 = arith.constant 0 : i32
    return %arg0, %arg1 : i32, i32
  }
}

module attributes {stable_mosaic.version = 11 : i64} {
  func.func @kernel(%arg0: i32, %arg1: i32, %arg2: memref<128x128xbf16, #tpu.memory_space<vmem>>, %arg3: memref<128x128xbf16, #tpu.memory_space<vmem>>, %arg4: memref<1x128xf32, #tpu.memory_space<vmem>>, %arg5: memref<128x128xbf16, #tpu.memory_space<vmem>>) attributes {dimension_semantics = [#tpu.dimension_semantics<parallel>, #tpu.dimension_semantics<parallel>], iteration_bounds = array<i64: 1, 1>, scalar_prefetch = 0 : i64, scratch_operands = 0 : i64, tpu.core_type = #tpu.core_type<tc>, window_params = [{transform_indices = @transform_0, window_bounds = array<i64: 128, 128>}, {transform_indices = @transform_1, window_bounds = array<i64: 128, 128>}, {transform_indices = @transform_2, window_bounds = array<i64: 1, 128>}, {transform_indices = @transform_3, window_bounds = array<i64: 128, 128>}]} {
    %c0 = arith.constant 0 : index
    %c0_0 = arith.constant 0 : index
    %0 = vector.load %arg2[%c0, %c0_0] : memref<128x128xbf16, #tpu.memory_space<vmem>>, vector<128x128xbf16>
    %c0_1 = arith.constant 0 : index
    %c0_2 = arith.constant 0 : index
    %1 = vector.load %arg3[%c0_1, %c0_2] : memref<128x128xbf16, #tpu.memory_space<vmem>>, vector<128x128xbf16>
    %cst = arith.constant dense<0.000000e+00> : vector<128x128xf32>
    %2 = tpu.matmul %0, %1, %cst {dimension_numbers = #tpu.dot_dimension_numbers<[1], [0], [0], [1], [0, 0, 1, 1], [], []>} : vector<128x128xbf16>, vector<128x128xbf16>, vector<128x128xf32> -> vector<128x128xf32>
    %c0_3 = arith.constant 0 : index
    %c0_4 = arith.constant 0 : index
    %3 = vector.load %arg4[%c0_3, %c0_4] : memref<1x128xf32, #tpu.memory_space<vmem>>, vector<1x128xf32>
    %4 = vector.broadcast %3 : vector<1x128xf32> to vector<128x128xf32>
    %5 = arith.addf %2, %4 : vector<128x128xf32>
    %cst_5 = arith.constant 0.000000e+00 : f32
    %6 = vector.broadcast %cst_5 : f32 to vector<128x128xf32>
    %7 = arith.maximumf %5, %6 : vector<128x128xf32>
    %8 = arith.truncf %7 : vector<128x128xf32> to vector<128x128xbf16>
    %c0_6 = arith.constant 0 : index
    %c0_7 = arith.constant 0 : index
    %9 = vector.load %arg5[%c0_6, %c0_7] : memref<128x128xbf16, #tpu.memory_space<vmem>>, vector<128x128xbf16>
    tpu.vector_store %arg5[%c0_6, %c0_7], %8 {strides = array<i32>} : memref<128x128xbf16, #tpu.memory_space<vmem>>, vector<128x128xbf16>,
    return
  }
  func.func @transform_0(%arg0: i32, %arg1: i32) -> (i32, i32) {
    %c0_i32 = arith.constant 0 : i32
    %c0_i32_0 = arith.constant 0 : i32
    return %arg0, %c0_i32 : i32, i32
  }
  func.func @transform_1(%arg0: i32, %arg1: i32) -> (i32, i32) {
    %c0_i32 = arith.constant 0 : i32
    %c0_i32_0 = arith.constant 0 : i32
    return %c0_i32, %arg1 : i32, i32
  }
  func.func @transform_2(%arg0: i32, %arg1: i32) -> (i32, i32) {
    %c0_i32 = arith.constant 0 : i32
    %c0_i32_0 = arith.constant 0 : i32
    return %c0_i32, %arg1 : i32, i32
  }
  func.func @transform_3(%arg0: i32, %arg1: i32) -> (i32, i32) {
    %c0_i32 = arith.constant 0 : i32
    return %arg0, %arg1 : i32, i32
  }
}

module attributes {stable_mosaic.version = 11 : i64} {
  func.func @kernel(%arg0: i32, %arg1: i32, %arg2: memref<8x128xbf16, #tpu.memory_space<vmem>>, %arg3: memref<128x128xbf16, #tpu.memory_space<vmem>>, %arg4: memref<1x128xf32, #tpu.memory_space<vmem>>, %arg5: memref<8x128xf32, #tpu.memory_space<vmem>>) attributes {dimension_semantics = [#tpu.dimension_semantics<parallel>, #tpu.dimension_semantics<parallel>], iteration_bounds = array<i64: 1, 7>, scalar_prefetch = 0 : i64, scratch_operands = 0 : i64, tpu.core_type = #tpu.core_type<tc>, window_params = [{transform_indices = @transform_0, window_bounds = array<i64: 8, 128>}, {transform_indices = @transform_1, window_bounds = array<i64: 128, 128>}, {transform_indices = @transform_2, window_bounds = array<i64: 1, 128>}, {transform_indices = @transform_3, window_bounds = array<i64: 8, 128>}]} {
    %c0 = arith.constant 0 : index
    %c0_0 = arith.constant 0 : index
    %0 = vector.load %arg2[%c0, %c0_0] : memref<8x128xbf16, #tpu.memory_space<vmem>>, vector<8x128xbf16>
    %c0_1 = arith.constant 0 : index
    %c0_2 = arith.constant 0 : index
    %1 = vector.load %arg3[%c0_1, %c0_2] : memref<128x128xbf16, #tpu.memory_space<vmem>>, vector<128x128xbf16>
    %cst = arith.constant dense<0.000000e+00> : vector<8x128xf32>
    %2 = tpu.matmul %0, %1, %cst {dimension_numbers = #tpu.dot_dimension_numbers<[1], [0], [0], [1], [0, 0, 1, 1], [], []>} : vector<8x128xbf16>, vector<128x128xbf16>, vector<8x128xf32> -> vector<8x128xf32>
    %c0_3 = arith.constant 0 : index
    %c0_4 = arith.constant 0 : index
    %3 = vector.load %arg4[%c0_3, %c0_4] : memref<1x128xf32, #tpu.memory_space<vmem>>, vector<1x128xf32>
    %4 = vector.broadcast %3 : vector<1x128xf32> to vector<8x128xf32>
    %5 = arith.addf %2, %4 : vector<8x128xf32>
    %c0_5 = arith.constant 0 : index
    %c0_6 = arith.constant 0 : index
    %6 = vector.load %arg5[%c0_5, %c0_6] : memref<8x128xf32, #tpu.memory_space<vmem>>, vector<8x128xf32>
    tpu.vector_store %arg5[%c0_5, %c0_6], %5 {strides = array<i32>} : memref<8x128xf32, #tpu.memory_space<vmem>>, vector<8x128xf32>,
    return
  }
  func.func @transform_0(%arg0: i32, %arg1: i32) -> (i32, i32) {
    %c0_i32 = arith.constant 0 : i32
    %c0_i32_0 = arith.constant 0 : i32
    return %arg0, %c0_i32 : i32, i32
  }
  func.func @transform_1(%arg0: i32, %arg1: i32) -> (i32, i32) {
    %c0_i32 = arith.constant 0 : i32
    %c0_i32_0 = arith.constant 0 : i32
    return %c0_i32, %arg1 : i32, i32
  }
  func.func @transform_2(%arg0: i32, %arg1: i32) -> (i32, i32) {
    %c0_i32 = arith.constant 0 : i32
    %c0_i32_0 = arith.constant 0 : i32
    return %c0_i32, %arg1 : i32, i32
  }
  func.func @transform_3(%arg0: i32, %arg1: i32) -> (i32, i32) {
    %c0_i32 = arith.constant 0 : i32
    return %arg0, %arg1 : i32, i32
  }
}

module attributes {stable_mosaic.version = 11 : i64} {
  func.func @kernel(%arg0: i32, %arg1: i32, %arg2: memref<128x512xbf16, #tpu.memory_space<vmem>>, %arg3: memref<512x128xbf16, #tpu.memory_space<vmem>>, %arg4: memref<1x128xf32, #tpu.memory_space<vmem>>, %arg5: memref<128x128xbf16, #tpu.memory_space<vmem>>) attributes {dimension_semantics = [#tpu.dimension_semantics<parallel>, #tpu.dimension_semantics<parallel>], iteration_bounds = array<i64: 1, 1>, scalar_prefetch = 0 : i64, scratch_operands = 0 : i64, tpu.core_type = #tpu.core_type<tc>, window_params = [{transform_indices = @transform_0, window_bounds = array<i64: 128, 512>}, {transform_indices = @transform_1, window_bounds = array<i64: 512, 128>}, {transform_indices = @transform_2, window_bounds = array<i64: 1, 128>}, {transform_indices = @transform_3, window_bounds = array<i64: 128, 128>}]} {
    %c0 = arith.constant 0 : index
    %c0_0 = arith.constant 0 : index
    %0 = vector.load %arg2[%c0, %c0_0] : memref<128x512xbf16, #tpu.memory_space<vmem>>, vector<128x512xbf16>
    %c0_1 = arith.constant 0 : index
    %c0_2 = arith.constant 0 : index
    %1 = vector.load %arg3[%c0_1, %c0_2] : memref<512x128xbf16, #tpu.memory_space<vmem>>, vector<512x128xbf16>
    %cst = arith.constant dense<0.000000e+00> : vector<128x128xf32>
    %2 = tpu.matmul %0, %1, %cst {dimension_numbers = #tpu.dot_dimension_numbers<[1], [0], [0], [1], [0, 0, 1, 1], [], []>} : vector<128x512xbf16>, vector<512x128xbf16>, vector<128x128xf32> -> vector<128x128xf32>
    %c0_3 = arith.constant 0 : index
    %c0_4 = arith.constant 0 : index
    %3 = vector.load %arg4[%c0_3, %c0_4] : memref<1x128xf32, #tpu.memory_space<vmem>>, vector<1x128xf32>
    %4 = vector.broadcast %3 : vector<1x128xf32> to vector<128x128xf32>
    %5 = arith.addf %2, %4 : vector<128x128xf32>
    %cst_5 = arith.constant 0.000000e+00 : f32
    %6 = vector.broadcast %cst_5 : f32 to vector<128x128xf32>
    %7 = arith.maximumf %5, %6 : vector<128x128xf32>
    %8 = arith.truncf %7 : vector<128x128xf32> to vector<128x128xbf16>
    %c0_6 = arith.constant 0 : index
    %c0_7 = arith.constant 0 : index
    %9 = vector.load %arg5[%c0_6, %c0_7] : memref<128x128xbf16, #tpu.memory_space<vmem>>, vector<128x128xbf16>
    tpu.vector_store %arg5[%c0_6, %c0_7], %8 {strides = array<i32>} : memref<128x128xbf16, #tpu.memory_space<vmem>>, vector<128x128xbf16>,
    return
  }
  func.func @transform_0(%arg0: i32, %arg1: i32) -> (i32, i32) {
    %c0_i32 = arith.constant 0 : i32
    %c0_i32_0 = arith.constant 0 : i32
    return %arg0, %c0_i32 : i32, i32
  }
  func.func @transform_1(%arg0: i32, %arg1: i32) -> (i32, i32) {
    %c0_i32 = arith.constant 0 : i32
    %c0_i32_0 = arith.constant 0 : i32
    return %c0_i32, %arg1 : i32, i32
  }
  func.func @transform_2(%arg0: i32, %arg1: i32) -> (i32, i32) {
    %c0_i32 = arith.constant 0 : i32
    %c0_i32_0 = arith.constant 0 : i32
    return %c0_i32, %arg1 : i32, i32
  }
  func.func @transform_3(%arg0: i32, %arg1: i32) -> (i32, i32) {
    %c0_i32 = arith.constant 0 : i32
    return %arg0, %arg1 : i32, i32
  }
}

module attributes {stable_mosaic.version = 11 : i64} {
  func.func @kernel(%arg0: i32, %arg1: i32, %arg2: memref<512x256xbf16, #tpu.memory_space<vmem>>, %arg3: memref<256x128xbf16, #tpu.memory_space<vmem>>, %arg4: memref<1x128xf32, #tpu.memory_space<vmem>>, %arg5: memref<512x128xbf16, #tpu.memory_space<vmem>>) attributes {dimension_semantics = [#tpu.dimension_semantics<parallel>, #tpu.dimension_semantics<parallel>], iteration_bounds = array<i64: 1, 1>, scalar_prefetch = 0 : i64, scratch_operands = 0 : i64, tpu.core_type = #tpu.core_type<tc>, window_params = [{transform_indices = @transform_0, window_bounds = array<i64: 512, 256>}, {transform_indices = @transform_1, window_bounds = array<i64: 256, 128>}, {transform_indices = @transform_2, window_bounds = array<i64: 1, 128>}, {transform_indices = @transform_3, window_bounds = array<i64: 512, 128>}]} {
    %c0 = arith.constant 0 : index
    %c0_0 = arith.constant 0 : index
    %0 = vector.load %arg2[%c0, %c0_0] : memref<512x256xbf16, #tpu.memory_space<vmem>>, vector<512x256xbf16>
    %c0_1 = arith.constant 0 : index
    %c0_2 = arith.constant 0 : index
    %1 = vector.load %arg3[%c0_1, %c0_2] : memref<256x128xbf16, #tpu.memory_space<vmem>>, vector<256x128xbf16>
    %cst = arith.constant dense<0.000000e+00> : vector<512x128xf32>
    %2 = tpu.matmul %0, %1, %cst {dimension_numbers = #tpu.dot_dimension_numbers<[1], [0], [0], [1], [0, 0, 1, 1], [], []>} : vector<512x256xbf16>, vector<256x128xbf16>, vector<512x128xf32> -> vector<512x128xf32>
    %c0_3 = arith.constant 0 : index
    %c0_4 = arith.constant 0 : index
    %3 = vector.load %arg4[%c0_3, %c0_4] : memref<1x128xf32, #tpu.memory_space<vmem>>, vector<1x128xf32>
    %4 = vector.broadcast %3 : vector<1x128xf32> to vector<512x128xf32>
    %5 = arith.addf %2, %4 : vector<512x128xf32>
    %cst_5 = arith.constant 0.000000e+00 : f32
    %6 = vector.broadcast %cst_5 : f32 to vector<512x128xf32>
    %7 = arith.maximumf %5, %6 : vector<512x128xf32>
    %8 = arith.truncf %7 : vector<512x128xf32> to vector<512x128xbf16>
    %c0_6 = arith.constant 0 : index
    %c0_7 = arith.constant 0 : index
    %9 = vector.load %arg5[%c0_6, %c0_7] : memref<512x128xbf16, #tpu.memory_space<vmem>>, vector<512x128xbf16>
    tpu.vector_store %arg5[%c0_6, %c0_7], %8 {strides = array<i32>} : memref<512x128xbf16, #tpu.memory_space<vmem>>, vector<512x128xbf16>,
    return
  }
  func.func @transform_0(%arg0: i32, %arg1: i32) -> (i32, i32) {
    %c0_i32 = arith.constant 0 : i32
    %c0_i32_0 = arith.constant 0 : i32
    return %arg0, %c0_i32 : i32, i32
  }
  func.func @transform_1(%arg0: i32, %arg1: i32) -> (i32, i32) {
    %c0_i32 = arith.constant 0 : i32
    %c0_i32_0 = arith.constant 0 : i32
    return %c0_i32, %arg1 : i32, i32
  }
  func.func @transform_2(%arg0: i32, %arg1: i32) -> (i32, i32) {
    %c0_i32 = arith.constant 0 : i32
    %c0_i32_0 = arith.constant 0 : i32
    return %c0_i32, %arg1 : i32, i32
  }
  func.func @transform_3(%arg0: i32, %arg1: i32) -> (i32, i32) {
    %c0_i32 = arith.constant 0 : i32
    return %arg0, %arg1 : i32, i32
  }
}

module attributes {stable_mosaic.version = 11 : i64} {
  func.func @kernel(%arg0: i32, %arg1: i32, %arg2: memref<512x384xbf16, #tpu.memory_space<vmem>>, %arg3: memref<384x128xbf16, #tpu.memory_space<vmem>>, %arg4: memref<1x128xf32, #tpu.memory_space<vmem>>, %arg5: memref<512x128xf32, #tpu.memory_space<vmem>>) attributes {dimension_semantics = [#tpu.dimension_semantics<parallel>, #tpu.dimension_semantics<parallel>], iteration_bounds = array<i64: 1, 1>, scalar_prefetch = 0 : i64, scratch_operands = 0 : i64, tpu.core_type = #tpu.core_type<tc>, window_params = [{transform_indices = @transform_0, window_bounds = array<i64: 512, 384>}, {transform_indices = @transform_1, window_bounds = array<i64: 384, 128>}, {transform_indices = @transform_2, window_bounds = array<i64: 1, 128>}, {transform_indices = @transform_3, window_bounds = array<i64: 512, 128>}]} {
    %c0 = arith.constant 0 : index
    %c0_0 = arith.constant 0 : index
    %0 = vector.load %arg2[%c0, %c0_0] : memref<512x384xbf16, #tpu.memory_space<vmem>>, vector<512x384xbf16>
    %c0_1 = arith.constant 0 : index
    %c0_2 = arith.constant 0 : index
    %1 = vector.load %arg3[%c0_1, %c0_2] : memref<384x128xbf16, #tpu.memory_space<vmem>>, vector<384x128xbf16>
    %cst = arith.constant dense<0.000000e+00> : vector<512x128xf32>
    %2 = tpu.matmul %0, %1, %cst {dimension_numbers = #tpu.dot_dimension_numbers<[1], [0], [0], [1], [0, 0, 1, 1], [], []>} : vector<512x384xbf16>, vector<384x128xbf16>, vector<512x128xf32> -> vector<512x128xf32>
    %c0_3 = arith.constant 0 : index
    %c0_4 = arith.constant 0 : index
    %3 = vector.load %arg4[%c0_3, %c0_4] : memref<1x128xf32, #tpu.memory_space<vmem>>, vector<1x128xf32>
    %4 = vector.broadcast %3 : vector<1x128xf32> to vector<512x128xf32>
    %5 = arith.addf %2, %4 : vector<512x128xf32>
    %6 = math.tanh %5 : vector<512x128xf32>
    %c0_5 = arith.constant 0 : index
    %c0_6 = arith.constant 0 : index
    %7 = vector.load %arg5[%c0_5, %c0_6] : memref<512x128xf32, #tpu.memory_space<vmem>>, vector<512x128xf32>
    tpu.vector_store %arg5[%c0_5, %c0_6], %6 {strides = array<i32>} : memref<512x128xf32, #tpu.memory_space<vmem>>, vector<512x128xf32>,
    return
  }
  func.func @transform_0(%arg0: i32, %arg1: i32) -> (i32, i32) {
    %c0_i32 = arith.constant 0 : i32
    %c0_i32_0 = arith.constant 0 : i32
    return %arg0, %c0_i32 : i32, i32
  }
  func.func @transform_1(%arg0: i32, %arg1: i32) -> (i32, i32) {
    %c0_i32 = arith.constant 0 : i32
    %c0_i32_0 = arith.constant 0 : i32
    return %c0_i32, %arg1 : i32, i32
  }
  func.func @transform_2(%arg0: i32, %arg1: i32) -> (i32, i32) {
    %c0_i32 = arith.constant 0 : i32
    %c0_i32_0 = arith.constant 0 : i32
    return %c0_i32, %arg1 : i32, i32
  }
  func.func @transform_3(%arg0: i32, %arg1: i32) -> (i32, i32) {
    %c0_i32 = arith.constant 0 : i32
    return %arg0, %arg1 : i32, i32
  }
}

module attributes {stable_mosaic.version = 11 : i64} {
  func.func @kernel(%arg0: i32, %arg1: i32, %arg2: memref<512x128xbf16, #tpu.memory_space<vmem>>, %arg3: memref<128x128xbf16, #tpu.memory_space<vmem>>, %arg4: memref<1x128xf32, #tpu.memory_space<vmem>>, %arg5: memref<512x128xbf16, #tpu.memory_space<vmem>>) attributes {dimension_semantics = [#tpu.dimension_semantics<parallel>, #tpu.dimension_semantics<parallel>], iteration_bounds = array<i64: 2, 1>, scalar_prefetch = 0 : i64, scratch_operands = 0 : i64, tpu.core_type = #tpu.core_type<tc>, window_params = [{transform_indices = @transform_0, window_bounds = array<i64: 512, 128>}, {transform_indices = @transform_1, window_bounds = array<i64: 128, 128>}, {transform_indices = @transform_2, window_bounds = array<i64: 1, 128>}, {transform_indices = @transform_3, window_bounds = array<i64: 512, 128>}]} {
    %c0 = arith.constant 0 : index
    %c0_0 = arith.constant 0 : index
    %0 = vector.load %arg2[%c0, %c0_0] : memref<512x128xbf16, #tpu.memory_space<vmem>>, vector<512x128xbf16>
    %c0_1 = arith.constant 0 : index
    %c0_2 = arith.constant 0 : index
    %1 = vector.load %arg3[%c0_1, %c0_2] : memref<128x128xbf16, #tpu.memory_space<vmem>>, vector<128x128xbf16>
    %cst = arith.constant dense<0.000000e+00> : vector<512x128xf32>
    %2 = tpu.matmul %0, %1, %cst {dimension_numbers = #tpu.dot_dimension_numbers<[1], [0], [0], [1], [0, 0, 1, 1], [], []>} : vector<512x128xbf16>, vector<128x128xbf16>, vector<512x128xf32> -> vector<512x128xf32>
    %c0_3 = arith.constant 0 : index
    %c0_4 = arith.constant 0 : index
    %3 = vector.load %arg4[%c0_3, %c0_4] : memref<1x128xf32, #tpu.memory_space<vmem>>, vector<1x128xf32>
    %4 = vector.broadcast %3 : vector<1x128xf32> to vector<512x128xf32>
    %5 = arith.addf %2, %4 : vector<512x128xf32>
    %cst_5 = arith.constant 0.000000e+00 : f32
    %6 = vector.broadcast %cst_5 : f32 to vector<512x128xf32>
    %7 = arith.cmpf ogt, %5, %6 : vector<512x128xf32>
    %cst_6 = arith.constant 2.000000e-01 : f32
    %8 = vector.broadcast %cst_6 : f32 to vector<512x128xf32>
    %9 = arith.mulf %8, %5 : vector<512x128xf32>
    %10 = arith.select %7, %5, %9 : vector<512x128xi1>, vector<512x128xf32>
    %11 = arith.truncf %10 : vector<512x128xf32> to vector<512x128xbf16>
    %c0_7 = arith.constant 0 : index
    %c0_8 = arith.constant 0 : index
    %12 = vector.load %arg5[%c0_7, %c0_8] : memref<512x128xbf16, #tpu.memory_space<vmem>>, vector<512x128xbf16>
    tpu.vector_store %arg5[%c0_7, %c0_8], %11 {strides = array<i32>} : memref<512x128xbf16, #tpu.memory_space<vmem>>, vector<512x128xbf16>,
    return
  }
  func.func @transform_0(%arg0: i32, %arg1: i32) -> (i32, i32) {
    %c0_i32 = arith.constant 0 : i32
    %c0_i32_0 = arith.constant 0 : i32
    return %arg0, %c0_i32 : i32, i32
  }
  func.func @transform_1(%arg0: i32, %arg1: i32) -> (i32, i32) {
    %c0_i32 = arith.constant 0 : i32
    %c0_i32_0 = arith.constant 0 : i32
    return %c0_i32, %arg1 : i32, i32
  }
  func.func @transform_2(%arg0: i32, %arg1: i32) -> (i32, i32) {
    %c0_i32 = arith.constant 0 : i32
    %c0_i32_0 = arith.constant 0 : i32
    return %c0_i32, %arg1 : i32, i32
  }
  func.func @transform_3(%arg0: i32, %arg1: i32) -> (i32, i32) {
    %c0_i32 = arith.constant 0 : i32
    return %arg0, %arg1 : i32, i32
  }
}

module attributes {stable_mosaic.version = 11 : i64} {
  func.func @kernel(%arg0: i32, %arg1: i32, %arg2: memref<256x384xbf16, #tpu.memory_space<vmem>>, %arg3: memref<384x128xbf16, #tpu.memory_space<vmem>>, %arg4: memref<1x128xf32, #tpu.memory_space<vmem>>, %arg5: memref<256x128xf32, #tpu.memory_space<vmem>>) attributes {dimension_semantics = [#tpu.dimension_semantics<parallel>, #tpu.dimension_semantics<parallel>], iteration_bounds = array<i64: 1, 1>, scalar_prefetch = 0 : i64, scratch_operands = 0 : i64, tpu.core_type = #tpu.core_type<tc>, window_params = [{transform_indices = @transform_0, window_bounds = array<i64: 256, 384>}, {transform_indices = @transform_1, window_bounds = array<i64: 384, 128>}, {transform_indices = @transform_2, window_bounds = array<i64: 1, 128>}, {transform_indices = @transform_3, window_bounds = array<i64: 256, 128>}]} {
    %c0 = arith.constant 0 : index
    %c0_0 = arith.constant 0 : index
    %0 = vector.load %arg2[%c0, %c0_0] : memref<256x384xbf16, #tpu.memory_space<vmem>>, vector<256x384xbf16>
    %c0_1 = arith.constant 0 : index
    %c0_2 = arith.constant 0 : index
    %1 = vector.load %arg3[%c0_1, %c0_2] : memref<384x128xbf16, #tpu.memory_space<vmem>>, vector<384x128xbf16>
    %cst = arith.constant dense<0.000000e+00> : vector<256x128xf32>
    %2 = tpu.matmul %0, %1, %cst {dimension_numbers = #tpu.dot_dimension_numbers<[1], [0], [0], [1], [0, 0, 1, 1], [], []>} : vector<256x384xbf16>, vector<384x128xbf16>, vector<256x128xf32> -> vector<256x128xf32>
    %c0_3 = arith.constant 0 : index
    %c0_4 = arith.constant 0 : index
    %3 = vector.load %arg4[%c0_3, %c0_4] : memref<1x128xf32, #tpu.memory_space<vmem>>, vector<1x128xf32>
    %4 = vector.broadcast %3 : vector<1x128xf32> to vector<256x128xf32>
    %5 = arith.addf %2, %4 : vector<256x128xf32>
    %c0_5 = arith.constant 0 : index
    %c0_6 = arith.constant 0 : index
    %6 = vector.load %arg5[%c0_5, %c0_6] : memref<256x128xf32, #tpu.memory_space<vmem>>, vector<256x128xf32>
    tpu.vector_store %arg5[%c0_5, %c0_6], %5 {strides = array<i32>} : memref<256x128xf32, #tpu.memory_space<vmem>>, vector<256x128xf32>,
    return
  }
  func.func @transform_0(%arg0: i32, %arg1: i32) -> (i32, i32) {
    %c0_i32 = arith.constant 0 : i32
    %c0_i32_0 = arith.constant 0 : i32
    return %arg0, %c0_i32 : i32, i32
  }
  func.func @transform_1(%arg0: i32, %arg1: i32) -> (i32, i32) {
    %c0_i32 = arith.constant 0 : i32
    %c0_i32_0 = arith.constant 0 : i32
    return %c0_i32, %arg1 : i32, i32
  }
  func.func @transform_2(%arg0: i32, %arg1: i32) -> (i32, i32) {
    %c0_i32 = arith.constant 0 : i32
    %c0_i32_0 = arith.constant 0 : i32
    return %c0_i32, %arg1 : i32, i32
  }
  func.func @transform_3(%arg0: i32, %arg1: i32) -> (i32, i32) {
    %c0_i32 = arith.constant 0 : i32
    return %arg0, %arg1 : i32, i32
  }
}

</mosaic_0001>

<bundles_post_ra>
// kernel: _forward_impl.8
= control target key start
LH: loop header
LB: loop body
LE: loop exit
PB: predicated region body
PF: predicated region fallthrough
CT: control target
= control target key end

     0   :  { %s1424_s1 = inlined_call_operand.vmem [shape: bf16[128,128], index: 1, kind: input, shape index: {}]   ;;  %s1425_s2 = inlined_call_operand.vmem [shape: f32[1,128], index: 2, kind: input, shape index: {}]   ;;  %s1426_s0 = inlined_call_operand.vmem [shape: bf16[512,128], index: 0, kind: input, shape index: {}]   ;;  %s1427_s3 = inlined_call_operand.vmem [shape: bf16[512,128], index: 3, kind: output, shape index: {}]  }
   0x1   :  { %v902_v0 = vld [vmem:[%s1424_s1 + $0x38] sm:$0xff]  ;;  %v901_v1 = vld [vmem:[%s1424_s1 + $0x30] sm:$0xff]  ;;  %v900_v2 = vld [vmem:[%s1424_s1 + $0x28] sm:$0xff] }
   0x2   :  { %338 = vmatpush.bf16.msra.mxu0 %v902_v0  ;;  %1094 = vmatpush.bf16.msra.mxu1 %v902_v0  ;;  %v899_v3 = vld [vmem:[%s1424_s1 + $0x20] sm:$0xff]  ;;  %v898_v4 = vld [vmem:[%s1424_s1 + $0x18] sm:$0xff]  ;;  %v897_v5 = vld [vmem:[%s1424_s1 + $0x10] sm:$0xff] }
   0x3   :  { %1095 = vmatpush.bf16.msra.mxu2 %v902_v0  ;;  %1096 = vmatpush.bf16.msra.mxu3 %v902_v0  ;;  %v896_v6 = vld [vmem:[%s1424_s1 + $0x8] sm:$0xff]  ;;  %v895_v7 = vld [vmem:[%s1424_s1] sm:$0xff]  ;;  %v865_v16 = vld [vmem:[%s1426_s0 + $0x10] sm:$0xff] }
   0x4   :  { %v863_v8 = vld [vmem:[%s1426_s0] sm:$0xff]  ;;  %v864_v12 = vld [vmem:[%s1426_s0 + $0x8] sm:$0xff]  ;;  %v873_v17 = vld [vmem:[%s1426_s0 + $0x50] sm:$0xff] }
   0x5   :  { %v871_v9 = vld [vmem:[%s1426_s0 + $0x40] sm:$0xff]  ;;  %v872_v13 = vld [vmem:[%s1426_s0 + $0x48] sm:$0xff]  ;;  %v881_v18 = vld [vmem:[%s1426_s0 + $0x90] sm:$0xff] }
   0x6   :  { %339 = vmatpush.bf16.msra.mxu0 %v901_v1  ;;  %1097 = vmatpush.bf16.msra.mxu1 %v901_v1  ;;  %v879_v10 = vld [vmem:[%s1426_s0 + $0x80] sm:$0xff]  ;;  %v880_v14 = vld [vmem:[%s1426_s0 + $0x88] sm:$0xff]  ;;  %v889_v19 = vld [vmem:[%s1426_s0 + $0xd0] sm:$0xff] }
   0x7   :  { %1098 = vmatpush.bf16.msra.mxu2 %v901_v1  ;;  %1099 = vmatpush.bf16.msra.mxu3 %v901_v1  ;;  %v887_v11 = vld [vmem:[%s1426_s0 + $0xc0] sm:$0xff]  ;;  %v888_v15 = vld [vmem:[%s1426_s0 + $0xc8] sm:$0xff]  ;;  %v866_v20 = vld [vmem:[%s1426_s0 + $0x18] sm:$0xff] }
   0x8   :  { %v874_v21 = vld [vmem:[%s1426_s0 + $0x58] sm:$0xff]  ;;  %v867_v24 = vld [vmem:[%s1426_s0 + $0x20] sm:$0xff]  ;;  %v868_v28 = vld [vmem:[%s1426_s0 + $0x28] sm:$0xff] }
   0x9   :  { %v882_v22 = vld [vmem:[%s1426_s0 + $0x98] sm:$0xff]  ;;  %v875_v25 = vld [vmem:[%s1426_s0 + $0x60] sm:$0xff]  ;;  %v876_v29 = vld [vmem:[%s1426_s0 + $0x68] sm:$0xff] }
   0xa   :  { %340 = vmatpush.bf16.msra.mxu0 %v900_v2  ;;  %1100 = vmatpush.bf16.msra.mxu1 %v900_v2  ;;  %v890_v23 = vld [vmem:[%s1426_s0 + $0xd8] sm:$0xff]  ;;  %v883_v26 = vld [vmem:[%s1426_s0 + $0xa0] sm:$0xff]  ;;  %v884_v30 = vld [vmem:[%s1426_s0 + $0xa8] sm:$0xff] }
   0xb   :  { %1101 = vmatpush.bf16.msra.mxu2 %v900_v2  ;;  %1102 = vmatpush.bf16.msra.mxu3 %v900_v2  ;;  %v891_v27 = vld [vmem:[%s1426_s0 + $0xe0] sm:$0xff]  ;;  %v892_v31 = vld [vmem:[%s1426_s0 + $0xe8] sm:$0xff]  ;;  %v869_v32 = vld [vmem:[%s1426_s0 + $0x30] sm:$0xff] }
   0xc   :  { %v877_v33 = vld [vmem:[%s1426_s0 + $0x70] sm:$0xff]  ;;  %v870_v36 = vld [vmem:[%s1426_s0 + $0x38] sm:$0xff]  ;;  %v1262_v42 = vld [vmem:[%s1425_s2] ss:$0 sm:$0xff] }
   0xd   :  { %v885_v34 = vld [vmem:[%s1426_s0 + $0xb0] sm:$0xff]  ;;  %v878_v37 = vld [vmem:[%s1426_s0 + $0x78] sm:$0xff] }
   0xe   :  { %341 = vmatpush.bf16.msra.mxu0 %v899_v3  ;;  %1103 = vmatpush.bf16.msra.mxu1 %v899_v3  ;;  %v893_v35 = vld [vmem:[%s1426_s0 + $0xf0] sm:$0xff]  ;;  %v886_v38 = vld [vmem:[%s1426_s0 + $0xb8] sm:$0xff] }
   0xf   :  { %1104 = vmatpush.bf16.msra.mxu2 %v899_v3  ;;  %1105 = vmatpush.bf16.msra.mxu3 %v899_v3  ;;  %v894_v39 = vld [vmem:[%s1426_s0 + $0xf8] sm:$0xff] }
  0x12   :  { %342 = vmatpush.bf16.msra.mxu0 %v898_v4  ;;  %1106 = vmatpush.bf16.msra.mxu1 %v898_v4 }
  0x13   :  { %1107 = vmatpush.bf16.msra.mxu2 %v898_v4  ;;  %1108 = vmatpush.bf16.msra.mxu3 %v898_v4 }
  0x16   :  { %343 = vmatpush.bf16.msra.mxu0 %v897_v5  ;;  %1109 = vmatpush.bf16.msra.mxu1 %v897_v5 }
  0x17   :  { %1110 = vmatpush.bf16.msra.mxu2 %v897_v5  ;;  %1111 = vmatpush.bf16.msra.mxu3 %v897_v5 }
  0x1a   :  { %344 = vmatpush.bf16.msra.mxu0 %v896_v6  ;;  %1112 = vmatpush.bf16.msra.mxu1 %v896_v6 }
  0x1b   :  { %1113 = vmatpush.bf16.msra.mxu2 %v896_v6  ;;  %1114 = vmatpush.bf16.msra.mxu3 %v896_v6 }
  0x1e   :  { %345 = vmatpush.bf16.msra.mxu0 %v895_v7  ;;  %1115 = vmatpush.bf16.msra.mxu1 %v895_v7 }
  0x1f   :  { %1116 = vmatpush.bf16.msra.mxu2 %v895_v7  ;;  %1117 = vmatpush.bf16.msra.mxu3 %v895_v7 }
  0x21   :  { %346 = vmatmul.bf16.vlgmr.msra.gmra.mxu0 %v863_v8  ;;  %386 = vmatmul.bf16.vlgmr.msra.gmra.mxu1 %v871_v9 }
  0x22   :  { %426 = vmatmul.bf16.vlgmr.msra.gmra.mxu2 %v879_v10  ;;  %466 = vmatmul.bf16.vlgmr.msra.gmra.mxu3 %v887_v11 }
  0x31   :  { %351 = vmatmul.bf16.gmra.mxu0 %v864_v12  ;;  %391 = vmatmul.bf16.gmra.mxu1 %v872_v13 }
  0x32   :  { %431 = vmatmul.bf16.gmra.mxu2 %v880_v14  ;;  %471 = vmatmul.bf16.gmra.mxu3 %v888_v15 }
  0x41   :  { %356 = vmatmul.bf16.gmra.mxu0 %v865_v16  ;;  %396 = vmatmul.bf16.gmra.mxu1 %v873_v17 }
  0x42   :  { %436 = vmatmul.bf16.gmra.mxu2 %v881_v18  ;;  %476 = vmatmul.bf16.gmra.mxu3 %v889_v19 }
  0x51   :  { %361 = vmatmul.bf16.gmra.mxu0 %v866_v20  ;;  %401 = vmatmul.bf16.gmra.mxu1 %v874_v21 }
  0x52   :  { %441 = vmatmul.bf16.gmra.mxu2 %v882_v22  ;;  %481 = vmatmul.bf16.gmra.mxu3 %v890_v23 }
  0x61   :  { %366 = vmatmul.bf16.gmra.mxu0 %v867_v24  ;;  %406 = vmatmul.bf16.gmra.mxu1 %v875_v25 }
  0x62   :  { %446 = vmatmul.bf16.gmra.mxu2 %v883_v26  ;;  %486 = vmatmul.bf16.gmra.mxu3 %v891_v27 }
  0x71   :  { %371 = vmatmul.bf16.gmra.mxu0 %v868_v28  ;;  %411 = vmatmul.bf16.gmra.mxu1 %v876_v29 }
  0x72   :  { %451 = vmatmul.bf16.gmra.mxu2 %v884_v30  ;;  %491 = vmatmul.bf16.gmra.mxu3 %v892_v31 }
  0x81   :  { %376 = vmatmul.bf16.gmra.mxu0 %v869_v32  ;;  %416 = vmatmul.bf16.gmra.mxu1 %v877_v33 }
  0x82   :  { %456 = vmatmul.bf16.gmra.mxu2 %v885_v34  ;;  %496 = vmatmul.bf16.gmra.mxu3 %v893_v35 }
  0x91   :  { %381 = vmatmul.bf16.gmra.mxu0 %v870_v36  ;;  %421 = vmatmul.bf16.gmra.mxu1 %v878_v37 }
  0x92   :  { %461 = vmatmul.bf16.gmra.mxu2 %v886_v38  ;;  %501 = vmatmul.bf16.gmra.mxu3 %v894_v39 }
  0x9e   :  { %v347_v40 = vpop.f32.mrf.mxu0  ;;  %v387_v41 = vpop.f32.mrf.mxu1 }
  0x9f   :  { %v348_v43 = vadd.f32 %v1262_v42, %v347_v40  ;;  %v388_v44 = vadd.f32 %v1262_v42, %v387_v41 }
  0xa1   :  { %v507_v51 = vmax.f32 %v348_v43, 0.0  ;;  %v523_v52 = vmax.f32 %v388_v44, 0.0 }
  0xa5   :  { %v427_v45 = vpop.f32.mrf.mxu2  ;;  %v467_v46 = vpop.f32.mrf.mxu3 }
  0xa6   :  { %v349_v47 = vpop.f32.mrf.mxu0  ;;  %v389_v48 = vpop.f32.mrf.mxu1  ;;  %v428_v57 = vadd.f32 %v1262_v42, %v427_v45  ;;  %v468_v58 = vadd.f32 %v1262_v42, %v467_v46 }
  0xa7   :  { %v350_v49 = vadd.f32 %v1262_v42, %v349_v47  ;;  %v390_v50 = vadd.f32 %v1262_v42, %v389_v48 }
  0xa8   :  { %v539_v1 = vmax.f32 %v428_v57, 0.0  ;;  %v555_v2 = vmax.f32 %v468_v58, 0.0 }
  0xa9   :  { %v508_v53 = vmax.f32 %v350_v49, 0.0  ;;  %v524_v54 = vmax.f32 %v390_v50, 0.0 }
  0xab   :  { %v906_v55 = vpack.c.bf16 %v508_v53, %v507_v51  ;;  %v946_v56 = vpack.c.bf16 %v524_v54, %v523_v52 }
  0xad   :  { %907 = vst [vmem:[%s1427_s3] sm:$0xff] %v906_v55   ;;  %v429_v59 = vpop.f32.mrf.mxu2  ;;  %v469_v60 = vpop.f32.mrf.mxu3 }
  0xae   :  { %1070 = vst [vmem:[%s1427_s3 + $0x40] sm:$0xff] %v946_v56   ;;  %v430_v61 = vadd.f32 %v1262_v42, %v429_v59  ;;  %v470_v62 = vadd.f32 %v1262_v42, %v469_v60  ;;  %v352_v63 = vpop.f32.mrf.mxu0  ;;  %v392_v0 = vpop.f32.mrf.mxu1 }
  0xaf   :  { %v353_v7 = vadd.f32 %v1262_v42, %v352_v63  ;;  %v393_v8 = vadd.f32 %v1262_v42, %v392_v0 }
  0xb0   :  { %v540_v3 = vmax.f32 %v430_v61, 0.0  ;;  %v556_v4 = vmax.f32 %v470_v62, 0.0 }
  0xb1   :  { %v509_v15 = vmax.f32 %v353_v7, 0.0  ;;  %v525_v16 = vmax.f32 %v393_v8, 0.0 }
  0xb2   :  { %v986_v5 = vpack.c.bf16 %v540_v3, %v539_v1  ;;  %v1026_v6 = vpack.c.bf16 %v556_v4, %v555_v2 }
  0xb4   :  { %1078 = vst [vmem:[%s1427_s3 + $0x80] sm:$0xff] %v986_v5  }
  0xb5   :  { %1086 = vst [vmem:[%s1427_s3 + $0xc0] sm:$0xff] %v1026_v6   ;;  %v432_v9 = vpop.f32.mrf.mxu2  ;;  %v472_v10 = vpop.f32.mrf.mxu3 }
  0xb6   :  { %v354_v11 = vpop.f32.mrf.mxu0  ;;  %v394_v12 = vpop.f32.mrf.mxu1  ;;  %v433_v21 = vadd.f32 %v1262_v42, %v432_v9  ;;  %v473_v22 = vadd.f32 %v1262_v42, %v472_v10 }
  0xb7   :  { %v355_v13 = vadd.f32 %v1262_v42, %v354_v11  ;;  %v395_v14 = vadd.f32 %v1262_v42, %v394_v12 }
  0xb8   :  { %v541_v29 = vmax.f32 %v433_v21, 0.0  ;;  %v557_v30 = vmax.f32 %v473_v22, 0.0 }
  0xb9   :  { %v510_v17 = vmax.f32 %v355_v13, 0.0  ;;  %v526_v18 = vmax.f32 %v395_v14, 0.0 }
  0xbb   :  { %v911_v19 = vpack.c.bf16 %v510_v17, %v509_v15  ;;  %v951_v20 = vpack.c.bf16 %v526_v18, %v525_v16 }
  0xbd   :  { %1063 = vst [vmem:[%s1427_s3 + $0x8] sm:$0xff] %v911_v19   ;;  %v434_v23 = vpop.f32.mrf.mxu2  ;;  %v474_v24 = vpop.f32.mrf.mxu3 }
  0xbe   :  { %1071 = vst [vmem:[%s1427_s3 + $0x48] sm:$0xff] %v951_v20   ;;  %v435_v25 = vadd.f32 %v1262_v42, %v434_v23  ;;  %v475_v26 = vadd.f32 %v1262_v42, %v474_v24  ;;  %v357_v27 = vpop.f32.mrf.mxu0  ;;  %v397_v28 = vpop.f32.mrf.mxu1 }
  0xbf   :  { %v358_v35 = vadd.f32 %v1262_v42, %v357_v27  ;;  %v398_v36 = vadd.f32 %v1262_v42, %v397_v28 }
  0xc0   :  { %v542_v31 = vmax.f32 %v435_v25, 0.0  ;;  %v558_v32 = vmax.f32 %v475_v26, 0.0 }
  0xc1   :  { %v511_v44 = vmax.f32 %v358_v35, 0.0  ;;  %v527_v45 = vmax.f32 %v398_v36, 0.0 }
  0xc2   :  { %v991_v33 = vpack.c.bf16 %v542_v31, %v541_v29  ;;  %v1031_v34 = vpack.c.bf16 %v558_v32, %v557_v30 }
  0xc4   :  { %1079 = vst [vmem:[%s1427_s3 + $0x88] sm:$0xff] %v991_v33  }
  0xc5   :  { %1087 = vst [vmem:[%s1427_s3 + $0xc8] sm:$0xff] %v1031_v34   ;;  %v437_v37 = vpop.f32.mrf.mxu2  ;;  %v477_v38 = vpop.f32.mrf.mxu3 }
  0xc6   :  { %v359_v39 = vpop.f32.mrf.mxu0  ;;  %v399_v40 = vpop.f32.mrf.mxu1  ;;  %v438_v50 = vadd.f32 %v1262_v42, %v437_v37  ;;  %v478_v51 = vadd.f32 %v1262_v42, %v477_v38 }
  0xc7   :  { %v360_v41 = vadd.f32 %v1262_v42, %v359_v39  ;;  %v400_v43 = vadd.f32 %v1262_v42, %v399_v40 }
  0xc8   :  { %v543_v58 = vmax.f32 %v438_v50, 0.0  ;;  %v559_v59 = vmax.f32 %v478_v51, 0.0 }
  0xc9   :  { %v512_v46 = vmax.f32 %v360_v41, 0.0  ;;  %v528_v47 = vmax.f32 %v400_v43, 0.0 }
  0xcb   :  { %v916_v48 = vpack.c.bf16 %v512_v46, %v511_v44  ;;  %v956_v49 = vpack.c.bf16 %v528_v47, %v527_v45 }
  0xcd   :  { %1064 = vst [vmem:[%s1427_s3 + $0x10] sm:$0xff] %v916_v48   ;;  %v439_v52 = vpop.f32.mrf.mxu2  ;;  %v479_v53 = vpop.f32.mrf.mxu3 }
  0xce   :  { %1072 = vst [vmem:[%s1427_s3 + $0x50] sm:$0xff] %v956_v49   ;;  %v440_v54 = vadd.f32 %v1262_v42, %v439_v52  ;;  %v480_v55 = vadd.f32 %v1262_v42, %v479_v53  ;;  %v362_v56 = vpop.f32.mrf.mxu0  ;;  %v402_v57 = vpop.f32.mrf.mxu1 }
  0xcf   :  { %v363_v0 = vadd.f32 %v1262_v42, %v362_v56  ;;  %v403_v1 = vadd.f32 %v1262_v42, %v402_v57 }
  0xd0   :  { %v544_v60 = vmax.f32 %v440_v54, 0.0  ;;  %v560_v61 = vmax.f32 %v480_v55, 0.0 }
  0xd1   :  { %v513_v8 = vmax.f32 %v363_v0, 0.0  ;;  %v529_v9 = vmax.f32 %v403_v1, 0.0 }
  0xd2   :  { %v996_v62 = vpack.c.bf16 %v544_v60, %v543_v58  ;;  %v1036_v63 = vpack.c.bf16 %v560_v61, %v559_v59 }
  0xd4   :  { %1080 = vst [vmem:[%s1427_s3 + $0x90] sm:$0xff] %v996_v62  }
  0xd5   :  { %1088 = vst [vmem:[%s1427_s3 + $0xd0] sm:$0xff] %v1036_v63   ;;  %v442_v2 = vpop.f32.mrf.mxu2  ;;  %v482_v3 = vpop.f32.mrf.mxu3 }
  0xd6   :  { %v364_v4 = vpop.f32.mrf.mxu0  ;;  %v404_v5 = vpop.f32.mrf.mxu1  ;;  %v443_v14 = vadd.f32 %v1262_v42, %v442_v2  ;;  %v483_v15 = vadd.f32 %v1262_v42, %v482_v3 }
  0xd7   :  { %v365_v6 = vadd.f32 %v1262_v42, %v364_v4  ;;  %v405_v7 = vadd.f32 %v1262_v42, %v404_v5 }
  0xd8   :  { %v545_v22 = vmax.f32 %v443_v14, 0.0  ;;  %v561_v23 = vmax.f32 %v483_v15, 0.0 }
  0xd9   :  { %v514_v10 = vmax.f32 %v365_v6, 0.0  ;;  %v530_v11 = vmax.f32 %v405_v7, 0.0 }
  0xdb   :  { %v921_v12 = vpack.c.bf16 %v514_v10, %v513_v8  ;;  %v961_v13 = vpack.c.bf16 %v530_v11, %v529_v9 }
  0xdd   :  { %1065 = vst [vmem:[%s1427_s3 + $0x18] sm:$0xff] %v921_v12   ;;  %v444_v16 = vpop.f32.mrf.mxu2  ;;  %v484_v17 = vpop.f32.mrf.mxu3 }
  0xde   :  { %1073 = vst [vmem:[%s1427_s3 + $0x58] sm:$0xff] %v961_v13   ;;  %v445_v18 = vadd.f32 %v1262_v42, %v444_v16  ;;  %v485_v19 = vadd.f32 %v1262_v42, %v484_v17  ;;  %v367_v20 = vpop.f32.mrf.mxu0  ;;  %v407_v21 = vpop.f32.mrf.mxu1 }
  0xdf   :  { %v368_v28 = vadd.f32 %v1262_v42, %v367_v20  ;;  %v408_v29 = vadd.f32 %v1262_v42, %v407_v21 }
  0xe0   :  { %v546_v24 = vmax.f32 %v445_v18, 0.0  ;;  %v562_v25 = vmax.f32 %v485_v19, 0.0 }
  0xe1   :  { %v515_v36 = vmax.f32 %v368_v28, 0.0  ;;  %v531_v37 = vmax.f32 %v408_v29, 0.0 }
  0xe2   :  { %v1001_v26 = vpack.c.bf16 %v546_v24, %v545_v22  ;;  %v1041_v27 = vpack.c.bf16 %v562_v25, %v561_v23 }
  0xe4   :  { %1081 = vst [vmem:[%s1427_s3 + $0x98] sm:$0xff] %v1001_v26  }
  0xe5   :  { %1089 = vst [vmem:[%s1427_s3 + $0xd8] sm:$0xff] %v1041_v27   ;;  %v447_v30 = vpop.f32.mrf.mxu2  ;;  %v487_v31 = vpop.f32.mrf.mxu3 }
  0xe6   :  { %v369_v32 = vpop.f32.mrf.mxu0  ;;  %v409_v33 = vpop.f32.mrf.mxu1  ;;  %v448_v43 = vadd.f32 %v1262_v42, %v447_v30  ;;  %v488_v44 = vadd.f32 %v1262_v42, %v487_v31 }
  0xe7   :  { %v370_v34 = vadd.f32 %v1262_v42, %v369_v32  ;;  %v410_v35 = vadd.f32 %v1262_v42, %v409_v33 }
  0xe8   :  { %v547_v51 = vmax.f32 %v448_v43, 0.0  ;;  %v563_v52 = vmax.f32 %v488_v44, 0.0 }
  0xe9   :  { %v516_v38 = vmax.f32 %v370_v34, 0.0  ;;  %v532_v39 = vmax.f32 %v410_v35, 0.0 }
  0xeb   :  { %v926_v40 = vpack.c.bf16 %v516_v38, %v515_v36  ;;  %v966_v41 = vpack.c.bf16 %v532_v39, %v531_v37 }
  0xed   :  { %1066 = vst [vmem:[%s1427_s3 + $0x20] sm:$0xff] %v926_v40   ;;  %v449_v45 = vpop.f32.mrf.mxu2  ;;  %v489_v46 = vpop.f32.mrf.mxu3 }
  0xee   :  { %1074 = vst [vmem:[%s1427_s3 + $0x60] sm:$0xff] %v966_v41   ;;  %v450_v47 = vadd.f32 %v1262_v42, %v449_v45  ;;  %v490_v48 = vadd.f32 %v1262_v42, %v489_v46  ;;  %v372_v49 = vpop.f32.mrf.mxu0  ;;  %v412_v50 = vpop.f32.mrf.mxu1 }
  0xef   :  { %v373_v57 = vadd.f32 %v1262_v42, %v372_v49  ;;  %v413_v58 = vadd.f32 %v1262_v42, %v412_v50 }
  0xf0   :  { %v548_v53 = vmax.f32 %v450_v47, 0.0  ;;  %v564_v54 = vmax.f32 %v490_v48, 0.0 }
  0xf1   :  { %v517_v1 = vmax.f32 %v373_v57, 0.0  ;;  %v533_v2 = vmax.f32 %v413_v58, 0.0 }
  0xf2   :  { %v1006_v55 = vpack.c.bf16 %v548_v53, %v547_v51  ;;  %v1046_v56 = vpack.c.bf16 %v564_v54, %v563_v52 }
  0xf4   :  { %1082 = vst [vmem:[%s1427_s3 + $0xa0] sm:$0xff] %v1006_v55  }
  0xf5   :  { %1090 = vst [vmem:[%s1427_s3 + $0xe0] sm:$0xff] %v1046_v56   ;;  %v452_v59 = vpop.f32.mrf.mxu2  ;;  %v492_v60 = vpop.f32.mrf.mxu3 }
  0xf6   :  { %v374_v61 = vpop.f32.mrf.mxu0  ;;  %v414_v62 = vpop.f32.mrf.mxu1  ;;  %v453_v7 = vadd.f32 %v1262_v42, %v452_v59  ;;  %v493_v8 = vadd.f32 %v1262_v42, %v492_v60 }
  0xf7   :  { %v375_v63 = vadd.f32 %v1262_v42, %v374_v61  ;;  %v415_v0 = vadd.f32 %v1262_v42, %v414_v62 }
  0xf8   :  { %v549_v15 = vmax.f32 %v453_v7, 0.0  ;;  %v565_v16 = vmax.f32 %v493_v8, 0.0 }
  0xf9   :  { %v518_v3 = vmax.f32 %v375_v63, 0.0  ;;  %v534_v4 = vmax.f32 %v415_v0, 0.0 }
  0xfb   :  { %v931_v5 = vpack.c.bf16 %v518_v3, %v517_v1  ;;  %v971_v6 = vpack.c.bf16 %v534_v4, %v533_v2 }
  0xfd   :  { %1067 = vst [vmem:[%s1427_s3 + $0x28] sm:$0xff] %v931_v5   ;;  %v454_v9 = vpop.f32.mrf.mxu2  ;;  %v494_v10 = vpop.f32.mrf.mxu3 }
  0xfe   :  { %1075 = vst [vmem:[%s1427_s3 + $0x68] sm:$0xff] %v971_v6   ;;  %v455_v11 = vadd.f32 %v1262_v42, %v454_v9  ;;  %v495_v12 = vadd.f32 %v1262_v42, %v494_v10  ;;  %v377_v13 = vpop.f32.mrf.mxu0  ;;  %v417_v14 = vpop.f32.mrf.mxu1 }
  0xff   :  { %v378_v21 = vadd.f32 %v1262_v42, %v377_v13  ;;  %v418_v22 = vadd.f32 %v1262_v42, %v417_v14 }
 0x100   :  { %v550_v17 = vmax.f32 %v455_v11, 0.0  ;;  %v566_v18 = vmax.f32 %v495_v12, 0.0 }
 0x101   :  { %v519_v29 = vmax.f32 %v378_v21, 0.0  ;;  %v535_v30 = vmax.f32 %v418_v22, 0.0 }
 0x102   :  { %v1011_v19 = vpack.c.bf16 %v550_v17, %v549_v15  ;;  %v1051_v20 = vpack.c.bf16 %v566_v18, %v565_v16 }
 0x104   :  { %1083 = vst [vmem:[%s1427_s3 + $0xa8] sm:$0xff] %v1011_v19  }
 0x105   :  { %1091 = vst [vmem:[%s1427_s3 + $0xe8] sm:$0xff] %v1051_v20   ;;  %v457_v23 = vpop.f32.mrf.mxu2  ;;  %v497_v24 = vpop.f32.mrf.mxu3 }
 0x106   :  { %v379_v25 = vpop.f32.mrf.mxu0  ;;  %v419_v26 = vpop.f32.mrf.mxu1  ;;  %v458_v35 = vadd.f32 %v1262_v42, %v457_v23  ;;  %v498_v36 = vadd.f32 %v1262_v42, %v497_v24 }
 0x107   :  { %v380_v27 = vadd.f32 %v1262_v42, %v379_v25  ;;  %v420_v28 = vadd.f32 %v1262_v42, %v419_v26 }
 0x108   :  { %v551_v44 = vmax.f32 %v458_v35, 0.0  ;;  %v567_v45 = vmax.f32 %v498_v36, 0.0 }
 0x109   :  { %v520_v31 = vmax.f32 %v380_v27, 0.0  ;;  %v536_v32 = vmax.f32 %v420_v28, 0.0 }
 0x10b   :  { %v936_v33 = vpack.c.bf16 %v520_v31, %v519_v29  ;;  %v976_v34 = vpack.c.bf16 %v536_v32, %v535_v30 }
 0x10d   :  { %1068 = vst [vmem:[%s1427_s3 + $0x30] sm:$0xff] %v936_v33   ;;  %v459_v37 = vpop.f32.mrf.mxu2  ;;  %v499_v38 = vpop.f32.mrf.mxu3 }
 0x10e   :  { %1076 = vst [vmem:[%s1427_s3 + $0x70] sm:$0xff] %v976_v34   ;;  %v460_v39 = vadd.f32 %v1262_v42, %v459_v37  ;;  %v500_v40 = vadd.f32 %v1262_v42, %v499_v38  ;;  %v382_v41 = vpop.f32.mrf.mxu0  ;;  %v422_v43 = vpop.f32.mrf.mxu1 }
 0x10f   :  { %v383_v50 = vadd.f32 %v1262_v42, %v382_v41  ;;  %v423_v51 = vadd.f32 %v1262_v42, %v422_v43 }
 0x110   :  { %v552_v46 = vmax.f32 %v460_v39, 0.0  ;;  %v568_v47 = vmax.f32 %v500_v40, 0.0 }
 0x111   :  { %v521_v58 = vmax.f32 %v383_v50, 0.0  ;;  %v537_v59 = vmax.f32 %v423_v51, 0.0 }
 0x112   :  { %v1016_v48 = vpack.c.bf16 %v552_v46, %v551_v44  ;;  %v1056_v49 = vpack.c.bf16 %v568_v47, %v567_v45 }
 0x114   :  { %1084 = vst [vmem:[%s1427_s3 + $0xb0] sm:$0xff] %v1016_v48  }
 0x115   :  { %1092 = vst [vmem:[%s1427_s3 + $0xf0] sm:$0xff] %v1056_v49   ;;  %v462_v52 = vpop.f32.mrf.mxu2  ;;  %v502_v53 = vpop.f32.mrf.mxu3 }
 0x116   :  { %v384_v54 = vpop.f32.mrf.mxu0  ;;  %v424_v55 = vpop.f32.mrf.mxu1  ;;  %v463_v0 = vadd.f32 %v1262_v42, %v462_v52  ;;  %v503_v1 = vadd.f32 %v1262_v42, %v502_v53 }
 0x117   :  { %v385_v56 = vadd.f32 %v1262_v42, %v384_v54  ;;  %v425_v57 = vadd.f32 %v1262_v42, %v424_v55 }
 0x118   :  { %v553_v6 = vmax.f32 %v463_v0, 0.0  ;;  %v569_v7 = vmax.f32 %v503_v1, 0.0 }
 0x119   :  { %v522_v60 = vmax.f32 %v385_v56, 0.0  ;;  %v538_v61 = vmax.f32 %v425_v57, 0.0 }
 0x11b   :  { %v941_v62 = vpack.c.bf16 %v522_v60, %v521_v58  ;;  %v981_v63 = vpack.c.bf16 %v538_v61, %v537_v59 }
 0x11d   :  { %1069 = vst [vmem:[%s1427_s3 + $0x38] sm:$0xff] %v941_v62   ;;  %v464_v2 = vpop.f32.mrf.mxu2  ;;  %v504_v3 = vpop.f32.mrf.mxu3 }
 0x11e   :  { %1077 = vst [vmem:[%s1427_s3 + $0x78] sm:$0xff] %v981_v63   ;;  %v465_v4 = vadd.f32 %v1262_v42, %v464_v2  ;;  %v505_v5 = vadd.f32 %v1262_v42, %v504_v3 }
 0x120   :  { %v554_v8 = vmax.f32 %v465_v4, 0.0  ;;  %v570_v9 = vmax.f32 %v505_v5, 0.0 }
 0x122   :  { %v1021_v10 = vpack.c.bf16 %v554_v8, %v553_v6  ;;  %v1061_v11 = vpack.c.bf16 %v570_v9, %v569_v7 }
 0x124   :  { %1085 = vst [vmem:[%s1427_s3 + $0xb8] sm:$0xff] %v1021_v10  }
 0x125   :  { %1093 = vst [vmem:[%s1427_s3 + $0xf8] sm:$0xff] %v1061_v11  }

// kernel: _forward_impl.9
= control target key start
LH: loop header
LB: loop body
LE: loop exit
PB: predicated region body
PF: predicated region fallthrough
CT: control target
= control target key end

     0   :  { %s494_s1 = inlined_call_operand.vmem [shape: bf16[128,128], index: 1, kind: input, shape index: {}]   ;;  %s495_s2 = inlined_call_operand.vmem [shape: f32[1,128], index: 2, kind: input, shape index: {}]   ;;  %s496_s0 = inlined_call_operand.vmem [shape: bf16[128,128], index: 0, kind: input, shape index: {}]   ;;  %s497_s3 = inlined_call_operand.vmem [shape: bf16[128,128], index: 3, kind: output, shape index: {}]  }
   0x1   :  { %v326_v0 = vld [vmem:[%s494_s1 + $0x38] sm:$0xff]  ;;  %v325_v1 = vld [vmem:[%s494_s1 + $0x30] sm:$0xff]  ;;  %v324_v2 = vld [vmem:[%s494_s1 + $0x28] sm:$0xff] }
   0x2   :  { %146 = vmatpush.bf16.msra.mxu0 %v326_v0  ;;  %374 = vmatpush.bf16.msra.mxu1 %v326_v0  ;;  %v323_v3 = vld [vmem:[%s494_s1 + $0x20] sm:$0xff]  ;;  %v322_v4 = vld [vmem:[%s494_s1 + $0x18] sm:$0xff]  ;;  %v321_v5 = vld [vmem:[%s494_s1 + $0x10] sm:$0xff] }
   0x3   :  { %375 = vmatpush.bf16.msra.mxu2 %v326_v0  ;;  %376 = vmatpush.bf16.msra.mxu3 %v326_v0  ;;  %v320_v6 = vld [vmem:[%s494_s1 + $0x8] sm:$0xff]  ;;  %v319_v7 = vld [vmem:[%s494_s1] sm:$0xff]  ;;  %v313_v9 = vld [vmem:[%s496_s0 + $0x10] sm:$0xff] }
   0x4   :  { %v311_v8 = vld [vmem:[%s496_s0] sm:$0xff]  ;;  %v317_v11 = vld [vmem:[%s496_s0 + $0x30] sm:$0xff]  ;;  %v312_v12 = vld [vmem:[%s496_s0 + $0x8] sm:$0xff] }
   0x5   :  { %v315_v10 = vld [vmem:[%s496_s0 + $0x20] sm:$0xff]  ;;  %v314_v13 = vld [vmem:[%s496_s0 + $0x18] sm:$0xff]  ;;  %v316_v14 = vld [vmem:[%s496_s0 + $0x28] sm:$0xff] }
   0x6   :  { %147 = vmatpush.bf16.msra.mxu0 %v325_v1  ;;  %377 = vmatpush.bf16.msra.mxu1 %v325_v1  ;;  %v318_v15 = vld [vmem:[%s496_s0 + $0x38] sm:$0xff]  ;;  %v398_v18 = vld [vmem:[%s495_s2] ss:$0 sm:$0xff] }
   0x7   :  { %378 = vmatpush.bf16.msra.mxu2 %v325_v1  ;;  %379 = vmatpush.bf16.msra.mxu3 %v325_v1 }
   0xa   :  { %148 = vmatpush.bf16.msra.mxu0 %v324_v2  ;;  %380 = vmatpush.bf16.msra.mxu1 %v324_v2 }
   0xb   :  { %381 = vmatpush.bf16.msra.mxu2 %v324_v2  ;;  %382 = vmatpush.bf16.msra.mxu3 %v324_v2 }
   0xe   :  { %149 = vmatpush.bf16.msra.mxu0 %v323_v3  ;;  %383 = vmatpush.bf16.msra.mxu1 %v323_v3 }
   0xf   :  { %384 = vmatpush.bf16.msra.mxu2 %v323_v3  ;;  %385 = vmatpush.bf16.msra.mxu3 %v323_v3 }
  0x12   :  { %150 = vmatpush.bf16.msra.mxu0 %v322_v4  ;;  %386 = vmatpush.bf16.msra.mxu1 %v322_v4 }
  0x13   :  { %387 = vmatpush.bf16.msra.mxu2 %v322_v4  ;;  %388 = vmatpush.bf16.msra.mxu3 %v322_v4 }
  0x16   :  { %151 = vmatpush.bf16.msra.mxu0 %v321_v5  ;;  %389 = vmatpush.bf16.msra.mxu1 %v321_v5 }
  0x17   :  { %390 = vmatpush.bf16.msra.mxu2 %v321_v5  ;;  %391 = vmatpush.bf16.msra.mxu3 %v321_v5 }
  0x1a   :  { %152 = vmatpush.bf16.msra.mxu0 %v320_v6  ;;  %392 = vmatpush.bf16.msra.mxu1 %v320_v6 }
  0x1b   :  { %393 = vmatpush.bf16.msra.mxu2 %v320_v6  ;;  %394 = vmatpush.bf16.msra.mxu3 %v320_v6 }
  0x1e   :  { %153 = vmatpush.bf16.msra.mxu0 %v319_v7  ;;  %395 = vmatpush.bf16.msra.mxu1 %v319_v7 }
  0x1f   :  { %396 = vmatpush.bf16.msra.mxu2 %v319_v7  ;;  %397 = vmatpush.bf16.msra.mxu3 %v319_v7 }
  0x21   :  { %154 = vmatmul.bf16.vlgmr.msra.gmra.mxu0 %v311_v8  ;;  %164 = vmatmul.bf16.vlgmr.msra.gmra.mxu1 %v313_v9 }
  0x22   :  { %174 = vmatmul.bf16.vlgmr.msra.gmra.mxu2 %v315_v10  ;;  %184 = vmatmul.bf16.vlgmr.msra.gmra.mxu3 %v317_v11 }
  0x31   :  { %159 = vmatmul.bf16.gmra.mxu0 %v312_v12  ;;  %169 = vmatmul.bf16.gmra.mxu1 %v314_v13 }
  0x32   :  { %179 = vmatmul.bf16.gmra.mxu2 %v316_v14  ;;  %189 = vmatmul.bf16.gmra.mxu3 %v318_v15 }
  0x9e   :  { %v155_v16 = vpop.f32.mrf.mxu0  ;;  %v165_v17 = vpop.f32.mrf.mxu1 }
  0x9f   :  { %v156_v19 = vadd.f32 %v398_v18, %v155_v16  ;;  %v166_v20 = vadd.f32 %v398_v18, %v165_v17 }
  0xa1   :  { %v195_v27 = vmax.f32 %v156_v19, 0.0  ;;  %v199_v28 = vmax.f32 %v166_v20, 0.0 }
  0xa5   :  { %v175_v21 = vpop.f32.mrf.mxu2  ;;  %v185_v22 = vpop.f32.mrf.mxu3 }
  0xa6   :  { %v157_v23 = vpop.f32.mrf.mxu0  ;;  %v167_v24 = vpop.f32.mrf.mxu1  ;;  %v176_v33 = vadd.f32 %v398_v18, %v175_v21  ;;  %v186_v34 = vadd.f32 %v398_v18, %v185_v22 }
  0xa7   :  { %v158_v25 = vadd.f32 %v398_v18, %v157_v23  ;;  %v168_v26 = vadd.f32 %v398_v18, %v167_v24 }
  0xa8   :  { %v203_v41 = vmax.f32 %v176_v33, 0.0  ;;  %v207_v42 = vmax.f32 %v186_v34, 0.0 }
  0xa9   :  { %v196_v29 = vmax.f32 %v158_v25, 0.0  ;;  %v200_v30 = vmax.f32 %v168_v26, 0.0 }
  0xab   :  { %v330_v31 = vpack.c.bf16 %v196_v29, %v195_v27  ;;  %v340_v32 = vpack.c.bf16 %v200_v30, %v199_v28 }
  0xad   :  { %331 = vst [vmem:[%s497_s3] sm:$0xff] %v330_v31   ;;  %v177_v35 = vpop.f32.mrf.mxu2  ;;  %v187_v36 = vpop.f32.mrf.mxu3 }
  0xae   :  { %368 = vst [vmem:[%s497_s3 + $0x10] sm:$0xff] %v340_v32   ;;  %v178_v37 = vadd.f32 %v398_v18, %v177_v35  ;;  %v188_v38 = vadd.f32 %v398_v18, %v187_v36  ;;  %v160_v39 = vpop.f32.mrf.mxu0  ;;  %v170_v40 = vpop.f32.mrf.mxu1 }
  0xaf   :  { %v161_v47 = vadd.f32 %v398_v18, %v160_v39  ;;  %v171_v48 = vadd.f32 %v398_v18, %v170_v40 }
  0xb0   :  { %v204_v43 = vmax.f32 %v178_v37, 0.0  ;;  %v208_v44 = vmax.f32 %v188_v38, 0.0 }
  0xb1   :  { %v197_v55 = vmax.f32 %v161_v47, 0.0  ;;  %v201_v56 = vmax.f32 %v171_v48, 0.0 }
  0xb2   :  { %v350_v45 = vpack.c.bf16 %v204_v43, %v203_v41  ;;  %v360_v46 = vpack.c.bf16 %v208_v44, %v207_v42 }
  0xb4   :  { %370 = vst [vmem:[%s497_s3 + $0x20] sm:$0xff] %v350_v45  }
  0xb5   :  { %372 = vst [vmem:[%s497_s3 + $0x30] sm:$0xff] %v360_v46   ;;  %v180_v49 = vpop.f32.mrf.mxu2  ;;  %v190_v50 = vpop.f32.mrf.mxu3 }
  0xb6   :  { %v162_v51 = vpop.f32.mrf.mxu0  ;;  %v172_v52 = vpop.f32.mrf.mxu1  ;;  %v181_v61 = vadd.f32 %v398_v18, %v180_v49  ;;  %v191_v62 = vadd.f32 %v398_v18, %v190_v50 }
  0xb7   :  { %v163_v53 = vadd.f32 %v398_v18, %v162_v51  ;;  %v173_v54 = vadd.f32 %v398_v18, %v172_v52 }
  0xb8   :  { %v205_v3 = vmax.f32 %v181_v61, 0.0  ;;  %v209_v4 = vmax.f32 %v191_v62, 0.0 }
  0xb9   :  { %v198_v57 = vmax.f32 %v163_v53, 0.0  ;;  %v202_v58 = vmax.f32 %v173_v54, 0.0 }
  0xbb   :  { %v335_v59 = vpack.c.bf16 %v198_v57, %v197_v55  ;;  %v345_v60 = vpack.c.bf16 %v202_v58, %v201_v56 }
  0xbd   :  { %367 = vst [vmem:[%s497_s3 + $0x8] sm:$0xff] %v335_v59   ;;  %v182_v63 = vpop.f32.mrf.mxu2  ;;  %v192_v0 = vpop.f32.mrf.mxu3 }
  0xbe   :  { %369 = vst [vmem:[%s497_s3 + $0x18] sm:$0xff] %v345_v60   ;;  %v183_v1 = vadd.f32 %v398_v18, %v182_v63  ;;  %v193_v2 = vadd.f32 %v398_v18, %v192_v0 }
  0xc0   :  { %v206_v5 = vmax.f32 %v183_v1, 0.0  ;;  %v210_v6 = vmax.f32 %v193_v2, 0.0 }
  0xc2   :  { %v355_v7 = vpack.c.bf16 %v206_v5, %v205_v3  ;;  %v365_v8 = vpack.c.bf16 %v210_v6, %v209_v4 }
  0xc4   :  { %371 = vst [vmem:[%s497_s3 + $0x28] sm:$0xff] %v355_v7  }
  0xc5   :  { %373 = vst [vmem:[%s497_s3 + $0x38] sm:$0xff] %v365_v8  }

// kernel: _forward_impl.10
= control target key start
LH: loop header
LB: loop body
LE: loop exit
PB: predicated region body
PF: predicated region fallthrough
CT: control target
= control target key end

     0   :  { %s669_s12 = smov 0   ;;  %s671_s13 = smov 0   ;;  %s759_s0 = inlined_call_operand.vmem [shape: bf16[8,128], index: 0, kind: input, shape index: {}]   ;;  %s760_s1 = inlined_call_operand.vmem [shape: bf16[128,896], index: 1, kind: input, shape index: {}]   ;;  %s761_s2 = inlined_call_operand.vmem [shape: f32[1,896], index: 2, kind: input, shape index: {}]   ;;  %s762_s3 = inlined_call_operand.vmem [shape: f32[8,896], index: 3, kind: output, shape index: {}]  }
   0x1   :  { %s673_s14 = smov 0   ;;  %s675_s15 = smov 0  }
   0x2   :  { %s677_s16 = smov 0  }
   0x3 LB: > { %s22_s17 = sadd.s32 1, %s643_s15  ;;  %p65_p1 = scmp.ne.s32.totalorder %s635_s13, %s631_s12  ;;  %s647_s16 = sphi %s677_s16, %s13_s16   ;;  %s643_s15 = sphi %s675_s15, %s766_s15   ;;  %s639_s14 = sphi %s673_s14, %s765_s14   ;;  %s635_s13 = sphi %s671_s13, %s764_s13   ;;  %s631_s12 = sphi %s669_s12, %s763_s12  }
   0x4   : > { %p23_p0 = scmp.ge.s32.totalorder %s22_s17, 7  ;;  %p66_p2 = scmp.eq.s32.totalorder %s647_s16, 0 }
   0x5   : > { %s58_s19 = sadd.s32 1, %s635_s13  ;;  %p520_p5 = scmp.ge.s32.totalorder %s647_s16, 7 }
   0x6   : > { %s768_s17 = smov (%p23_p0, %s22_s17), 0  ;;  %p67_p3 = por %p66_p2, %p65_p1 }
   0x7   : > { %s55_s18 = ssub.s32 %s643_s15, %s768_s17  ;;  %152 = sbr.rel (%p520_p5) target bundleno = 32 (0x20), region = 20 }
   0x8   : > { %p56_p4 = scmp.eq.s32.totalorder %s55_s18, 0 }
   0xa   : > { %s704_s20 = scalar_select %p56_p4, %s635_s13, %s58_s19  }
   0xc   : > { %155 = sbr.rel (!%p67_p3) target bundleno = 32 (0x20), region = 24  ;;  %s157_s21 = sand.u32 (%p67_p3), 1, %s635_s13  }
   0xd   : > { %s522_s22 = sshll.u32 (%p67_p3), %s643_s15, 2  ;;  %s521_s23 = sshll.u32 (%p67_p3), %s157_s21, 6 }
   0xe   : > { %s712_s26 = scalar_lea.vmem (%p67_p3), %s760_s1, %s522_s22  ;;  %s159_s27 = scalar_lea.vmem (%p67_p3), [#allocation2], %s521_s23 }
   0xf   : > { %v178_v0 = vld [vmem:[%s712_s26] sm:$0xf] (%p67_p3)  ;;  %v180_v1 = vld [vmem:[%s712_s26 + $0x1c] sm:$0xf] (%p67_p3)  ;;  %v182_v2 = vld [vmem:[%s712_s26 + $0x38] sm:$0xf] (%p67_p3) }
  0x10   : > { %179 = vst [vmem:[%s159_s27] sm:$0xf] (%p67_p3), %v178_v0  ;;  %v184_v3 = vld [vmem:[%s712_s26 + $0x54] sm:$0xf] (%p67_p3)  ;;  %v186_v4 = vld [vmem:[%s712_s26 + $0x70] sm:$0xf] (%p67_p3) }
  0x11   : > { %181 = vst [vmem:[%s159_s27 + $0x4] sm:$0xf] %v180_v1  ;;  %v188_v5 = vld [vmem:[%s712_s26 + $0x8c] sm:$0xf]  ;;  %v190_v6 = vld [vmem:[%s712_s26 + $0xa8] sm:$0xf] }
  0x12   : > { %183 = vst [vmem:[%s159_s27 + $0x8] sm:$0xf] %v182_v2  ;;  %v192_v7 = vld [vmem:[%s712_s26 + $0xc4] sm:$0xf]  ;;  %v194_v8 = vld [vmem:[%s712_s26 + $0xe0] sm:$0xf] }
  0x13   : > { %185 = vst [vmem:[%s159_s27 + $0xc] sm:$0xf] %v184_v3  ;;  %v196_v9 = vld [vmem:[%s712_s26 + $0xfc] sm:$0xf]  ;;  %v198_v10 = vld [vmem:[%s712_s26 + $0x118] sm:$0xf] }
  0x14   : > { %187 = vst [vmem:[%s159_s27 + $0x10] sm:$0xf] %v186_v4  ;;  %v200_v11 = vld [vmem:[%s712_s26 + $0x134] sm:$0xf]  ;;  %v202_v12 = vld [vmem:[%s712_s26 + $0x150] sm:$0xf] }
  0x15   : > { %189 = vst [vmem:[%s159_s27 + $0x14] sm:$0xf] %v188_v5  ;;  %v204_v13 = vld [vmem:[%s712_s26 + $0x16c] sm:$0xf]  ;;  %v206_v14 = vld [vmem:[%s712_s26 + $0x188] sm:$0xf] }
  0x16   : > { %191 = vst [vmem:[%s159_s27 + $0x18] sm:$0xf] %v190_v6  ;;  %v208_v15 = vld [vmem:[%s712_s26 + $0x1a4] sm:$0xf] }
  0x17   : > { %193 = vst [vmem:[%s159_s27 + $0x1c] sm:$0xf] %v192_v7 }
  0x18   : > { %195 = vst [vmem:[%s159_s27 + $0x20] sm:$0xf] %v194_v8 }
  0x19   : > { %197 = vst [vmem:[%s159_s27 + $0x24] sm:$0xf] %v196_v9 }
  0x1a   : > { %199 = vst [vmem:[%s159_s27 + $0x28] sm:$0xf] %v198_v10 }
  0x1b   : > { %201 = vst [vmem:[%s159_s27 + $0x2c] sm:$0xf] %v200_v11 }
  0x1c   : > { %203 = vst [vmem:[%s159_s27 + $0x30] sm:$0xf] %v202_v12 }
  0x1d   : > { %205 = vst [vmem:[%s159_s27 + $0x34] sm:$0xf] %v204_v13 }
  0x1e   : > { %207 = vst [vmem:[%s159_s27 + $0x38] sm:$0xf] %v206_v14 }
  0x1f   : > { %209 = vst [vmem:[%s159_s27 + $0x3c] sm:$0xf] %v208_v15 }
  0x20 PF: > { %p523_p6 = scmp.ge.s32.totalorder %s647_s16, 1  ;;  %p270_p7 = scmp.lt.s32.totalorder %s647_s16, 8 }
  0x22   : > { %p271_p8 = pnand %p523_p6, %p270_p7 }
  0x23   : > { %s277_s28 = sand.u32 (!%p271_p8), 1, %s631_s12   ;;  %p314_p9 = scmp.lt.s32.totalorder (!%p271_p8), %s639_s14, 6 }
  0x24   : > { %274 = sbr.rel (%p271_p8) target bundleno = 207 (0xcf), region = 69  ;;  %s524_s29 = sshll.u32 (!%p271_p8), %s277_s28, 6 }
  0x25   : > { %s279_s30 = scalar_lea.vmem (!%p271_p8), [#allocation2], %s524_s29 }
  0x29   : > { %v567_v16 = vld [vmem:[%s279_s30 + $0x38] sm:$0xff]  ;;  %s770_s14 = smov (!%p314_p9, %s639_s14), 6  ;;  %v566_v17 = vld [vmem:[%s279_s30 + $0x30] sm:$0xff]  ;;  %v565_v18 = vld [vmem:[%s279_s30 + $0x28] sm:$0xff] }
  0x2a   : > { %394 = vmatpush.bf16.msra.mxu0 %v567_v16  ;;  %s316_s6 = scalar_lea.vmem %s761_s2, %s770_s14  ;;  %v564_v19 = vld [vmem:[%s279_s30 + $0x20] sm:$0xff]  ;;  %v563_v20 = vld [vmem:[%s279_s30 + $0x18] sm:$0xff]  ;;  %v562_v21 = vld [vmem:[%s279_s30 + $0x10] sm:$0xff]  ;;  %s525_s9 = sshll.u32 %s770_s14, 3 }
  0x2b   : > { %v561_v22 = vld [vmem:[%s279_s30 + $0x8] sm:$0xff]  ;;  %v560_v23 = vld [vmem:[%s279_s30] sm:$0xff]  ;;  %s324_s12 = scalar_lea.vmem %s762_s3, %s525_s9 }
  0x2c   : > { %v325_v24 = vld [vmem:[%s759_s0] sm:$0xf] }
  0x2d   : > { %v608_v25 = vld [vmem:[%s316_s6] ss:$0 sm:$0xff] }
  0x2e   : > { %395 = vmatpush.bf16.msra.mxu0 %v566_v17 }
  0x32   : > { %396 = vmatpush.bf16.msra.mxu0 %v565_v18 }
  0x36   : > { %397 = vmatpush.bf16.msra.mxu0 %v564_v19 }
  0x3a   : > { %398 = vmatpush.bf16.msra.mxu0 %v563_v20 }
  0x3e   : > { %399 = vmatpush.bf16.msra.mxu0 %v562_v21 }
  0x42   : > { %400 = vmatpush.bf16.msra.mxu0 %v561_v22 }
  0x46   : > { %401 = vmatpush.bf16.msra.mxu0 %v560_v23 }
  0x49   : > { %402 = vmatmul.bf16.vlgmr.msra.gmra.mxu0 %v325_v24 }
  0xc6   : > { %v403_v26 = vpop.f32.mrf.mxu0 }
  0xc7   : > { %v404_v27 = vadd.f32 %v608_v25, %v403_v26 }
  0xc9   : > { %407 = vst [vmem:[%s324_s12] sm:$0xff] %v404_v27 }
  0xce   : > { %v405_v28 = vpop.f32.mrf.mxu0 }
  0xcf PF: > { %s13_s16 = sadd.s32 1, %s647_s16   ;;  %s763_s12 = smov %s635_s13 }
  0xd0   : > { %p10_p10 = scmp.ge.s32.totalorder %s13_s16, 9   ;;  %s764_s13 = smov %s704_s20 }
  0xd1   : > { %s765_s14 = smov %s643_s15  ;;  %s766_s15 = smov %s768_s17 }
  0xd2   :  { %12 = sbr.rel (!%p10_p10) target bundleno = 3 (0x3), region = 114 }

// kernel: _forward_impl.11
= control target key start
LH: loop header
LB: loop body
LE: loop exit
PB: predicated region body
PF: predicated region fallthrough
CT: control target
= control target key end

     0   :  { %s1435_s1 = inlined_call_operand.vmem [shape: bf16[512,128], index: 1, kind: input, shape index: {}]   ;;  %s1436_s2 = inlined_call_operand.vmem [shape: f32[1,128], index: 2, kind: input, shape index: {}]   ;;  %s1437_s0 = inlined_call_operand.vmem [shape: bf16[128,512], index: 0, kind: input, shape index: {}]   ;;  %s1438_s3 = inlined_call_operand.vmem [shape: bf16[128,128], index: 3, kind: output, shape index: {}]  }
   0x1   :  { %v1009_v0 = vld [vmem:[%s1435_s1 + $0x38] sm:$0xff]  ;;  %v1008_v4 = vld [vmem:[%s1435_s1 + $0x30] sm:$0xff]  ;;  %v1007_v8 = vld [vmem:[%s1435_s1 + $0x28] sm:$0xff] }
   0x2   :  { %v1017_v1 = vld [vmem:[%s1435_s1 + $0x78] sm:$0xff]  ;;  %466 = vmatpush.bf16.msra.mxu0 %v1009_v0  ;;  %v1016_v5 = vld [vmem:[%s1435_s1 + $0x70] sm:$0xff]  ;;  %v1015_v9 = vld [vmem:[%s1435_s1 + $0x68] sm:$0xff] }
   0x3   :  { %v1025_v2 = vld [vmem:[%s1435_s1 + $0xb8] sm:$0xff]  ;;  %515 = vmatpush.bf16.msra.mxu1 %v1017_v1  ;;  %v1024_v6 = vld [vmem:[%s1435_s1 + $0xb0] sm:$0xff]  ;;  %v1023_v10 = vld [vmem:[%s1435_s1 + $0xa8] sm:$0xff] }
   0x4   :  { %v1033_v3 = vld [vmem:[%s1435_s1 + $0xf8] sm:$0xff]  ;;  %564 = vmatpush.bf16.msra.mxu2 %v1025_v2  ;;  %v1032_v7 = vld [vmem:[%s1435_s1 + $0xf0] sm:$0xff]  ;;  %v1031_v11 = vld [vmem:[%s1435_s1 + $0xe8] sm:$0xff] }
   0x5   :  { %613 = vmatpush.bf16.msra.mxu3 %v1033_v3  ;;  %v1006_v12 = vld [vmem:[%s1435_s1 + $0x20] sm:$0xff]  ;;  %v1005_v16 = vld [vmem:[%s1435_s1 + $0x18] sm:$0xff]  ;;  %v1004_v20 = vld [vmem:[%s1435_s1 + $0x10] sm:$0xff] }
   0x6   :  { %467 = vmatpush.bf16.msra.mxu0 %v1008_v4  ;;  %v1014_v13 = vld [vmem:[%s1435_s1 + $0x60] sm:$0xff]  ;;  %v1013_v17 = vld [vmem:[%s1435_s1 + $0x58] sm:$0xff]  ;;  %v1012_v21 = vld [vmem:[%s1435_s1 + $0x50] sm:$0xff] }
   0x7   :  { %516 = vmatpush.bf16.msra.mxu1 %v1016_v5  ;;  %v1022_v14 = vld [vmem:[%s1435_s1 + $0xa0] sm:$0xff]  ;;  %v1021_v18 = vld [vmem:[%s1435_s1 + $0x98] sm:$0xff]  ;;  %v1020_v22 = vld [vmem:[%s1435_s1 + $0x90] sm:$0xff] }
   0x8   :  { %565 = vmatpush.bf16.msra.mxu2 %v1024_v6  ;;  %v1030_v15 = vld [vmem:[%s1435_s1 + $0xe0] sm:$0xff]  ;;  %v1029_v19 = vld [vmem:[%s1435_s1 + $0xd8] sm:$0xff]  ;;  %v1028_v23 = vld [vmem:[%s1435_s1 + $0xd0] sm:$0xff] }
   0x9   :  { %614 = vmatpush.bf16.msra.mxu3 %v1032_v7  ;;  %v1003_v24 = vld [vmem:[%s1435_s1 + $0x8] sm:$0xff]  ;;  %v1002_v28 = vld [vmem:[%s1435_s1] sm:$0xff]  ;;  %v972_v33 = vld [vmem:[%s1437_s0 + $0xc] sm:$0xf0] }
   0xa   :  { %468 = vmatpush.bf16.msra.mxu0 %v1007_v8  ;;  %v1011_v25 = vld [vmem:[%s1435_s1 + $0x48] sm:$0xff]  ;;  %v1010_v29 = vld [vmem:[%s1435_s1 + $0x40] sm:$0xff]  ;;  %v718_v35 = vld [vmem:[%s1437_s0 + $0x10] sm:$0xf0] }
   0xb   :  { %517 = vmatpush.bf16.msra.mxu1 %v1015_v9  ;;  %v1019_v26 = vld [vmem:[%s1435_s1 + $0x88] sm:$0xff]  ;;  %v1018_v30 = vld [vmem:[%s1435_s1 + $0x80] sm:$0xff]  ;;  %v973_v37 = vld [vmem:[%s1437_s0 + $0x14] sm:$0xf0] }
   0xc   :  { %566 = vmatpush.bf16.msra.mxu2 %v1023_v10  ;;  %v1027_v27 = vld [vmem:[%s1435_s1 + $0xc8] sm:$0xff]  ;;  %v1026_v31 = vld [vmem:[%s1435_s1 + $0xc0] sm:$0xff]  ;;  %v726_v39 = vld [vmem:[%s1437_s0 + $0x18] sm:$0xf0] }
   0xd   :  { %615 = vmatpush.bf16.msra.mxu3 %v1031_v11  ;;  %v716_v32 = vld [vmem:[%s1437_s0] sm:$0xf]  ;;  %v970_v34 = vld [vmem:[%s1437_s0 + $0x4] sm:$0xf]  ;;  %v724_v36 = vld [vmem:[%s1437_s0 + $0x8] sm:$0xf] }
   0xe   :  { %469 = vmatpush.bf16.msra.mxu0 %v1006_v12  ;;  %v971_v38 = vld [vmem:[%s1437_s0 + $0xc] sm:$0xf]  ;;  %v717_v40 = vor.u32 %v972_v33, %v716_v32  ;;  %v721_v41 = vor.u32 %v970_v34, %v718_v35  ;;  %v725_v42 = vor.u32 %v973_v37, %v724_v36  ;;  %v732_v44 = vld [vmem:[%s1437_s0 + $0x20] sm:$0xf]  ;;  %v976_v45 = vld [vmem:[%s1437_s0 + $0x2c] sm:$0xf0] }
   0xf   :  { %518 = vmatpush.bf16.msra.mxu1 %v1014_v13  ;;  %v729_v43 = vor.u32 %v971_v38, %v726_v39  ;;  %v974_v46 = vld [vmem:[%s1437_s0 + $0x24] sm:$0xf]  ;;  %v734_v47 = vld [vmem:[%s1437_s0 + $0x30] sm:$0xf0]  ;;  %v740_v48 = vld [vmem:[%s1437_s0 + $0x28] sm:$0xf]  ;;  %v733_v52 = vor.u32 %v976_v45, %v732_v44 }
  0x10   :  { %567 = vmatpush.bf16.msra.mxu2 %v1022_v14  ;;  %v977_v49 = vld [vmem:[%s1437_s0 + $0x34] sm:$0xf0]  ;;  %v975_v50 = vld [vmem:[%s1437_s0 + $0x2c] sm:$0xf]  ;;  %v742_v51 = vld [vmem:[%s1437_s0 + $0x38] sm:$0xf0]  ;;  %v737_v53 = vor.u32 %v974_v46, %v734_v47 }
  0x11   :  { %616 = vmatpush.bf16.msra.mxu3 %v1030_v15  ;;  %v741_v54 = vor.u32 %v977_v49, %v740_v48  ;;  %v745_v55 = vor.u32 %v975_v50, %v742_v51  ;;  %v748_v56 = vld [vmem:[%s1437_s0 + $0x40] sm:$0xf]  ;;  %v980_v57 = vld [vmem:[%s1437_s0 + $0x4c] sm:$0xf0]  ;;  %v978_v58 = vld [vmem:[%s1437_s0 + $0x44] sm:$0xf] }
  0x12   :  { %470 = vmatpush.bf16.msra.mxu0 %v1005_v16  ;;  %v750_v59 = vld [vmem:[%s1437_s0 + $0x50] sm:$0xf0]  ;;  %v756_v60 = vld [vmem:[%s1437_s0 + $0x48] sm:$0xf]  ;;  %v981_v61 = vld [vmem:[%s1437_s0 + $0x54] sm:$0xf0]  ;;  %v749_v0 = vor.u32 %v980_v57, %v748_v56 }
  0x13   :  { %519 = vmatpush.bf16.msra.mxu1 %v1013_v17  ;;  %v979_v62 = vld [vmem:[%s1437_s0 + $0x4c] sm:$0xf]  ;;  %v758_v63 = vld [vmem:[%s1437_s0 + $0x58] sm:$0xf0]  ;;  %v753_v1 = vor.u32 %v978_v58, %v750_v59  ;;  %v757_v2 = vor.u32 %v981_v61, %v756_v60  ;;  %v764_v4 = vld [vmem:[%s1437_s0 + $0x60] sm:$0xf] }
  0x14   :  { %568 = vmatpush.bf16.msra.mxu2 %v1021_v18  ;;  %v761_v3 = vor.u32 %v979_v62, %v758_v63  ;;  %v984_v5 = vld [vmem:[%s1437_s0 + $0x6c] sm:$0xf0]  ;;  %v982_v6 = vld [vmem:[%s1437_s0 + $0x64] sm:$0xf]  ;;  %v766_v7 = vld [vmem:[%s1437_s0 + $0x70] sm:$0xf0] }
  0x15   :  { %617 = vmatpush.bf16.msra.mxu3 %v1029_v19  ;;  %v772_v8 = vld [vmem:[%s1437_s0 + $0x68] sm:$0xf]  ;;  %v985_v9 = vld [vmem:[%s1437_s0 + $0x74] sm:$0xf0]  ;;  %v983_v10 = vld [vmem:[%s1437_s0 + $0x6c] sm:$0xf]  ;;  %v765_v12 = vor.u32 %v984_v5, %v764_v4  ;;  %v769_v13 = vor.u32 %v982_v6, %v766_v7 }
  0x16   :  { %471 = vmatpush.bf16.msra.mxu0 %v1004_v20  ;;  %v774_v11 = vld [vmem:[%s1437_s0 + $0x78] sm:$0xf0]  ;;  %v773_v14 = vor.u32 %v985_v9, %v772_v8  ;;  %v780_v16 = vld [vmem:[%s1437_s0 + $0x80] sm:$0xf]  ;;  %v988_v17 = vld [vmem:[%s1437_s0 + $0x8c] sm:$0xf0] }
  0x17   :  { %520 = vmatpush.bf16.msra.mxu1 %v1012_v21  ;;  %v777_v15 = vor.u32 %v983_v10, %v774_v11  ;;  %v986_v18 = vld [vmem:[%s1437_s0 + $0x84] sm:$0xf]  ;;  %v782_v19 = vld [vmem:[%s1437_s0 + $0x90] sm:$0xf0]  ;;  %v788_v20 = vld [vmem:[%s1437_s0 + $0x88] sm:$0xf] }
  0x18   :  { %569 = vmatpush.bf16.msra.mxu2 %v1020_v22  ;;  %v989_v21 = vld [vmem:[%s1437_s0 + $0x94] sm:$0xf0]  ;;  %v987_v22 = vld [vmem:[%s1437_s0 + $0x8c] sm:$0xf]  ;;  %v804_v32 = vld [vmem:[%s1437_s0 + $0xa8] sm:$0xf] }
  0x19   :  { %618 = vmatpush.bf16.msra.mxu3 %v1028_v23  ;;  %v790_v23 = vld [vmem:[%s1437_s0 + $0x98] sm:$0xf0]  ;;  %v993_v33 = vld [vmem:[%s1437_s0 + $0xb4] sm:$0xf0]  ;;  %v991_v34 = vld [vmem:[%s1437_s0 + $0xac] sm:$0xf] }
  0x1a   :  { %472 = vmatpush.bf16.msra.mxu0 %v1003_v24  ;;  %v781_v24 = vor.u32 %v988_v17, %v780_v16  ;;  %v806_v35 = vld [vmem:[%s1437_s0 + $0xb8] sm:$0xf0]  ;;  %v805_v38 = vor.u32 %v993_v33, %v804_v32  ;;  %v820_v44 = vld [vmem:[%s1437_s0 + $0xc8] sm:$0xf]  ;;  %v997_v45 = vld [vmem:[%s1437_s0 + $0xd4] sm:$0xf0] }
  0x1b   :  { %521 = vmatpush.bf16.msra.mxu1 %v1011_v25  ;;  %v785_v25 = vor.u32 %v986_v18, %v782_v19  ;;  %v809_v39 = vor.u32 %v991_v34, %v806_v35  ;;  %v995_v46 = vld [vmem:[%s1437_s0 + $0xcc] sm:$0xf]  ;;  %v822_v47 = vld [vmem:[%s1437_s0 + $0xd8] sm:$0xf0]  ;;  %v821_v50 = vor.u32 %v997_v45, %v820_v44  ;;  %v836_v56 = vld [vmem:[%s1437_s0 + $0xe8] sm:$0xf] }
  0x1c   :  { %570 = vmatpush.bf16.msra.mxu2 %v1019_v26  ;;  %v789_v26 = vor.u32 %v989_v21, %v788_v20  ;;  %v825_v51 = vor.u32 %v995_v46, %v822_v47  ;;  %v1001_v57 = vld [vmem:[%s1437_s0 + $0xf4] sm:$0xf0]  ;;  %v999_v58 = vld [vmem:[%s1437_s0 + $0xec] sm:$0xf]  ;;  %v838_v59 = vld [vmem:[%s1437_s0 + $0xf8] sm:$0xf0] }
  0x1d   :  { %619 = vmatpush.bf16.msra.mxu3 %v1027_v27  ;;  %v793_v27 = vor.u32 %v987_v22, %v790_v23  ;;  %v837_v62 = vor.u32 %v1001_v57, %v836_v56  ;;  %v841_v63 = vor.u32 %v999_v58, %v838_v59 }
  0x1e   :  { %473 = vmatpush.bf16.msra.mxu0 %v1002_v28  ;;  %v796_v28 = vld [vmem:[%s1437_s0 + $0xa0] sm:$0xf] }
  0x1f   :  { %522 = vmatpush.bf16.msra.mxu1 %v1010_v29  ;;  %v992_v29 = vld [vmem:[%s1437_s0 + $0xac] sm:$0xf0] }
  0x20   :  { %571 = vmatpush.bf16.msra.mxu2 %v1018_v30  ;;  %v990_v30 = vld [vmem:[%s1437_s0 + $0xa4] sm:$0xf]  ;;  %v797_v36 = vor.u32 %v992_v29, %v796_v28 }
  0x21   :  { %620 = vmatpush.bf16.msra.mxu3 %v1026_v31  ;;  %474 = vmatmul.bf16.vlgmr.msra.gmra.mxu0 %v717_v40  ;;  %v798_v31 = vld [vmem:[%s1437_s0 + $0xb0] sm:$0xf0]  ;;  %v812_v40 = vld [vmem:[%s1437_s0 + $0xc0] sm:$0xf] }
  0x22   :  { %523 = vmatmul.bf16.vlgmr.msra.gmra.mxu1 %v721_v41  ;;  %v801_v37 = vor.u32 %v990_v30, %v798_v31  ;;  %v996_v41 = vld [vmem:[%s1437_s0 + $0xcc] sm:$0xf0] }
  0x23   :  { %572 = vmatmul.bf16.vlgmr.msra.gmra.mxu2 %v725_v42  ;;  %v994_v42 = vld [vmem:[%s1437_s0 + $0xc4] sm:$0xf]  ;;  %v813_v48 = vor.u32 %v996_v41, %v812_v40 }
  0x24   :  { %621 = vmatmul.bf16.vlgmr.msra.gmra.mxu3 %v729_v43  ;;  %v814_v43 = vld [vmem:[%s1437_s0 + $0xd0] sm:$0xf0] }
  0x25   :  { %v817_v49 = vor.u32 %v994_v42, %v814_v43 }
  0x31   :  { %479 = vmatmul.bf16.gmra.mxu0 %v733_v52  ;;  %v828_v52 = vld [vmem:[%s1437_s0 + $0xe0] sm:$0xf] }
  0x32   :  { %528 = vmatmul.bf16.gmra.mxu1 %v737_v53  ;;  %v1000_v53 = vld [vmem:[%s1437_s0 + $0xec] sm:$0xf0] }
  0x33   :  { %577 = vmatmul.bf16.gmra.mxu2 %v741_v54  ;;  %v998_v54 = vld [vmem:[%s1437_s0 + $0xe4] sm:$0xf]  ;;  %v829_v60 = vor.u32 %v1000_v53, %v828_v52 }
  0x34   :  { %626 = vmatmul.bf16.gmra.mxu3 %v745_v55  ;;  %v830_v55 = vld [vmem:[%s1437_s0 + $0xf0] sm:$0xf0] }
  0x35   :  { %v833_v61 = vor.u32 %v998_v54, %v830_v55 }
  0x41   :  { %484 = vmatmul.bf16.gmra.mxu0 %v749_v0  ;;  %v1393_v0 = vld [vmem:[%s1436_s2] ss:$0 sm:$0xff] }
  0x42   :  { %533 = vmatmul.bf16.gmra.mxu1 %v753_v1 }
  0x43   :  { %582 = vmatmul.bf16.gmra.mxu2 %v757_v2 }
  0x44   :  { %631 = vmatmul.bf16.gmra.mxu3 %v761_v3 }
  0x51   :  { %489 = vmatmul.bf16.gmra.mxu0 %v765_v12 }
  0x52   :  { %538 = vmatmul.bf16.gmra.mxu1 %v769_v13 }
  0x53   :  { %587 = vmatmul.bf16.gmra.mxu2 %v773_v14 }
  0x54   :  { %636 = vmatmul.bf16.gmra.mxu3 %v777_v15 }
  0x61   :  { %494 = vmatmul.bf16.gmra.mxu0 %v781_v24 }
  0x62   :  { %543 = vmatmul.bf16.gmra.mxu1 %v785_v25 }
  0x63   :  { %592 = vmatmul.bf16.gmra.mxu2 %v789_v26 }
  0x64   :  { %641 = vmatmul.bf16.gmra.mxu3 %v793_v27 }
  0x71   :  { %499 = vmatmul.bf16.gmra.mxu0 %v797_v36 }
  0x72   :  { %548 = vmatmul.bf16.gmra.mxu1 %v801_v37 }
  0x73   :  { %597 = vmatmul.bf16.gmra.mxu2 %v805_v38 }
  0x74   :  { %646 = vmatmul.bf16.gmra.mxu3 %v809_v39 }
  0x81   :  { %504 = vmatmul.bf16.gmra.mxu0 %v813_v48 }
  0x82   :  { %553 = vmatmul.bf16.gmra.mxu1 %v817_v49 }
  0x83   :  { %602 = vmatmul.bf16.gmra.mxu2 %v821_v50 }
  0x84   :  { %651 = vmatmul.bf16.gmra.mxu3 %v825_v51 }
  0x91   :  { %509 = vmatmul.bf16.gmra.mxu0 %v829_v60 }
  0x92   :  { %558 = vmatmul.bf16.gmra.mxu1 %v833_v61 }
  0x93   :  { %607 = vmatmul.bf16.gmra.mxu2 %v837_v62 }
  0x94   :  { %656 = vmatmul.bf16.gmra.mxu3 %v841_v63 }
  0x9e   :  { %v475_v1 = vpop.f32.mrf.mxu0 }
  0x9f   :  { %v524_v2 = vpop.f32.mrf.mxu1  ;;  %v476_v3 = vadd.f32 %v1393_v0, %v475_v1 }
  0xa1   :  { %v525_v6 = vadd.f32 %v524_v2, %v476_v3 }
  0xa6   :  { %v573_v4 = vpop.f32.mrf.mxu2  ;;  %v477_v7 = vpop.f32.mrf.mxu0 }
  0xa7   :  { %v622_v5 = vpop.f32.mrf.mxu3  ;;  %v526_v8 = vpop.f32.mrf.mxu1  ;;  %v478_v9 = vadd.f32 %v1393_v0, %v477_v7  ;;  %v574_v10 = vadd.f32 %v573_v4, %v525_v6 }
  0xa9   :  { %v527_v11 = vadd.f32 %v526_v8, %v478_v9  ;;  %v623_v14 = vadd.f32 %v622_v5, %v574_v10 }
  0xab   :  { %v662_v19 = vmax.f32 %v623_v14, 0.0 }
  0xae   :  { %v575_v12 = vpop.f32.mrf.mxu2  ;;  %v480_v16 = vpop.f32.mrf.mxu0 }
  0xaf   :  { %v624_v13 = vpop.f32.mrf.mxu3  ;;  %v576_v15 = vadd.f32 %v575_v12, %v527_v11  ;;  %v529_v17 = vpop.f32.mrf.mxu1  ;;  %v481_v21 = vadd.f32 %v1393_v0, %v480_v16 }
  0xb1   :  { %v625_v18 = vadd.f32 %v624_v13, %v576_v15  ;;  %v530_v25 = vadd.f32 %v529_v17, %v481_v21 }
  0xb3   :  { %v663_v20 = vmax.f32 %v625_v18, 0.0 }
  0xb5   :  { %v1037_v22 = vpack.c.bf16 %v663_v20, %v662_v19 }
  0xb6   :  { %v578_v23 = vpop.f32.mrf.mxu2  ;;  %v482_v26 = vpop.f32.mrf.mxu0 }
  0xb7   :  { %v627_v24 = vpop.f32.mrf.mxu3  ;;  %1038 = vst [vmem:[%s1438_s3] sm:$0xff] %v1037_v22   ;;  %v531_v27 = vpop.f32.mrf.mxu1  ;;  %v483_v28 = vadd.f32 %v1393_v0, %v482_v26  ;;  %v579_v29 = vadd.f32 %v578_v23, %v530_v25 }
  0xb9   :  { %v532_v30 = vadd.f32 %v531_v27, %v483_v28  ;;  %v628_v33 = vadd.f32 %v627_v24, %v579_v29 }
  0xbb   :  { %v664_v38 = vmax.f32 %v628_v33, 0.0 }
  0xbe   :  { %v580_v31 = vpop.f32.mrf.mxu2  ;;  %v485_v35 = vpop.f32.mrf.mxu0 }
  0xbf   :  { %v629_v32 = vpop.f32.mrf.mxu3  ;;  %v581_v34 = vadd.f32 %v580_v31, %v532_v30  ;;  %v534_v36 = vpop.f32.mrf.mxu1  ;;  %v486_v40 = vadd.f32 %v1393_v0, %v485_v35 }
  0xc1   :  { %v630_v37 = vadd.f32 %v629_v32, %v581_v34  ;;  %v535_v44 = vadd.f32 %v534_v36, %v486_v40 }
  0xc3   :  { %v665_v39 = vmax.f32 %v630_v37, 0.0 }
  0xc5   :  { %v1042_v41 = vpack.c.bf16 %v665_v39, %v664_v38 }
  0xc6   :  { %v583_v42 = vpop.f32.mrf.mxu2  ;;  %v487_v45 = vpop.f32.mrf.mxu0 }
  0xc7   :  { %v632_v43 = vpop.f32.mrf.mxu3  ;;  %1074 = vst [vmem:[%s1438_s3 + $0x8] sm:$0xff] %v1042_v41   ;;  %v536_v46 = vpop.f32.mrf.mxu1  ;;  %v488_v47 = vadd.f32 %v1393_v0, %v487_v45  ;;  %v584_v48 = vadd.f32 %v583_v42, %v535_v44 }
  0xc9   :  { %v537_v49 = vadd.f32 %v536_v46, %v488_v47  ;;  %v633_v52 = vadd.f32 %v632_v43, %v584_v48 }
  0xcb   :  { %v666_v57 = vmax.f32 %v633_v52, 0.0 }
  0xce   :  { %v585_v50 = vpop.f32.mrf.mxu2  ;;  %v490_v54 = vpop.f32.mrf.mxu0 }
  0xcf   :  { %v634_v51 = vpop.f32.mrf.mxu3  ;;  %v586_v53 = vadd.f32 %v585_v50, %v537_v49  ;;  %v539_v55 = vpop.f32.mrf.mxu1  ;;  %v491_v59 = vadd.f32 %v1393_v0, %v490_v54 }
  0xd1   :  { %v635_v56 = vadd.f32 %v634_v51, %v586_v53  ;;  %v540_v63 = vadd.f32 %v539_v55, %v491_v59 }
  0xd3   :  { %v667_v58 = vmax.f32 %v635_v56, 0.0 }
  0xd5   :  { %v1047_v60 = vpack.c.bf16 %v667_v58, %v666_v57 }
  0xd6   :  { %v588_v61 = vpop.f32.mrf.mxu2  ;;  %v492_v1 = vpop.f32.mrf.mxu0 }
  0xd7   :  { %v637_v62 = vpop.f32.mrf.mxu3  ;;  %1075 = vst [vmem:[%s1438_s3 + $0x10] sm:$0xff] %v1047_v60   ;;  %v541_v2 = vpop.f32.mrf.mxu1  ;;  %v493_v3 = vadd.f32 %v1393_v0, %v492_v1  ;;  %v589_v4 = vadd.f32 %v588_v61, %v540_v63 }
  0xd9   :  { %v542_v5 = vadd.f32 %v541_v2, %v493_v3  ;;  %v638_v8 = vadd.f32 %v637_v62, %v589_v4 }
  0xdb   :  { %v668_v13 = vmax.f32 %v638_v8, 0.0 }
  0xde   :  { %v590_v6 = vpop.f32.mrf.mxu2  ;;  %v495_v10 = vpop.f32.mrf.mxu0 }
  0xdf   :  { %v639_v7 = vpop.f32.mrf.mxu3  ;;  %v591_v9 = vadd.f32 %v590_v6, %v542_v5  ;;  %v544_v11 = vpop.f32.mrf.mxu1  ;;  %v496_v15 = vadd.f32 %v1393_v0, %v495_v10 }
  0xe1   :  { %v640_v12 = vadd.f32 %v639_v7, %v591_v9  ;;  %v545_v19 = vadd.f32 %v544_v11, %v496_v15 }
  0xe3   :  { %v669_v14 = vmax.f32 %v640_v12, 0.0 }
  0xe5   :  { %v1052_v16 = vpack.c.bf16 %v669_v14, %v668_v13 }
  0xe6   :  { %v593_v17 = vpop.f32.mrf.mxu2  ;;  %v497_v20 = vpop.f32.mrf.mxu0 }
  0xe7   :  { %v642_v18 = vpop.f32.mrf.mxu3  ;;  %1076 = vst [vmem:[%s1438_s3 + $0x18] sm:$0xff] %v1052_v16   ;;  %v546_v21 = vpop.f32.mrf.mxu1  ;;  %v498_v22 = vadd.f32 %v1393_v0, %v497_v20  ;;  %v594_v23 = vadd.f32 %v593_v17, %v545_v19 }
  0xe9   :  { %v547_v24 = vadd.f32 %v546_v21, %v498_v22  ;;  %v643_v27 = vadd.f32 %v642_v18, %v594_v23 }
  0xeb   :  { %v670_v32 = vmax.f32 %v643_v27, 0.0 }
  0xee   :  { %v595_v25 = vpop.f32.mrf.mxu2  ;;  %v500_v29 = vpop.f32.mrf.mxu0 }
  0xef   :  { %v644_v26 = vpop.f32.mrf.mxu3  ;;  %v596_v28 = vadd.f32 %v595_v25, %v547_v24  ;;  %v549_v30 = vpop.f32.mrf.mxu1  ;;  %v501_v34 = vadd.f32 %v1393_v0, %v500_v29 }
  0xf1   :  { %v645_v31 = vadd.f32 %v644_v26, %v596_v28  ;;  %v550_v38 = vadd.f32 %v549_v30, %v501_v34 }
  0xf3   :  { %v671_v33 = vmax.f32 %v645_v31, 0.0 }
  0xf5   :  { %v1057_v35 = vpack.c.bf16 %v671_v33, %v670_v32 }
  0xf6   :  { %v598_v36 = vpop.f32.mrf.mxu2  ;;  %v502_v39 = vpop.f32.mrf.mxu0 }
  0xf7   :  { %v647_v37 = vpop.f32.mrf.mxu3  ;;  %1077 = vst [vmem:[%s1438_s3 + $0x20] sm:$0xff] %v1057_v35   ;;  %v551_v40 = vpop.f32.mrf.mxu1  ;;  %v503_v41 = vadd.f32 %v1393_v0, %v502_v39  ;;  %v599_v42 = vadd.f32 %v598_v36, %v550_v38 }
  0xf9   :  { %v552_v43 = vadd.f32 %v551_v40, %v503_v41  ;;  %v648_v46 = vadd.f32 %v647_v37, %v599_v42 }
  0xfb   :  { %v672_v51 = vmax.f32 %v648_v46, 0.0 }
  0xfe   :  { %v600_v44 = vpop.f32.mrf.mxu2  ;;  %v505_v48 = vpop.f32.mrf.mxu0 }
  0xff   :  { %v649_v45 = vpop.f32.mrf.mxu3  ;;  %v601_v47 = vadd.f32 %v600_v44, %v552_v43  ;;  %v554_v49 = vpop.f32.mrf.mxu1  ;;  %v506_v53 = vadd.f32 %v1393_v0, %v505_v48 }
 0x101   :  { %v650_v50 = vadd.f32 %v649_v45, %v601_v47  ;;  %v555_v57 = vadd.f32 %v554_v49, %v506_v53 }
 0x103   :  { %v673_v52 = vmax.f32 %v650_v50, 0.0 }
 0x105   :  { %v1062_v54 = vpack.c.bf16 %v673_v52, %v672_v51 }
 0x106   :  { %v603_v55 = vpop.f32.mrf.mxu2  ;;  %v507_v58 = vpop.f32.mrf.mxu0 }
 0x107   :  { %v652_v56 = vpop.f32.mrf.mxu3  ;;  %1078 = vst [vmem:[%s1438_s3 + $0x28] sm:$0xff] %v1062_v54   ;;  %v556_v59 = vpop.f32.mrf.mxu1  ;;  %v508_v60 = vadd.f32 %v1393_v0, %v507_v58  ;;  %v604_v61 = vadd.f32 %v603_v55, %v555_v57 }
 0x109   :  { %v557_v62 = vadd.f32 %v556_v59, %v508_v60  ;;  %v653_v2 = vadd.f32 %v652_v56, %v604_v61 }
 0x10b   :  { %v674_v7 = vmax.f32 %v653_v2, 0.0 }
 0x10e   :  { %v605_v63 = vpop.f32.mrf.mxu2  ;;  %v510_v4 = vpop.f32.mrf.mxu0 }
 0x10f   :  { %v654_v1 = vpop.f32.mrf.mxu3  ;;  %v606_v3 = vadd.f32 %v605_v63, %v557_v62  ;;  %v559_v6 = vpop.f32.mrf.mxu1  ;;  %v511_v9 = vadd.f32 %v1393_v0, %v510_v4 }
 0x111   :  { %v655_v5 = vadd.f32 %v654_v1, %v606_v3  ;;  %v560_v13 = vadd.f32 %v559_v6, %v511_v9 }
 0x113   :  { %v675_v8 = vmax.f32 %v655_v5, 0.0 }
 0x115   :  { %v1067_v10 = vpack.c.bf16 %v675_v8, %v674_v7 }
 0x116   :  { %v608_v11 = vpop.f32.mrf.mxu2  ;;  %v512_v14 = vpop.f32.mrf.mxu0 }
 0x117   :  { %v657_v12 = vpop.f32.mrf.mxu3  ;;  %1079 = vst [vmem:[%s1438_s3 + $0x30] sm:$0xff] %v1067_v10   ;;  %v513_v15 = vadd.f32 %v1393_v0, %v512_v14  ;;  %v609_v16 = vadd.f32 %v608_v11, %v560_v13  ;;  %v561_v17 = vpop.f32.mrf.mxu1 }
 0x119   :  { %v562_v18 = vadd.f32 %v561_v17, %v513_v15  ;;  %v658_v20 = vadd.f32 %v657_v12, %v609_v16 }
 0x11b   :  { %v676_v24 = vmax.f32 %v658_v20, 0.0 }
 0x11e   :  { %v610_v19 = vpop.f32.mrf.mxu2 }
 0x11f   :  { %v611_v21 = vadd.f32 %v610_v19, %v562_v18  ;;  %v659_v22 = vpop.f32.mrf.mxu3 }
 0x121   :  { %v660_v23 = vadd.f32 %v659_v22, %v611_v21 }
 0x123   :  { %v677_v25 = vmax.f32 %v660_v23, 0.0 }
 0x125   :  { %v1072_v26 = vpack.c.bf16 %v677_v25, %v676_v24 }
 0x127   :  { %1080 = vst [vmem:[%s1438_s3 + $0x38] sm:$0xff] %v1072_v26  }

// kernel: _forward_impl.12
= control target key start
LH: loop header
LB: loop body
LE: loop exit
PB: predicated region body
PF: predicated region fallthrough
CT: control target
= control target key end

     0   :  { %s2289_s1 = inlined_call_operand.vmem [shape: bf16[256,128], index: 1, kind: input, shape index: {}]   ;;  %s2290_s2 = inlined_call_operand.vmem [shape: f32[1,128], index: 2, kind: input, shape index: {}]   ;;  %s2291_s0 = inlined_call_operand.vmem [shape: bf16[512,256], index: 0, kind: input, shape index: {}]   ;;  %s2292_s3 = inlined_call_operand.vmem [shape: bf16[512,128], index: 3, kind: output, shape index: {}]  }
   0x1   :  { %v1455_v0 = vld [vmem:[%s2289_s1 + $0x38] sm:$0xff]  ;;  %v1454_v2 = vld [vmem:[%s2289_s1 + $0x30] sm:$0xff]  ;;  %v1453_v4 = vld [vmem:[%s2289_s1 + $0x28] sm:$0xff] }
   0x2   :  { %v1463_v1 = vld [vmem:[%s2289_s1 + $0x78] sm:$0xff]  ;;  %530 = vmatpush.bf16.msra.mxu0 %v1455_v0  ;;  %1655 = vmatpush.bf16.msra.mxu2 %v1455_v0  ;;  %v1462_v3 = vld [vmem:[%s2289_s1 + $0x70] sm:$0xff]  ;;  %v1461_v5 = vld [vmem:[%s2289_s1 + $0x68] sm:$0xff] }
   0x3   :  { %699 = vmatpush.bf16.msra.mxu1 %v1463_v1  ;;  %1663 = vmatpush.bf16.msra.mxu3 %v1463_v1  ;;  %v1452_v6 = vld [vmem:[%s2289_s1 + $0x20] sm:$0xff]  ;;  %v1451_v8 = vld [vmem:[%s2289_s1 + $0x18] sm:$0xff]  ;;  %v1450_v10 = vld [vmem:[%s2289_s1 + $0x10] sm:$0xff] }
   0x4   :  { %v1460_v7 = vld [vmem:[%s2289_s1 + $0x60] sm:$0xff]  ;;  %v1459_v9 = vld [vmem:[%s2289_s1 + $0x58] sm:$0xff]  ;;  %v1458_v11 = vld [vmem:[%s2289_s1 + $0x50] sm:$0xff] }
   0x5   :  { %v1449_v12 = vld [vmem:[%s2289_s1 + $0x8] sm:$0xff]  ;;  %v1448_v14 = vld [vmem:[%s2289_s1] sm:$0xff]  ;;  %v1074_v28 = vld [vmem:[%s2291_s0 + $0x10] sm:$0xf] }
   0x6   :  { %531 = vmatpush.bf16.msra.mxu0 %v1454_v2  ;;  %1656 = vmatpush.bf16.msra.mxu2 %v1454_v2  ;;  %v1457_v13 = vld [vmem:[%s2289_s1 + $0x48] sm:$0xff]  ;;  %v1456_v15 = vld [vmem:[%s2289_s1 + $0x40] sm:$0xff]  ;;  %v1387_v29 = vld [vmem:[%s2291_s0 + $0x14] sm:$0xf0] }
   0x7   :  { %700 = vmatpush.bf16.msra.mxu1 %v1462_v3  ;;  %1664 = vmatpush.bf16.msra.mxu3 %v1462_v3  ;;  %v1066_v16 = vld [vmem:[%s2291_s0] sm:$0xf]  ;;  %v1385_v17 = vld [vmem:[%s2291_s0 + $0x4] sm:$0xf0]  ;;  %v1384_v20 = vld [vmem:[%s2291_s0 + $0x4] sm:$0xf]  ;;  %v1075_v36 = vor.u32 %v1387_v29, %v1074_v28 }
   0x8   :  { %v1194_v18 = vld [vmem:[%s2291_s0 + $0x100] sm:$0xf]  ;;  %v1417_v19 = vld [vmem:[%s2291_s0 + $0x104] sm:$0xf0]  ;;  %v1068_v21 = vld [vmem:[%s2291_s0 + $0x8] sm:$0xf0]  ;;  %v1067_v24 = vor.u32 %v1385_v17, %v1066_v16 }
   0x9   :  { %v1416_v22 = vld [vmem:[%s2291_s0 + $0x104] sm:$0xf]  ;;  %v1196_v23 = vld [vmem:[%s2291_s0 + $0x108] sm:$0xf0]  ;;  %v1195_v25 = vor.u32 %v1417_v19, %v1194_v18  ;;  %v1071_v26 = vor.u32 %v1384_v20, %v1068_v21  ;;  %v1202_v30 = vld [vmem:[%s2291_s0 + $0x110] sm:$0xf] }
   0xa   :  { %532 = vmatpush.bf16.msra.mxu0 %v1453_v4  ;;  %1657 = vmatpush.bf16.msra.mxu2 %v1453_v4  ;;  %v1199_v27 = vor.u32 %v1416_v22, %v1196_v23  ;;  %v1419_v31 = vld [vmem:[%s2291_s0 + $0x114] sm:$0xf0]  ;;  %v1386_v32 = vld [vmem:[%s2291_s0 + $0x14] sm:$0xf]  ;;  %v1076_v33 = vld [vmem:[%s2291_s0 + $0x18] sm:$0xf0] }
   0xb   :  { %701 = vmatpush.bf16.msra.mxu1 %v1461_v5  ;;  %1665 = vmatpush.bf16.msra.mxu3 %v1461_v5  ;;  %v1418_v34 = vld [vmem:[%s2291_s0 + $0x114] sm:$0xf]  ;;  %v1204_v35 = vld [vmem:[%s2291_s0 + $0x118] sm:$0xf0]  ;;  %v1203_v37 = vor.u32 %v1419_v31, %v1202_v30  ;;  %v1079_v38 = vor.u32 %v1386_v32, %v1076_v33  ;;  %v1082_v40 = vld [vmem:[%s2291_s0 + $0x20] sm:$0xf] }
   0xc   :  { %v1207_v39 = vor.u32 %v1418_v34, %v1204_v35  ;;  %v1389_v41 = vld [vmem:[%s2291_s0 + $0x24] sm:$0xf0]  ;;  %v1210_v42 = vld [vmem:[%s2291_s0 + $0x120] sm:$0xf]  ;;  %v1388_v44 = vld [vmem:[%s2291_s0 + $0x24] sm:$0xf] }
   0xd   :  { %v1421_v43 = vld [vmem:[%s2291_s0 + $0x124] sm:$0xf0]  ;;  %v1084_v45 = vld [vmem:[%s2291_s0 + $0x28] sm:$0xf0]  ;;  %v1420_v46 = vld [vmem:[%s2291_s0 + $0x124] sm:$0xf]  ;;  %v1083_v48 = vor.u32 %v1389_v41, %v1082_v40 }
   0xe   :  { %533 = vmatpush.bf16.msra.mxu0 %v1452_v6  ;;  %1658 = vmatpush.bf16.msra.mxu2 %v1452_v6  ;;  %v1212_v47 = vld [vmem:[%s2291_s0 + $0x128] sm:$0xf0]  ;;  %v1211_v49 = vor.u32 %v1421_v43, %v1210_v42  ;;  %v1087_v50 = vor.u32 %v1388_v44, %v1084_v45  ;;  %v1090_v52 = vld [vmem:[%s2291_s0 + $0x30] sm:$0xf]  ;;  %v1391_v53 = vld [vmem:[%s2291_s0 + $0x34] sm:$0xf0] }
   0xf   :  { %702 = vmatpush.bf16.msra.mxu1 %v1460_v7  ;;  %1666 = vmatpush.bf16.msra.mxu3 %v1460_v7  ;;  %v1215_v51 = vor.u32 %v1420_v46, %v1212_v47  ;;  %v1218_v54 = vld [vmem:[%s2291_s0 + $0x130] sm:$0xf]  ;;  %v1423_v55 = vld [vmem:[%s2291_s0 + $0x134] sm:$0xf0]  ;;  %v1390_v56 = vld [vmem:[%s2291_s0 + $0x34] sm:$0xf]  ;;  %v1091_v60 = vor.u32 %v1391_v53, %v1090_v52 }
  0x10   :  { %v1092_v57 = vld [vmem:[%s2291_s0 + $0x38] sm:$0xf0]  ;;  %v1422_v58 = vld [vmem:[%s2291_s0 + $0x134] sm:$0xf]  ;;  %v1219_v61 = vor.u32 %v1423_v55, %v1218_v54  ;;  %v1098_v0 = vld [vmem:[%s2291_s0 + $0x40] sm:$0xf] }
  0x11   :  { %v1220_v59 = vld [vmem:[%s2291_s0 + $0x138] sm:$0xf0]  ;;  %v1095_v62 = vor.u32 %v1390_v56, %v1092_v57  ;;  %v1393_v1 = vld [vmem:[%s2291_s0 + $0x44] sm:$0xf0]  ;;  %v1226_v2 = vld [vmem:[%s2291_s0 + $0x140] sm:$0xf] }
  0x12   :  { %534 = vmatpush.bf16.msra.mxu0 %v1451_v8  ;;  %1659 = vmatpush.bf16.msra.mxu2 %v1451_v8  ;;  %v1223_v63 = vor.u32 %v1422_v58, %v1220_v59  ;;  %v1425_v3 = vld [vmem:[%s2291_s0 + $0x144] sm:$0xf0]  ;;  %v1392_v4 = vld [vmem:[%s2291_s0 + $0x44] sm:$0xf]  ;;  %v1100_v5 = vld [vmem:[%s2291_s0 + $0x48] sm:$0xf0]  ;;  %v1099_v8 = vor.u32 %v1393_v1, %v1098_v0 }
  0x13   :  { %703 = vmatpush.bf16.msra.mxu1 %v1459_v9  ;;  %1667 = vmatpush.bf16.msra.mxu3 %v1459_v9  ;;  %v1424_v6 = vld [vmem:[%s2291_s0 + $0x144] sm:$0xf]  ;;  %v1228_v7 = vld [vmem:[%s2291_s0 + $0x148] sm:$0xf0]  ;;  %v1227_v9 = vor.u32 %v1425_v3, %v1226_v2  ;;  %v1394_v16 = vld [vmem:[%s2291_s0 + $0x54] sm:$0xf] }
  0x14   :  { %v1108_v17 = vld [vmem:[%s2291_s0 + $0x58] sm:$0xf0]  ;;  %v1426_v18 = vld [vmem:[%s2291_s0 + $0x154] sm:$0xf]  ;;  %v1396_v28 = vld [vmem:[%s2291_s0 + $0x64] sm:$0xf] }
  0x15   :  { %v1236_v19 = vld [vmem:[%s2291_s0 + $0x158] sm:$0xf0]  ;;  %v1111_v22 = vor.u32 %v1394_v16, %v1108_v17  ;;  %v1116_v29 = vld [vmem:[%s2291_s0 + $0x68] sm:$0xf0]  ;;  %v1428_v30 = vld [vmem:[%s2291_s0 + $0x164] sm:$0xf] }
  0x16   :  { %535 = vmatpush.bf16.msra.mxu0 %v1450_v10  ;;  %1660 = vmatpush.bf16.msra.mxu2 %v1450_v10  ;;  %v1103_v10 = vor.u32 %v1392_v4, %v1100_v5  ;;  %v1239_v23 = vor.u32 %v1426_v18, %v1236_v19  ;;  %v1244_v31 = vld [vmem:[%s2291_s0 + $0x168] sm:$0xf0]  ;;  %v1119_v34 = vor.u32 %v1396_v28, %v1116_v29  ;;  %v1398_v40 = vld [vmem:[%s2291_s0 + $0x74] sm:$0xf]  ;;  %v1124_v41 = vld [vmem:[%s2291_s0 + $0x78] sm:$0xf0] }
  0x17   :  { %704 = vmatpush.bf16.msra.mxu1 %v1458_v11  ;;  %1668 = vmatpush.bf16.msra.mxu3 %v1458_v11  ;;  %v1231_v11 = vor.u32 %v1424_v6, %v1228_v7  ;;  %v1247_v35 = vor.u32 %v1428_v30, %v1244_v31  ;;  %v1430_v42 = vld [vmem:[%s2291_s0 + $0x174] sm:$0xf]  ;;  %v1252_v43 = vld [vmem:[%s2291_s0 + $0x178] sm:$0xf0]  ;;  %v1127_v46 = vor.u32 %v1398_v40, %v1124_v41  ;;  %v1400_v52 = vld [vmem:[%s2291_s0 + $0x84] sm:$0xf] }
  0x18   :  { %v1255_v47 = vor.u32 %v1430_v42, %v1252_v43  ;;  %v1132_v53 = vld [vmem:[%s2291_s0 + $0x88] sm:$0xf0]  ;;  %v1432_v54 = vld [vmem:[%s2291_s0 + $0x184] sm:$0xf]  ;;  %v1434_v16 = vld [vmem:[%s2291_s0 + $0x194] sm:$0xf] }
  0x19   :  { %v1260_v55 = vld [vmem:[%s2291_s0 + $0x188] sm:$0xf0]  ;;  %v1135_v59 = vor.u32 %v1400_v52, %v1132_v53  ;;  %v1268_v17 = vld [vmem:[%s2291_s0 + $0x198] sm:$0xf0]  ;;  %v1146_v42 = vld [vmem:[%s2291_s0 + $0xa0] sm:$0xf] }
  0x1a   :  { %536 = vmatpush.bf16.msra.mxu0 %v1449_v12  ;;  %1661 = vmatpush.bf16.msra.mxu2 %v1449_v12  ;;  %v1106_v12 = vld [vmem:[%s2291_s0 + $0x50] sm:$0xf]  ;;  %v1405_v43 = vld [vmem:[%s2291_s0 + $0xa4] sm:$0xf0] }
  0x1b   :  { %705 = vmatpush.bf16.msra.mxu1 %v1457_v13  ;;  %1669 = vmatpush.bf16.msra.mxu3 %v1457_v13  ;;  %v1395_v13 = vld [vmem:[%s2291_s0 + $0x54] sm:$0xf0]  ;;  %v1147_v53 = vor.u32 %v1405_v43, %v1146_v42 }
  0x1c   :  { %v1107_v20 = vor.u32 %v1395_v13, %v1106_v12  ;;  %v1402_v12 = vld [vmem:[%s2291_s0 + $0x94] sm:$0xf]  ;;  %v1140_v13 = vld [vmem:[%s2291_s0 + $0x98] sm:$0xf0] }
  0x1e   :  { %537 = vmatpush.bf16.msra.mxu0 %v1448_v14  ;;  %1662 = vmatpush.bf16.msra.mxu2 %v1448_v14  ;;  %v1234_v14 = vld [vmem:[%s2291_s0 + $0x150] sm:$0xf] }
  0x1f   :  { %706 = vmatpush.bf16.msra.mxu1 %v1456_v15  ;;  %1670 = vmatpush.bf16.msra.mxu3 %v1456_v15  ;;  %v1427_v15 = vld [vmem:[%s2291_s0 + $0x154] sm:$0xf0] }
  0x20   :  { %v1235_v21 = vor.u32 %v1427_v15, %v1234_v14 }
  0x21   :  { %538 = vmatmul.bf16.vlgmr.msra.gmra.mxu0 %v1067_v24  ;;  %618 = vmatmul.bf16.vlgmr.msra.gmra.mxu2 %v1195_v25  ;;  %v1114_v24 = vld [vmem:[%s2291_s0 + $0x60] sm:$0xf]  ;;  %v1397_v25 = vld [vmem:[%s2291_s0 + $0x64] sm:$0xf0] }
  0x22   :  { %707 = vmatmul.bf16.vlgmr.msra.gmra.mxu1 %v1071_v26  ;;  %787 = vmatmul.bf16.vlgmr.msra.gmra.mxu3 %v1199_v27  ;;  %v1242_v26 = vld [vmem:[%s2291_s0 + $0x160] sm:$0xf]  ;;  %v1429_v27 = vld [vmem:[%s2291_s0 + $0x164] sm:$0xf0]  ;;  %v1115_v32 = vor.u32 %v1397_v25, %v1114_v24 }
  0x23   :  { %v1243_v33 = vor.u32 %v1429_v27, %v1242_v26  ;;  %v1143_v26 = vor.u32 %v1402_v12, %v1140_v13  ;;  %v1271_v27 = vor.u32 %v1434_v16, %v1268_v17  ;;  %v1154_v13 = vld [vmem:[%s2291_s0 + $0xb0] sm:$0xf]  ;;  %v1439_v16 = vld [vmem:[%s2291_s0 + $0x1b4] sm:$0xf0]  ;;  %v1406_v17 = vld [vmem:[%s2291_s0 + $0xb4] sm:$0xf] }
  0x31   :  { %543 = vmatmul.bf16.gmra.mxu0 %v1075_v36  ;;  %623 = vmatmul.bf16.gmra.mxu2 %v1203_v37  ;;  %v1122_v36 = vld [vmem:[%s2291_s0 + $0x70] sm:$0xf]  ;;  %v1399_v37 = vld [vmem:[%s2291_s0 + $0x74] sm:$0xf0] }
  0x32   :  { %712 = vmatmul.bf16.gmra.mxu1 %v1079_v38  ;;  %792 = vmatmul.bf16.gmra.mxu3 %v1207_v39  ;;  %v1250_v38 = vld [vmem:[%s2291_s0 + $0x170] sm:$0xf]  ;;  %v1431_v39 = vld [vmem:[%s2291_s0 + $0x174] sm:$0xf0]  ;;  %v1123_v44 = vor.u32 %v1399_v37, %v1122_v36 }
  0x33   :  { %v1251_v45 = vor.u32 %v1431_v39, %v1250_v38 }
  0x41   :  { %548 = vmatmul.bf16.gmra.mxu0 %v1083_v48  ;;  %628 = vmatmul.bf16.gmra.mxu2 %v1211_v49  ;;  %v1130_v48 = vld [vmem:[%s2291_s0 + $0x80] sm:$0xf]  ;;  %v1401_v49 = vld [vmem:[%s2291_s0 + $0x84] sm:$0xf0] }
  0x42   :  { %717 = vmatmul.bf16.gmra.mxu1 %v1087_v50  ;;  %797 = vmatmul.bf16.gmra.mxu3 %v1215_v51  ;;  %v1258_v50 = vld [vmem:[%s2291_s0 + $0x180] sm:$0xf]  ;;  %v1433_v51 = vld [vmem:[%s2291_s0 + $0x184] sm:$0xf0]  ;;  %v1131_v56 = vor.u32 %v1401_v49, %v1130_v48 }
  0x43   :  { %v1259_v57 = vor.u32 %v1433_v51, %v1258_v50  ;;  %v1436_v50 = vld [vmem:[%s2291_s0 + $0x1a4] sm:$0xf]  ;;  %v1276_v51 = vld [vmem:[%s2291_s0 + $0x1a8] sm:$0xf0] }
  0x51   :  { %553 = vmatmul.bf16.gmra.mxu0 %v1091_v60  ;;  %633 = vmatmul.bf16.gmra.mxu2 %v1219_v61  ;;  %v1263_v60 = vor.u32 %v1432_v54, %v1260_v55  ;;  %v1959_v61 = vld [vmem:[%s2290_s2] ss:$0 sm:$0xff] }
  0x52   :  { %722 = vmatmul.bf16.gmra.mxu1 %v1095_v62  ;;  %802 = vmatmul.bf16.gmra.mxu3 %v1223_v63 }
  0x61   :  { %558 = vmatmul.bf16.gmra.mxu0 %v1099_v8  ;;  %638 = vmatmul.bf16.gmra.mxu2 %v1227_v9  ;;  %v1138_v8 = vld [vmem:[%s2291_s0 + $0x90] sm:$0xf]  ;;  %v1403_v9 = vld [vmem:[%s2291_s0 + $0x94] sm:$0xf0] }
  0x62   :  { %727 = vmatmul.bf16.gmra.mxu1 %v1103_v10  ;;  %807 = vmatmul.bf16.gmra.mxu3 %v1231_v11  ;;  %v1266_v10 = vld [vmem:[%s2291_s0 + $0x190] sm:$0xf]  ;;  %v1435_v11 = vld [vmem:[%s2291_s0 + $0x194] sm:$0xf0]  ;;  %v1139_v19 = vor.u32 %v1403_v9, %v1138_v8 }
  0x63   :  { %v1267_v24 = vor.u32 %v1435_v11, %v1266_v10 }
  0x71   :  { %563 = vmatmul.bf16.gmra.mxu0 %v1107_v20  ;;  %643 = vmatmul.bf16.gmra.mxu2 %v1235_v21 }
  0x72   :  { %732 = vmatmul.bf16.gmra.mxu1 %v1111_v22  ;;  %812 = vmatmul.bf16.gmra.mxu3 %v1239_v23 }
  0x81   :  { %568 = vmatmul.bf16.gmra.mxu0 %v1115_v32  ;;  %648 = vmatmul.bf16.gmra.mxu2 %v1243_v33 }
  0x82   :  { %737 = vmatmul.bf16.gmra.mxu1 %v1119_v34  ;;  %817 = vmatmul.bf16.gmra.mxu3 %v1247_v35 }
  0x91   :  { %573 = vmatmul.bf16.gmra.mxu0 %v1123_v44  ;;  %653 = vmatmul.bf16.gmra.mxu2 %v1251_v45  ;;  %v1274_v44 = vld [vmem:[%s2291_s0 + $0x1a0] sm:$0xf]  ;;  %v1437_v45 = vld [vmem:[%s2291_s0 + $0x1a4] sm:$0xf0] }
  0x92   :  { %742 = vmatmul.bf16.gmra.mxu1 %v1127_v46  ;;  %822 = vmatmul.bf16.gmra.mxu3 %v1255_v47  ;;  %v1404_v46 = vld [vmem:[%s2291_s0 + $0xa4] sm:$0xf]  ;;  %v1148_v47 = vld [vmem:[%s2291_s0 + $0xa8] sm:$0xf0] }
  0x9e   :  { %v539_v58 = vpop.f32.mrf.mxu0 }
  0x9f   :  { %v708_v62 = vpop.f32.mrf.mxu1  ;;  %v540_v63 = vadd.f32 %v1959_v61, %v539_v58  ;;  %v1275_v58 = vor.u32 %v1437_v45, %v1274_v44 }
  0xa1   :  { %578 = vmatmul.bf16.gmra.mxu0 %v1131_v56  ;;  %658 = vmatmul.bf16.gmra.mxu2 %v1259_v57  ;;  %v709_v3 = vadd.f32 %v708_v62, %v540_v63  ;;  %v1279_v62 = vor.u32 %v1436_v50, %v1276_v51  ;;  %v1441_v50 = vld [vmem:[%s2291_s0 + $0x1c4] sm:$0xf0]  ;;  %v1408_v51 = vld [vmem:[%s2291_s0 + $0xc4] sm:$0xf] }
  0xa2   :  { %747 = vmatmul.bf16.gmra.mxu1 %v1135_v59  ;;  %827 = vmatmul.bf16.gmra.mxu3 %v1263_v60  ;;  %v1151_v60 = vor.u32 %v1404_v46, %v1148_v47  ;;  %v1162_v47 = vld [vmem:[%s2291_s0 + $0xc0] sm:$0xf] }
  0xa3   :  { %v868_v14 = vmax.f32 %v709_v3, 0.0 }
  0xa4   :  { %v619_v0 = vpop.f32.mrf.mxu2 }
  0xa5   :  { %v788_v1 = vpop.f32.mrf.mxu3  ;;  %v620_v6 = vadd.f32 %v1959_v61, %v619_v0 }
  0xa6   :  { %v541_v2 = vpop.f32.mrf.mxu0 }
  0xa7   :  { %v542_v4 = vadd.f32 %v1959_v61, %v541_v2  ;;  %v710_v5 = vpop.f32.mrf.mxu1  ;;  %v789_v20 = vadd.f32 %v788_v1, %v620_v6 }
  0xa9   :  { %v711_v7 = vadd.f32 %v710_v5, %v542_v4  ;;  %v900_v30 = vmax.f32 %v789_v20, 0.0 }
  0xab   :  { %v869_v15 = vmax.f32 %v711_v7, 0.0 }
  0xac   :  { %v621_v18 = vpop.f32.mrf.mxu2 }
  0xad   :  { %v1467_v21 = vpack.c.bf16 %v869_v15, %v868_v14  ;;  %v622_v22 = vadd.f32 %v1959_v61, %v621_v18  ;;  %v790_v23 = vpop.f32.mrf.mxu3  ;;  %v1407_v14 = vld [vmem:[%s2291_s0 + $0xb4] sm:$0xf0]  ;;  %v1282_v15 = vld [vmem:[%s2291_s0 + $0x1b0] sm:$0xf]  ;;  %v1156_v18 = vld [vmem:[%s2291_s0 + $0xb8] sm:$0xf0] }
  0xae   :  { %v544_v25 = vpop.f32.mrf.mxu0 }
  0xaf   :  { %1468 = vst [vmem:[%s2292_s3] sm:$0xff] %v1467_v21   ;;  %v791_v28 = vadd.f32 %v790_v23, %v622_v22  ;;  %v713_v29 = vpop.f32.mrf.mxu1  ;;  %v545_v33 = vadd.f32 %v1959_v61, %v544_v25  ;;  %v1438_v21 = vld [vmem:[%s2291_s0 + $0x1b4] sm:$0xf]  ;;  %v1284_v22 = vld [vmem:[%s2291_s0 + $0x1b8] sm:$0xf0] }
  0xb1   :  { %v901_v31 = vmax.f32 %v791_v28, 0.0  ;;  %583 = vmatmul.bf16.gmra.mxu0 %v1139_v19  ;;  %663 = vmatmul.bf16.gmra.mxu2 %v1267_v24  ;;  %v714_v37 = vadd.f32 %v713_v29, %v545_v33  ;;  %v1155_v24 = vor.u32 %v1407_v14, %v1154_v13  ;;  %v1283_v29 = vor.u32 %v1439_v16, %v1282_v15 }
  0xb2   :  { %752 = vmatmul.bf16.gmra.mxu1 %v1143_v26  ;;  %832 = vmatmul.bf16.gmra.mxu3 %v1271_v27 }
  0xb3   :  { %v1547_v32 = vpack.c.bf16 %v901_v31, %v900_v30  ;;  %v870_v48 = vmax.f32 %v714_v37, 0.0  ;;  %v1159_v31 = vor.u32 %v1406_v17, %v1156_v18  ;;  %v1170_v18 = vld [vmem:[%s2291_s0 + $0xd0] sm:$0xf] }
  0xb4   :  { %v624_v34 = vpop.f32.mrf.mxu2 }
  0xb5   :  { %1639 = vst [vmem:[%s2292_s3 + $0x80] sm:$0xff] %v1547_v32   ;;  %v793_v35 = vpop.f32.mrf.mxu3  ;;  %v625_v40 = vadd.f32 %v1959_v61, %v624_v34  ;;  %v1287_v32 = vor.u32 %v1438_v21, %v1284_v22  ;;  %v1443_v21 = vld [vmem:[%s2291_s0 + $0x1d4] sm:$0xf0]  ;;  %v1410_v22 = vld [vmem:[%s2291_s0 + $0xd4] sm:$0xf] }
  0xb6   :  { %v546_v36 = vpop.f32.mrf.mxu0 }
  0xb7   :  { %v547_v38 = vadd.f32 %v1959_v61, %v546_v36  ;;  %v715_v39 = vpop.f32.mrf.mxu1  ;;  %v794_v54 = vadd.f32 %v793_v35, %v625_v40 }
  0xb9   :  { %v716_v41 = vadd.f32 %v715_v39, %v547_v38  ;;  %v902_v1 = vmax.f32 %v794_v54, 0.0 }
  0xbb   :  { %v871_v49 = vmax.f32 %v716_v41, 0.0 }
  0xbc   :  { %v626_v52 = vpop.f32.mrf.mxu2 }
  0xbd   :  { %v1472_v55 = vpack.c.bf16 %v871_v49, %v870_v48  ;;  %v627_v56 = vadd.f32 %v1959_v61, %v626_v52  ;;  %v795_v57 = vpop.f32.mrf.mxu3  ;;  %v1409_v48 = vld [vmem:[%s2291_s0 + $0xc4] sm:$0xf0]  ;;  %v1290_v49 = vld [vmem:[%s2291_s0 + $0x1c0] sm:$0xf]  ;;  %v1164_v52 = vld [vmem:[%s2291_s0 + $0xc8] sm:$0xf0] }
  0xbe   :  { %v549_v59 = vpop.f32.mrf.mxu0 }
  0xbf   :  { %1624 = vst [vmem:[%s2292_s3 + $0x8] sm:$0xff] %v1472_v55   ;;  %v796_v63 = vadd.f32 %v795_v57, %v627_v56  ;;  %v718_v0 = vpop.f32.mrf.mxu1  ;;  %v550_v4 = vadd.f32 %v1959_v61, %v549_v59  ;;  %v1440_v55 = vld [vmem:[%s2291_s0 + $0x1c4] sm:$0xf]  ;;  %v1292_v56 = vld [vmem:[%s2291_s0 + $0x1c8] sm:$0xf0] }
  0xc1   :  { %v903_v2 = vmax.f32 %v796_v63, 0.0  ;;  %588 = vmatmul.bf16.gmra.mxu0 %v1147_v53  ;;  %668 = vmatmul.bf16.gmra.mxu2 %v1275_v58  ;;  %v719_v8 = vadd.f32 %v718_v0, %v550_v4  ;;  %v1163_v58 = vor.u32 %v1409_v48, %v1162_v47  ;;  %v1291_v0 = vor.u32 %v1441_v50, %v1290_v49 }
  0xc2   :  { %757 = vmatmul.bf16.gmra.mxu1 %v1151_v60  ;;  %837 = vmatmul.bf16.gmra.mxu3 %v1279_v62 }
  0xc3   :  { %v1552_v3 = vpack.c.bf16 %v903_v2, %v902_v1  ;;  %v872_v19 = vmax.f32 %v719_v8, 0.0  ;;  %v1167_v2 = vor.u32 %v1408_v51, %v1164_v52  ;;  %v1178_v52 = vld [vmem:[%s2291_s0 + $0xe0] sm:$0xf] }
  0xc4   :  { %v629_v5 = vpop.f32.mrf.mxu2 }
  0xc5   :  { %1640 = vst [vmem:[%s2292_s3 + $0x88] sm:$0xff] %v1552_v3   ;;  %v798_v6 = vpop.f32.mrf.mxu3  ;;  %v630_v11 = vadd.f32 %v1959_v61, %v629_v5  ;;  %v1295_v3 = vor.u32 %v1440_v55, %v1292_v56  ;;  %v1445_v55 = vld [vmem:[%s2291_s0 + $0x1e4] sm:$0xf0]  ;;  %v1412_v56 = vld [vmem:[%s2291_s0 + $0xe4] sm:$0xf] }
  0xc6   :  { %v551_v7 = vpop.f32.mrf.mxu0 }
  0xc7   :  { %v552_v9 = vadd.f32 %v1959_v61, %v551_v7  ;;  %v720_v10 = vpop.f32.mrf.mxu1  ;;  %v799_v25 = vadd.f32 %v798_v6, %v630_v11 }
  0xc9   :  { %v721_v12 = vadd.f32 %v720_v10, %v552_v9  ;;  %v904_v35 = vmax.f32 %v799_v25, 0.0 }
  0xcb   :  { %v873_v20 = vmax.f32 %v721_v12, 0.0 }
  0xcc   :  { %v631_v23 = vpop.f32.mrf.mxu2 }
  0xcd   :  { %v1477_v26 = vpack.c.bf16 %v873_v20, %v872_v19  ;;  %v632_v27 = vadd.f32 %v1959_v61, %v631_v23  ;;  %v800_v28 = vpop.f32.mrf.mxu3  ;;  %v1411_v19 = vld [vmem:[%s2291_s0 + $0xd4] sm:$0xf0]  ;;  %v1298_v20 = vld [vmem:[%s2291_s0 + $0x1d0] sm:$0xf]  ;;  %v1172_v23 = vld [vmem:[%s2291_s0 + $0xd8] sm:$0xf0] }
  0xce   :  { %v554_v30 = vpop.f32.mrf.mxu0 }
  0xcf   :  { %1625 = vst [vmem:[%s2292_s3 + $0x10] sm:$0xff] %v1477_v26   ;;  %v801_v33 = vadd.f32 %v800_v28, %v632_v27  ;;  %v723_v34 = vpop.f32.mrf.mxu1  ;;  %v555_v38 = vadd.f32 %v1959_v61, %v554_v30  ;;  %v1442_v26 = vld [vmem:[%s2291_s0 + $0x1d4] sm:$0xf]  ;;  %v1300_v27 = vld [vmem:[%s2291_s0 + $0x1d8] sm:$0xf0] }
  0xd1   :  { %v905_v36 = vmax.f32 %v801_v33, 0.0  ;;  %593 = vmatmul.bf16.gmra.mxu0 %v1155_v24  ;;  %673 = vmatmul.bf16.gmra.mxu2 %v1283_v29  ;;  %v724_v42 = vadd.f32 %v723_v34, %v555_v38  ;;  %v1171_v29 = vor.u32 %v1411_v19, %v1170_v18  ;;  %v1299_v34 = vor.u32 %v1443_v21, %v1298_v20 }
  0xd2   :  { %762 = vmatmul.bf16.gmra.mxu1 %v1159_v31  ;;  %842 = vmatmul.bf16.gmra.mxu3 %v1287_v32 }
  0xd3   :  { %v1557_v37 = vpack.c.bf16 %v905_v36, %v904_v35  ;;  %v874_v53 = vmax.f32 %v724_v42, 0.0  ;;  %v1175_v36 = vor.u32 %v1410_v22, %v1172_v23  ;;  %v1186_v23 = vld [vmem:[%s2291_s0 + $0xf0] sm:$0xf] }
  0xd4   :  { %v634_v39 = vpop.f32.mrf.mxu2 }
  0xd5   :  { %1641 = vst [vmem:[%s2292_s3 + $0x90] sm:$0xff] %v1557_v37   ;;  %v803_v40 = vpop.f32.mrf.mxu3  ;;  %v635_v45 = vadd.f32 %v1959_v61, %v634_v39  ;;  %v1303_v37 = vor.u32 %v1442_v26, %v1300_v27  ;;  %v1447_v26 = vld [vmem:[%s2291_s0 + $0x1f4] sm:$0xf0]  ;;  %v1414_v27 = vld [vmem:[%s2291_s0 + $0xf4] sm:$0xf] }
  0xd6   :  { %v556_v41 = vpop.f32.mrf.mxu0 }
  0xd7   :  { %v557_v43 = vadd.f32 %v1959_v61, %v556_v41  ;;  %v725_v44 = vpop.f32.mrf.mxu1  ;;  %v804_v59 = vadd.f32 %v803_v40, %v635_v45 }
  0xd9   :  { %v726_v46 = vadd.f32 %v725_v44, %v557_v43  ;;  %v906_v6 = vmax.f32 %v804_v59, 0.0 }
  0xdb   :  { %v875_v54 = vmax.f32 %v726_v46, 0.0 }
  0xdc   :  { %v636_v57 = vpop.f32.mrf.mxu2 }
  0xdd   :  { %v1482_v60 = vpack.c.bf16 %v875_v54, %v874_v53  ;;  %v637_v62 = vadd.f32 %v1959_v61, %v636_v57  ;;  %v805_v63 = vpop.f32.mrf.mxu3  ;;  %v1413_v53 = vld [vmem:[%s2291_s0 + $0xe4] sm:$0xf0]  ;;  %v1306_v54 = vld [vmem:[%s2291_s0 + $0x1e0] sm:$0xf]  ;;  %v1180_v57 = vld [vmem:[%s2291_s0 + $0xe8] sm:$0xf0] }
  0xde   :  { %v559_v1 = vpop.f32.mrf.mxu0 }
  0xdf   :  { %1626 = vst [vmem:[%s2292_s3 + $0x18] sm:$0xff] %v1482_v60   ;;  %v806_v4 = vadd.f32 %v805_v63, %v637_v62  ;;  %v728_v5 = vpop.f32.mrf.mxu1  ;;  %v560_v9 = vadd.f32 %v1959_v61, %v559_v1  ;;  %v1444_v60 = vld [vmem:[%s2291_s0 + $0x1e4] sm:$0xf]  ;;  %v1308_v62 = vld [vmem:[%s2291_s0 + $0x1e8] sm:$0xf0] }
  0xe1   :  { %v907_v7 = vmax.f32 %v806_v4, 0.0  ;;  %598 = vmatmul.bf16.gmra.mxu0 %v1163_v58  ;;  %678 = vmatmul.bf16.gmra.mxu2 %v1291_v0  ;;  %v729_v13 = vadd.f32 %v728_v5, %v560_v9  ;;  %v1179_v0 = vor.u32 %v1413_v53, %v1178_v52  ;;  %v1307_v5 = vor.u32 %v1445_v55, %v1306_v54 }
  0xe2   :  { %767 = vmatmul.bf16.gmra.mxu1 %v1167_v2  ;;  %847 = vmatmul.bf16.gmra.mxu3 %v1295_v3 }
  0xe3   :  { %v1562_v8 = vpack.c.bf16 %v907_v7, %v906_v6  ;;  %v876_v24 = vmax.f32 %v729_v13, 0.0  ;;  %v1183_v7 = vor.u32 %v1412_v56, %v1180_v57 }
  0xe4   :  { %v639_v10 = vpop.f32.mrf.mxu2 }
  0xe5   :  { %1642 = vst [vmem:[%s2292_s3 + $0x98] sm:$0xff] %v1562_v8   ;;  %v808_v11 = vpop.f32.mrf.mxu3  ;;  %v640_v16 = vadd.f32 %v1959_v61, %v639_v10  ;;  %v1311_v8 = vor.u32 %v1444_v60, %v1308_v62 }
  0xe6   :  { %v561_v12 = vpop.f32.mrf.mxu0 }
  0xe7   :  { %v562_v14 = vadd.f32 %v1959_v61, %v561_v12  ;;  %v730_v15 = vpop.f32.mrf.mxu1  ;;  %v809_v30 = vadd.f32 %v808_v11, %v640_v16 }
  0xe9   :  { %v731_v17 = vadd.f32 %v730_v15, %v562_v14  ;;  %v908_v40 = vmax.f32 %v809_v30, 0.0 }
  0xeb   :  { %v877_v25 = vmax.f32 %v731_v17, 0.0 }
  0xec   :  { %v641_v28 = vpop.f32.mrf.mxu2 }
  0xed   :  { %v1487_v31 = vpack.c.bf16 %v877_v25, %v876_v24  ;;  %v642_v32 = vadd.f32 %v1959_v61, %v641_v28  ;;  %v810_v33 = vpop.f32.mrf.mxu3  ;;  %v1415_v24 = vld [vmem:[%s2291_s0 + $0xf4] sm:$0xf0]  ;;  %v1314_v25 = vld [vmem:[%s2291_s0 + $0x1f0] sm:$0xf]  ;;  %v1188_v28 = vld [vmem:[%s2291_s0 + $0xf8] sm:$0xf0] }
  0xee   :  { %v564_v35 = vpop.f32.mrf.mxu0 }
  0xef   :  { %1627 = vst [vmem:[%s2292_s3 + $0x20] sm:$0xff] %v1487_v31   ;;  %v811_v38 = vadd.f32 %v810_v33, %v642_v32  ;;  %v733_v39 = vpop.f32.mrf.mxu1  ;;  %v565_v43 = vadd.f32 %v1959_v61, %v564_v35  ;;  %v1446_v31 = vld [vmem:[%s2291_s0 + $0x1f4] sm:$0xf]  ;;  %v1316_v32 = vld [vmem:[%s2291_s0 + $0x1f8] sm:$0xf0] }
  0xf1   :  { %v909_v41 = vmax.f32 %v811_v38, 0.0  ;;  %603 = vmatmul.bf16.gmra.mxu0 %v1171_v29  ;;  %683 = vmatmul.bf16.gmra.mxu2 %v1299_v34  ;;  %v734_v47 = vadd.f32 %v733_v39, %v565_v43  ;;  %v1187_v34 = vor.u32 %v1415_v24, %v1186_v23  ;;  %v1315_v39 = vor.u32 %v1447_v26, %v1314_v25 }
  0xf2   :  { %772 = vmatmul.bf16.gmra.mxu1 %v1175_v36  ;;  %852 = vmatmul.bf16.gmra.mxu3 %v1303_v37 }
  0xf3   :  { %v1567_v42 = vpack.c.bf16 %v909_v41, %v908_v40  ;;  %v878_v58 = vmax.f32 %v734_v47, 0.0  ;;  %v1191_v41 = vor.u32 %v1414_v27, %v1188_v28 }
  0xf4   :  { %v644_v44 = vpop.f32.mrf.mxu2 }
  0xf5   :  { %1643 = vst [vmem:[%s2292_s3 + $0xa0] sm:$0xff] %v1567_v42   ;;  %v813_v45 = vpop.f32.mrf.mxu3  ;;  %v645_v50 = vadd.f32 %v1959_v61, %v644_v44  ;;  %v1319_v42 = vor.u32 %v1446_v31, %v1316_v32 }
  0xf6   :  { %v566_v46 = vpop.f32.mrf.mxu0 }
  0xf7   :  { %v567_v48 = vadd.f32 %v1959_v61, %v566_v46  ;;  %v735_v49 = vpop.f32.mrf.mxu1  ;;  %v814_v1 = vadd.f32 %v813_v45, %v645_v50 }
  0xf9   :  { %v736_v51 = vadd.f32 %v735_v49, %v567_v48  ;;  %v910_v11 = vmax.f32 %v814_v1, 0.0 }
  0xfb   :  { %v879_v59 = vmax.f32 %v736_v51, 0.0 }
  0xfc   :  { %v646_v63 = vpop.f32.mrf.mxu2 }
  0xfd   :  { %v1492_v2 = vpack.c.bf16 %v879_v59, %v878_v58  ;;  %v647_v3 = vadd.f32 %v1959_v61, %v646_v63  ;;  %v815_v4 = vpop.f32.mrf.mxu3 }
  0xfe   :  { %v569_v6 = vpop.f32.mrf.mxu0 }
  0xff   :  { %1628 = vst [vmem:[%s2292_s3 + $0x28] sm:$0xff] %v1492_v2   ;;  %v816_v9 = vadd.f32 %v815_v4, %v647_v3  ;;  %v738_v10 = vpop.f32.mrf.mxu1  ;;  %v570_v14 = vadd.f32 %v1959_v61, %v569_v6 }
 0x101   :  { %v911_v12 = vmax.f32 %v816_v9, 0.0  ;;  %608 = vmatmul.bf16.gmra.mxu0 %v1179_v0  ;;  %688 = vmatmul.bf16.gmra.mxu2 %v1307_v5  ;;  %v739_v18 = vadd.f32 %v738_v10, %v570_v14 }
 0x102   :  { %777 = vmatmul.bf16.gmra.mxu1 %v1183_v7  ;;  %857 = vmatmul.bf16.gmra.mxu3 %v1311_v8 }
 0x103   :  { %v1572_v13 = vpack.c.bf16 %v911_v12, %v910_v11  ;;  %v880_v29 = vmax.f32 %v739_v18, 0.0 }
 0x104   :  { %v649_v15 = vpop.f32.mrf.mxu2 }
 0x105   :  { %1644 = vst [vmem:[%s2292_s3 + $0xa8] sm:$0xff] %v1572_v13   ;;  %v818_v16 = vpop.f32.mrf.mxu3  ;;  %v650_v21 = vadd.f32 %v1959_v61, %v649_v15 }
 0x106   :  { %v571_v17 = vpop.f32.mrf.mxu0 }
 0x107   :  { %v572_v19 = vadd.f32 %v1959_v61, %v571_v17  ;;  %v740_v20 = vpop.f32.mrf.mxu1  ;;  %v819_v35 = vadd.f32 %v818_v16, %v650_v21 }
 0x109   :  { %v741_v22 = vadd.f32 %v740_v20, %v572_v19  ;;  %v912_v45 = vmax.f32 %v819_v35, 0.0 }
 0x10b   :  { %v881_v30 = vmax.f32 %v741_v22, 0.0 }
 0x10c   :  { %v651_v33 = vpop.f32.mrf.mxu2 }
 0x10d   :  { %v1497_v36 = vpack.c.bf16 %v881_v30, %v880_v29  ;;  %v652_v37 = vadd.f32 %v1959_v61, %v651_v33  ;;  %v820_v38 = vpop.f32.mrf.mxu3 }
 0x10e   :  { %v574_v40 = vpop.f32.mrf.mxu0 }
 0x10f   :  { %1629 = vst [vmem:[%s2292_s3 + $0x30] sm:$0xff] %v1497_v36   ;;  %v821_v43 = vadd.f32 %v820_v38, %v652_v37  ;;  %v743_v44 = vpop.f32.mrf.mxu1  ;;  %v575_v48 = vadd.f32 %v1959_v61, %v574_v40 }
 0x111   :  { %v913_v46 = vmax.f32 %v821_v43, 0.0  ;;  %613 = vmatmul.bf16.gmra.mxu0 %v1187_v34  ;;  %693 = vmatmul.bf16.gmra.mxu2 %v1315_v39  ;;  %v744_v52 = vadd.f32 %v743_v44, %v575_v48 }
 0x112   :  { %782 = vmatmul.bf16.gmra.mxu1 %v1191_v41  ;;  %862 = vmatmul.bf16.gmra.mxu3 %v1319_v42 }
 0x113   :  { %v1577_v47 = vpack.c.bf16 %v913_v46, %v912_v45  ;;  %v882_v57 = vmax.f32 %v744_v52, 0.0 }
 0x114   :  { %v654_v49 = vpop.f32.mrf.mxu2 }
 0x115   :  { %1645 = vst [vmem:[%s2292_s3 + $0xb0] sm:$0xff] %v1577_v47   ;;  %v823_v50 = vpop.f32.mrf.mxu3  ;;  %v655_v55 = vadd.f32 %v1959_v61, %v654_v49 }
 0x116   :  { %v576_v51 = vpop.f32.mrf.mxu0 }
 0x117   :  { %v577_v53 = vadd.f32 %v1959_v61, %v576_v51  ;;  %v745_v54 = vpop.f32.mrf.mxu1  ;;  %v824_v60 = vadd.f32 %v823_v50, %v655_v55 }
 0x119   :  { %v746_v56 = vadd.f32 %v745_v54, %v577_v53  ;;  %v914_v4 = vmax.f32 %v824_v60, 0.0 }
 0x11b   :  { %v883_v58 = vmax.f32 %v746_v56, 0.0 }
 0x11c   :  { %v656_v59 = vpop.f32.mrf.mxu2 }
 0x11d   :  { %v1502_v62 = vpack.c.bf16 %v883_v58, %v882_v57  ;;  %v657_v63 = vadd.f32 %v1959_v61, %v656_v59  ;;  %v825_v0 = vpop.f32.mrf.mxu3 }
 0x11e   :  { %v579_v1 = vpop.f32.mrf.mxu0 }
 0x11f   :  { %1630 = vst [vmem:[%s2292_s3 + $0x38] sm:$0xff] %v1502_v62   ;;  %v826_v2 = vadd.f32 %v825_v0, %v657_v63  ;;  %v748_v3 = vpop.f32.mrf.mxu1  ;;  %v580_v7 = vadd.f32 %v1959_v61, %v579_v1 }
 0x121   :  { %v915_v5 = vmax.f32 %v826_v2, 0.0  ;;  %v749_v11 = vadd.f32 %v748_v3, %v580_v7 }
 0x123   :  { %v1582_v6 = vpack.c.bf16 %v915_v5, %v914_v4  ;;  %v884_v16 = vmax.f32 %v749_v11, 0.0 }
 0x124   :  { %v659_v8 = vpop.f32.mrf.mxu2 }
 0x125   :  { %1646 = vst [vmem:[%s2292_s3 + $0xb8] sm:$0xff] %v1582_v6   ;;  %v828_v9 = vpop.f32.mrf.mxu3  ;;  %v660_v14 = vadd.f32 %v1959_v61, %v659_v8 }
 0x126   :  { %v581_v10 = vpop.f32.mrf.mxu0 }
 0x127   :  { %v582_v12 = vadd.f32 %v1959_v61, %v581_v10  ;;  %v750_v13 = vpop.f32.mrf.mxu1  ;;  %v829_v19 = vadd.f32 %v828_v9, %v660_v14 }
 0x129   :  { %v751_v15 = vadd.f32 %v750_v13, %v582_v12  ;;  %v916_v26 = vmax.f32 %v829_v19, 0.0 }
 0x12b   :  { %v885_v17 = vmax.f32 %v751_v15, 0.0 }
 0x12c   :  { %v661_v18 = vpop.f32.mrf.mxu2 }
 0x12d   :  { %v1507_v20 = vpack.c.bf16 %v885_v17, %v884_v16  ;;  %v662_v21 = vadd.f32 %v1959_v61, %v661_v18  ;;  %v830_v22 = vpop.f32.mrf.mxu3 }
 0x12e   :  { %v584_v23 = vpop.f32.mrf.mxu0 }
 0x12f   :  { %1631 = vst [vmem:[%s2292_s3 + $0x40] sm:$0xff] %v1507_v20   ;;  %v831_v24 = vadd.f32 %v830_v22, %v662_v21  ;;  %v753_v25 = vpop.f32.mrf.mxu1  ;;  %v585_v29 = vadd.f32 %v1959_v61, %v584_v23 }
 0x131   :  { %v917_v27 = vmax.f32 %v831_v24, 0.0  ;;  %v754_v33 = vadd.f32 %v753_v25, %v585_v29 }
 0x133   :  { %v1587_v28 = vpack.c.bf16 %v917_v27, %v916_v26  ;;  %v886_v38 = vmax.f32 %v754_v33, 0.0 }
 0x134   :  { %v664_v30 = vpop.f32.mrf.mxu2 }
 0x135   :  { %1647 = vst [vmem:[%s2292_s3 + $0xc0] sm:$0xff] %v1587_v28   ;;  %v833_v31 = vpop.f32.mrf.mxu3  ;;  %v665_v36 = vadd.f32 %v1959_v61, %v664_v30 }
 0x136   :  { %v586_v32 = vpop.f32.mrf.mxu0 }
 0x137   :  { %v587_v34 = vadd.f32 %v1959_v61, %v586_v32  ;;  %v755_v35 = vpop.f32.mrf.mxu1  ;;  %v834_v41 = vadd.f32 %v833_v31, %v665_v36 }
 0x139   :  { %v756_v37 = vadd.f32 %v755_v35, %v587_v34  ;;  %v918_v48 = vmax.f32 %v834_v41, 0.0 }
 0x13b   :  { %v887_v39 = vmax.f32 %v756_v37, 0.0 }
 0x13c   :  { %v666_v40 = vpop.f32.mrf.mxu2 }
 0x13d   :  { %v1512_v42 = vpack.c.bf16 %v887_v39, %v886_v38  ;;  %v667_v43 = vadd.f32 %v1959_v61, %v666_v40  ;;  %v835_v44 = vpop.f32.mrf.mxu3 }
 0x13e   :  { %v589_v45 = vpop.f32.mrf.mxu0 }
 0x13f   :  { %1632 = vst [vmem:[%s2292_s3 + $0x48] sm:$0xff] %v1512_v42   ;;  %v836_v46 = vadd.f32 %v835_v44, %v667_v43  ;;  %v758_v47 = vpop.f32.mrf.mxu1  ;;  %v590_v51 = vadd.f32 %v1959_v61, %v589_v45 }
 0x141   :  { %v919_v49 = vmax.f32 %v836_v46, 0.0  ;;  %v759_v55 = vadd.f32 %v758_v47, %v590_v51 }
 0x143   :  { %v1592_v50 = vpack.c.bf16 %v919_v49, %v918_v48  ;;  %v888_v60 = vmax.f32 %v759_v55, 0.0 }
 0x144   :  { %v669_v52 = vpop.f32.mrf.mxu2 }
 0x145   :  { %1648 = vst [vmem:[%s2292_s3 + $0xc8] sm:$0xff] %v1592_v50   ;;  %v838_v53 = vpop.f32.mrf.mxu3  ;;  %v670_v58 = vadd.f32 %v1959_v61, %v669_v52 }
 0x146   :  { %v591_v54 = vpop.f32.mrf.mxu0 }
 0x147   :  { %v592_v56 = vadd.f32 %v1959_v61, %v591_v54  ;;  %v760_v57 = vpop.f32.mrf.mxu1  ;;  %v839_v0 = vadd.f32 %v838_v53, %v670_v58 }
 0x149   :  { %v761_v59 = vadd.f32 %v760_v57, %v592_v56  ;;  %v920_v7 = vmax.f32 %v839_v0, 0.0 }
 0x14b   :  { %v889_v62 = vmax.f32 %v761_v59, 0.0 }
 0x14c   :  { %v671_v63 = vpop.f32.mrf.mxu2 }
 0x14d   :  { %v1517_v1 = vpack.c.bf16 %v889_v62, %v888_v60  ;;  %v672_v2 = vadd.f32 %v1959_v61, %v671_v63  ;;  %v840_v3 = vpop.f32.mrf.mxu3 }
 0x14e   :  { %v594_v4 = vpop.f32.mrf.mxu0 }
 0x14f   :  { %1633 = vst [vmem:[%s2292_s3 + $0x50] sm:$0xff] %v1517_v1   ;;  %v841_v5 = vadd.f32 %v840_v3, %v672_v2  ;;  %v763_v6 = vpop.f32.mrf.mxu1  ;;  %v595_v10 = vadd.f32 %v1959_v61, %v594_v4 }
 0x151   :  { %v921_v8 = vmax.f32 %v841_v5, 0.0  ;;  %v764_v14 = vadd.f32 %v763_v6, %v595_v10 }
 0x153   :  { %v1597_v9 = vpack.c.bf16 %v921_v8, %v920_v7  ;;  %v890_v19 = vmax.f32 %v764_v14, 0.0 }
 0x154   :  { %v674_v11 = vpop.f32.mrf.mxu2 }
 0x155   :  { %1649 = vst [vmem:[%s2292_s3 + $0xd0] sm:$0xff] %v1597_v9   ;;  %v843_v12 = vpop.f32.mrf.mxu3  ;;  %v675_v17 = vadd.f32 %v1959_v61, %v674_v11 }
 0x156   :  { %v596_v13 = vpop.f32.mrf.mxu0 }
 0x157   :  { %v597_v15 = vadd.f32 %v1959_v61, %v596_v13  ;;  %v765_v16 = vpop.f32.mrf.mxu1  ;;  %v844_v22 = vadd.f32 %v843_v12, %v675_v17 }
 0x159   :  { %v766_v18 = vadd.f32 %v765_v16, %v597_v15  ;;  %v922_v29 = vmax.f32 %v844_v22, 0.0 }
 0x15b   :  { %v891_v20 = vmax.f32 %v766_v18, 0.0 }
 0x15c   :  { %v676_v21 = vpop.f32.mrf.mxu2 }
 0x15d   :  { %v1522_v23 = vpack.c.bf16 %v891_v20, %v890_v19  ;;  %v677_v24 = vadd.f32 %v1959_v61, %v676_v21  ;;  %v845_v25 = vpop.f32.mrf.mxu3 }
 0x15e   :  { %v599_v26 = vpop.f32.mrf.mxu0 }
 0x15f   :  { %1634 = vst [vmem:[%s2292_s3 + $0x58] sm:$0xff] %v1522_v23   ;;  %v846_v27 = vadd.f32 %v845_v25, %v677_v24  ;;  %v768_v28 = vpop.f32.mrf.mxu1  ;;  %v600_v32 = vadd.f32 %v1959_v61, %v599_v26 }
 0x161   :  { %v923_v30 = vmax.f32 %v846_v27, 0.0  ;;  %v769_v36 = vadd.f32 %v768_v28, %v600_v32 }
 0x163   :  { %v1602_v31 = vpack.c.bf16 %v923_v30, %v922_v29  ;;  %v892_v41 = vmax.f32 %v769_v36, 0.0 }
 0x164   :  { %v679_v33 = vpop.f32.mrf.mxu2 }
 0x165   :  { %1650 = vst [vmem:[%s2292_s3 + $0xd8] sm:$0xff] %v1602_v31   ;;  %v848_v34 = vpop.f32.mrf.mxu3  ;;  %v680_v39 = vadd.f32 %v1959_v61, %v679_v33 }
 0x166   :  { %v601_v35 = vpop.f32.mrf.mxu0 }
 0x167   :  { %v602_v37 = vadd.f32 %v1959_v61, %v601_v35  ;;  %v770_v38 = vpop.f32.mrf.mxu1  ;;  %v849_v44 = vadd.f32 %v848_v34, %v680_v39 }
 0x169   :  { %v771_v40 = vadd.f32 %v770_v38, %v602_v37  ;;  %v924_v51 = vmax.f32 %v849_v44, 0.0 }
 0x16b   :  { %v893_v42 = vmax.f32 %v771_v40, 0.0 }
 0x16c   :  { %v681_v43 = vpop.f32.mrf.mxu2 }
 0x16d   :  { %v1527_v45 = vpack.c.bf16 %v893_v42, %v892_v41  ;;  %v682_v46 = vadd.f32 %v1959_v61, %v681_v43  ;;  %v850_v47 = vpop.f32.mrf.mxu3 }
 0x16e   :  { %v604_v48 = vpop.f32.mrf.mxu0 }
 0x16f   :  { %1635 = vst [vmem:[%s2292_s3 + $0x60] sm:$0xff] %v1527_v45   ;;  %v851_v49 = vadd.f32 %v850_v47, %v682_v46  ;;  %v773_v50 = vpop.f32.mrf.mxu1  ;;  %v605_v54 = vadd.f32 %v1959_v61, %v604_v48 }
 0x171   :  { %v925_v52 = vmax.f32 %v851_v49, 0.0  ;;  %v774_v58 = vadd.f32 %v773_v50, %v605_v54 }
 0x173   :  { %v1607_v53 = vpack.c.bf16 %v925_v52, %v924_v51  ;;  %v894_v0 = vmax.f32 %v774_v58, 0.0 }
 0x174   :  { %v684_v55 = vpop.f32.mrf.mxu2 }
 0x175   :  { %1651 = vst [vmem:[%s2292_s3 + $0xe0] sm:$0xff] %v1607_v53   ;;  %v853_v56 = vpop.f32.mrf.mxu3  ;;  %v685_v62 = vadd.f32 %v1959_v61, %v684_v55 }
 0x176   :  { %v606_v57 = vpop.f32.mrf.mxu0 }
 0x177   :  { %v607_v59 = vadd.f32 %v1959_v61, %v606_v57  ;;  %v775_v60 = vpop.f32.mrf.mxu1  ;;  %v854_v3 = vadd.f32 %v853_v56, %v685_v62 }
 0x179   :  { %v776_v63 = vadd.f32 %v775_v60, %v607_v59  ;;  %v926_v10 = vmax.f32 %v854_v3, 0.0 }
 0x17b   :  { %v895_v1 = vmax.f32 %v776_v63, 0.0 }
 0x17c   :  { %v686_v2 = vpop.f32.mrf.mxu2 }
 0x17d   :  { %v1532_v4 = vpack.c.bf16 %v895_v1, %v894_v0  ;;  %v687_v5 = vadd.f32 %v1959_v61, %v686_v2  ;;  %v855_v6 = vpop.f32.mrf.mxu3 }
 0x17e   :  { %v609_v7 = vpop.f32.mrf.mxu0 }
 0x17f   :  { %1636 = vst [vmem:[%s2292_s3 + $0x68] sm:$0xff] %v1532_v4   ;;  %v856_v8 = vadd.f32 %v855_v6, %v687_v5  ;;  %v778_v9 = vpop.f32.mrf.mxu1  ;;  %v610_v13 = vadd.f32 %v1959_v61, %v609_v7 }
 0x181   :  { %v927_v11 = vmax.f32 %v856_v8, 0.0  ;;  %v779_v17 = vadd.f32 %v778_v9, %v610_v13 }
 0x183   :  { %v1612_v12 = vpack.c.bf16 %v927_v11, %v926_v10  ;;  %v896_v22 = vmax.f32 %v779_v17, 0.0 }
 0x184   :  { %v689_v14 = vpop.f32.mrf.mxu2 }
 0x185   :  { %1652 = vst [vmem:[%s2292_s3 + $0xe8] sm:$0xff] %v1612_v12   ;;  %v858_v15 = vpop.f32.mrf.mxu3  ;;  %v690_v20 = vadd.f32 %v1959_v61, %v689_v14 }
 0x186   :  { %v611_v16 = vpop.f32.mrf.mxu0 }
 0x187   :  { %v612_v18 = vadd.f32 %v1959_v61, %v611_v16  ;;  %v780_v19 = vpop.f32.mrf.mxu1  ;;  %v859_v25 = vadd.f32 %v858_v15, %v690_v20 }
 0x189   :  { %v781_v21 = vadd.f32 %v780_v19, %v612_v18  ;;  %v928_v32 = vmax.f32 %v859_v25, 0.0 }
 0x18b   :  { %v897_v23 = vmax.f32 %v781_v21, 0.0 }
 0x18c   :  { %v691_v24 = vpop.f32.mrf.mxu2 }
 0x18d   :  { %v1537_v26 = vpack.c.bf16 %v897_v23, %v896_v22  ;;  %v692_v27 = vadd.f32 %v1959_v61, %v691_v24  ;;  %v860_v28 = vpop.f32.mrf.mxu3 }
 0x18e   :  { %v614_v29 = vpop.f32.mrf.mxu0 }
 0x18f   :  { %1637 = vst [vmem:[%s2292_s3 + $0x70] sm:$0xff] %v1537_v26   ;;  %v861_v30 = vadd.f32 %v860_v28, %v692_v27  ;;  %v783_v31 = vpop.f32.mrf.mxu1  ;;  %v615_v35 = vadd.f32 %v1959_v61, %v614_v29 }
 0x191   :  { %v929_v33 = vmax.f32 %v861_v30, 0.0  ;;  %v784_v39 = vadd.f32 %v783_v31, %v615_v35 }
 0x193   :  { %v1617_v34 = vpack.c.bf16 %v929_v33, %v928_v32  ;;  %v898_v44 = vmax.f32 %v784_v39, 0.0 }
 0x194   :  { %v694_v36 = vpop.f32.mrf.mxu2 }
 0x195   :  { %1653 = vst [vmem:[%s2292_s3 + $0xf0] sm:$0xff] %v1617_v34   ;;  %v863_v37 = vpop.f32.mrf.mxu3  ;;  %v695_v42 = vadd.f32 %v1959_v61, %v694_v36 }
 0x196   :  { %v616_v38 = vpop.f32.mrf.mxu0 }
 0x197   :  { %v617_v40 = vadd.f32 %v1959_v61, %v616_v38  ;;  %v785_v41 = vpop.f32.mrf.mxu1  ;;  %v864_v47 = vadd.f32 %v863_v37, %v695_v42 }
 0x199   :  { %v786_v43 = vadd.f32 %v785_v41, %v617_v40  ;;  %v930_v52 = vmax.f32 %v864_v47, 0.0 }
 0x19b   :  { %v899_v45 = vmax.f32 %v786_v43, 0.0 }
 0x19c   :  { %v696_v46 = vpop.f32.mrf.mxu2 }
 0x19d   :  { %v1542_v48 = vpack.c.bf16 %v899_v45, %v898_v44  ;;  %v697_v49 = vadd.f32 %v1959_v61, %v696_v46  ;;  %v865_v50 = vpop.f32.mrf.mxu3 }
 0x19f   :  { %1638 = vst [vmem:[%s2292_s3 + $0x78] sm:$0xff] %v1542_v48   ;;  %v866_v51 = vadd.f32 %v865_v50, %v697_v49 }
 0x1a1   :  { %v931_v53 = vmax.f32 %v866_v51, 0.0 }
 0x1a3   :  { %v1622_v54 = vpack.c.bf16 %v931_v53, %v930_v52 }
 0x1a5   :  { %1654 = vst [vmem:[%s2292_s3 + $0xf8] sm:$0xff] %v1622_v54  }

// kernel: _forward_impl.13
= control target key start
LH: loop header
LB: loop body
LE: loop exit
PB: predicated region body
PF: predicated region fallthrough
CT: control target
= control target key end

     0   :  { %s3313_s1 = inlined_call_operand.vmem [shape: bf16[384,128], index: 1, kind: input, shape index: {}]   ;;  %s3314_s2 = inlined_call_operand.vmem [shape: f32[1,128], index: 2, kind: input, shape index: {}]   ;;  %s3315_s0 = inlined_call_operand.vmem [shape: bf16[512,384], index: 0, kind: input, shape index: {}]   ;;  %s3316_s3 = inlined_call_operand.vmem [shape: f32[512,128], index: 3, kind: output, shape index: {}]  }
   0x1   :  { %v2072_v0 = vld [vmem:[%s3313_s1 + $0x38] sm:$0xff]  ;;  %v2071_v3 = vld [vmem:[%s3313_s1 + $0x30] sm:$0xff]  ;;  %v2070_v6 = vld [vmem:[%s3313_s1 + $0x28] sm:$0xff] }
   0x2   :  { %v2269_v1 = vld [vmem:[%s3313_s1 + $0x78] sm:$0xff]  ;;  %850 = vmatpush.bf16.msra.mxu0 %v2072_v0  ;;  %2089 = vmatpush.bf16.msra.mxu3 %v2072_v0  ;;  %v2284_v4 = vld [vmem:[%s3313_s1 + $0x70] sm:$0xff]  ;;  %v2078_v7 = vld [vmem:[%s3313_s1 + $0x68] sm:$0xff] }
   0x3   :  { %v2274_v2 = vld [vmem:[%s3313_s1 + $0xb8] sm:$0xff]  ;;  %1019 = vmatpush.bf16.msra.mxu1 %v2269_v1  ;;  %v2289_v5 = vld [vmem:[%s3313_s1 + $0xb0] sm:$0xff]  ;;  %v2302_v8 = vld [vmem:[%s3313_s1 + $0xa8] sm:$0xff] }
   0x4   :  { %1188 = vmatpush.bf16.msra.mxu2 %v2274_v2  ;;  %v2069_v9 = vld [vmem:[%s3313_s1 + $0x20] sm:$0xff]  ;;  %v2068_v12 = vld [vmem:[%s3313_s1 + $0x18] sm:$0xff]  ;;  %v2067_v15 = vld [vmem:[%s3313_s1 + $0x10] sm:$0xff] }
   0x5   :  { %v2077_v10 = vld [vmem:[%s3313_s1 + $0x60] sm:$0xff]  ;;  %v2076_v13 = vld [vmem:[%s3313_s1 + $0x58] sm:$0xff]  ;;  %v2075_v16 = vld [vmem:[%s3313_s1 + $0x50] sm:$0xff] }
   0x6   :  { %851 = vmatpush.bf16.msra.mxu0 %v2071_v3  ;;  %2090 = vmatpush.bf16.msra.mxu3 %v2071_v3  ;;  %v2314_v11 = vld [vmem:[%s3313_s1 + $0xa0] sm:$0xff]  ;;  %v2326_v14 = vld [vmem:[%s3313_s1 + $0x98] sm:$0xff]  ;;  %v2338_v17 = vld [vmem:[%s3313_s1 + $0x90] sm:$0xff] }
   0x7   :  { %1020 = vmatpush.bf16.msra.mxu1 %v2284_v4  ;;  %v2066_v18 = vld [vmem:[%s3313_s1 + $0x8] sm:$0xff]  ;;  %v2065_v21 = vld [vmem:[%s3313_s1] sm:$0xff]  ;;  %v1493_v29 = vld [vmem:[%s3315_s0 + $0xc] sm:$0xf0] }
   0x8   :  { %1189 = vmatpush.bf16.msra.mxu2 %v2289_v5  ;;  %v2074_v19 = vld [vmem:[%s3313_s1 + $0x48] sm:$0xff]  ;;  %v2073_v22 = vld [vmem:[%s3313_s1 + $0x40] sm:$0xff]  ;;  %v1971_v31 = vld [vmem:[%s3315_s0 + $0x10] sm:$0xf0] }
   0x9   :  { %v2350_v20 = vld [vmem:[%s3313_s1 + $0x88] sm:$0xff]  ;;  %v2361_v23 = vld [vmem:[%s3313_s1 + $0x80] sm:$0xff]  ;;  %v1503_v36 = vld [vmem:[%s3315_s0 + $0x18] sm:$0xf] }
   0xa   :  { %852 = vmatpush.bf16.msra.mxu0 %v2070_v6  ;;  %2091 = vmatpush.bf16.msra.mxu3 %v2070_v6  ;;  %v1491_v24 = vld [vmem:[%s3315_s0] sm:$0xf]  ;;  %v1970_v25 = vld [vmem:[%s3315_s0 + $0x8] sm:$0xf0]  ;;  %v1969_v28 = vld [vmem:[%s3315_s0 + $0x4] sm:$0xf] }
   0xb   :  { %1021 = vmatpush.bf16.msra.mxu1 %v2078_v7  ;;  %v1779_v26 = vld [vmem:[%s3315_s0 + $0x240] sm:$0xf]  ;;  %v2042_v27 = vld [vmem:[%s3315_s0 + $0x248] sm:$0xf0]  ;;  %v1499_v30 = vld [vmem:[%s3315_s0 + $0x8] sm:$0xf]  ;;  %v1492_v32 = vor.u32 %v1970_v25, %v1491_v24  ;;  %v1496_v34 = vor.u32 %v1969_v28, %v1493_v29 }
   0xc   :  { %1190 = vmatpush.bf16.msra.mxu2 %v2302_v8  ;;  %v1780_v33 = vor.u32 %v2042_v27, %v1779_v26  ;;  %v1500_v35 = vor.u32 %v1971_v31, %v1499_v30  ;;  %v1973_v37 = vld [vmem:[%s3315_s0 + $0x20] sm:$0xf0]  ;;  %v1791_v38 = vld [vmem:[%s3315_s0 + $0x258] sm:$0xf]  ;;  %v1972_v40 = vld [vmem:[%s3315_s0 + $0x1c] sm:$0xf] }
   0xd   :  { %v2045_v39 = vld [vmem:[%s3315_s0 + $0x260] sm:$0xf0]  ;;  %v1505_v41 = vld [vmem:[%s3315_s0 + $0x24] sm:$0xf0]  ;;  %v1511_v42 = vld [vmem:[%s3315_s0 + $0x20] sm:$0xf]  ;;  %v1504_v44 = vor.u32 %v1973_v37, %v1503_v36 }
   0xe   :  { %853 = vmatpush.bf16.msra.mxu0 %v2069_v9  ;;  %2092 = vmatpush.bf16.msra.mxu3 %v2069_v9  ;;  %v1974_v43 = vld [vmem:[%s3315_s0 + $0x28] sm:$0xf0]  ;;  %v1792_v45 = vor.u32 %v2045_v39, %v1791_v38  ;;  %v1508_v46 = vor.u32 %v1972_v40, %v1505_v41  ;;  %v1515_v48 = vld [vmem:[%s3315_s0 + $0x30] sm:$0xf]  ;;  %v1976_v49 = vld [vmem:[%s3315_s0 + $0x38] sm:$0xf0] }
   0xf   :  { %1022 = vmatpush.bf16.msra.mxu1 %v2077_v10  ;;  %v1512_v47 = vor.u32 %v1974_v43, %v1511_v42  ;;  %v1803_v50 = vld [vmem:[%s3315_s0 + $0x270] sm:$0xf]  ;;  %v2048_v51 = vld [vmem:[%s3315_s0 + $0x278] sm:$0xf0]  ;;  %v1975_v52 = vld [vmem:[%s3315_s0 + $0x34] sm:$0xf]  ;;  %v1516_v56 = vor.u32 %v1976_v49, %v1515_v48 }
  0x10   :  { %1191 = vmatpush.bf16.msra.mxu2 %v2314_v11  ;;  %v1517_v53 = vld [vmem:[%s3315_s0 + $0x3c] sm:$0xf0]  ;;  %v1523_v54 = vld [vmem:[%s3315_s0 + $0x38] sm:$0xf]  ;;  %v1977_v55 = vld [vmem:[%s3315_s0 + $0x40] sm:$0xf0]  ;;  %v1804_v57 = vor.u32 %v2048_v51, %v1803_v50 }
  0x11   :  { %v1520_v58 = vor.u32 %v1975_v52, %v1517_v53  ;;  %v1524_v59 = vor.u32 %v1977_v55, %v1523_v54  ;;  %v1527_v60 = vld [vmem:[%s3315_s0 + $0x48] sm:$0xf]  ;;  %v1979_v61 = vld [vmem:[%s3315_s0 + $0x50] sm:$0xf0]  ;;  %v1978_v0 = vld [vmem:[%s3315_s0 + $0x4c] sm:$0xf] }
  0x12   :  { %854 = vmatpush.bf16.msra.mxu0 %v2068_v12  ;;  %2093 = vmatpush.bf16.msra.mxu3 %v2068_v12  ;;  %v1815_v62 = vld [vmem:[%s3315_s0 + $0x288] sm:$0xf]  ;;  %v2051_v63 = vld [vmem:[%s3315_s0 + $0x290] sm:$0xf0]  ;;  %v1980_v3 = vld [vmem:[%s3315_s0 + $0x58] sm:$0xf0] }
  0x13   :  { %1023 = vmatpush.bf16.msra.mxu1 %v2076_v13  ;;  %v1982_v9 = vld [vmem:[%s3315_s0 + $0x68] sm:$0xf0]  ;;  %v1981_v12 = vld [vmem:[%s3315_s0 + $0x64] sm:$0xf]  ;;  %v1984_v24 = vld [vmem:[%s3315_s0 + $0x7c] sm:$0xf] }
  0x14   :  { %1192 = vmatpush.bf16.msra.mxu2 %v2326_v14  ;;  %v1553_v25 = vld [vmem:[%s3315_s0 + $0x84] sm:$0xf0]  ;;  %v1559_v26 = vld [vmem:[%s3315_s0 + $0x80] sm:$0xf]  ;;  %v1986_v27 = vld [vmem:[%s3315_s0 + $0x88] sm:$0xf0] }
  0x15   :  { %v1556_v30 = vor.u32 %v1984_v24, %v1553_v25  ;;  %v1560_v31 = vor.u32 %v1986_v27, %v1559_v26  ;;  %v1987_v36 = vld [vmem:[%s3315_s0 + $0x94] sm:$0xf]  ;;  %v1565_v37 = vld [vmem:[%s3315_s0 + $0x9c] sm:$0xf0]  ;;  %v1571_v38 = vld [vmem:[%s3315_s0 + $0x98] sm:$0xf] }
  0x16   :  { %855 = vmatpush.bf16.msra.mxu0 %v2067_v15  ;;  %2094 = vmatpush.bf16.msra.mxu3 %v2067_v15  ;;  %v1983_v15 = vld [vmem:[%s3315_s0 + $0x70] sm:$0xf0]  ;;  %v1989_v39 = vld [vmem:[%s3315_s0 + $0xa0] sm:$0xf0]  ;;  %v1568_v42 = vor.u32 %v1987_v36, %v1565_v37  ;;  %v1990_v48 = vld [vmem:[%s3315_s0 + $0xac] sm:$0xf] }
  0x17   :  { %1024 = vmatpush.bf16.msra.mxu1 %v2075_v16  ;;  %v1572_v43 = vor.u32 %v1989_v39, %v1571_v38  ;;  %v1577_v49 = vld [vmem:[%s3315_s0 + $0xb4] sm:$0xf0]  ;;  %v1583_v50 = vld [vmem:[%s3315_s0 + $0xb0] sm:$0xf]  ;;  %v1992_v51 = vld [vmem:[%s3315_s0 + $0xb8] sm:$0xf0] }
  0x18   :  { %1193 = vmatpush.bf16.msra.mxu2 %v2338_v17  ;;  %v1580_v54 = vor.u32 %v1990_v48, %v1577_v49  ;;  %v1584_v55 = vor.u32 %v1992_v51, %v1583_v50  ;;  %v1613_v48 = vld [vmem:[%s3315_s0 + $0xfc] sm:$0xf0]  ;;  %v1619_v49 = vld [vmem:[%s3315_s0 + $0xf8] sm:$0xf]  ;;  %v2001_v50 = vld [vmem:[%s3315_s0 + $0x100] sm:$0xf0] }
  0x1a   :  { %856 = vmatpush.bf16.msra.mxu0 %v2066_v18  ;;  %2095 = vmatpush.bf16.msra.mxu3 %v2066_v18 }
  0x1b   :  { %1025 = vmatpush.bf16.msra.mxu1 %v2074_v19 }
  0x1c   :  { %1194 = vmatpush.bf16.msra.mxu2 %v2350_v20 }
  0x1e   :  { %857 = vmatpush.bf16.msra.mxu0 %v2065_v21  ;;  %2096 = vmatpush.bf16.msra.mxu3 %v2065_v21  ;;  %v1985_v21 = vld [vmem:[%s3315_s0 + $0x80] sm:$0xf0] }
  0x1f   :  { %1026 = vmatpush.bf16.msra.mxu1 %v2073_v22 }
  0x20   :  { %1195 = vmatpush.bf16.msra.mxu2 %v2361_v23 }
  0x21   :  { %858 = vmatmul.bf16.vlgmr.msra.gmra.mxu0 %v1492_v32  ;;  %978 = vmatmul.bf16.vlgmr.msra.gmra.mxu3 %v1780_v33  ;;  %v1563_v32 = vld [vmem:[%s3315_s0 + $0x90] sm:$0xf]  ;;  %v1988_v33 = vld [vmem:[%s3315_s0 + $0x98] sm:$0xf0] }
  0x22   :  { %2097 = vmatpush.bf16.msrb.mxu3 %v2269_v1  ;;  %1027 = vmatmul.bf16.vlgmr.msra.gmra.mxu1 %v1496_v34  ;;  %v1529_v1 = vld [vmem:[%s3315_s0 + $0x54] sm:$0xf0]  ;;  %v1851_v34 = vld [vmem:[%s3315_s0 + $0x2d0] sm:$0xf]  ;;  %v1564_v40 = vor.u32 %v1988_v33, %v1563_v32 }
  0x23   :  { %1196 = vmatmul.bf16.vlgmr.msra.gmra.mxu2 %v1500_v35  ;;  %v1532_v6 = vor.u32 %v1978_v0, %v1529_v1  ;;  %v2060_v35 = vld [vmem:[%s3315_s0 + $0x2d8] sm:$0xf0]  ;;  %v1995_v0 = vld [vmem:[%s3315_s0 + $0xd0] sm:$0xf0] }
  0x24   :  { %v1852_v41 = vor.u32 %v2060_v35, %v1851_v34 }
  0x26   :  { %2098 = vmatpush.bf16.msrb.mxu3 %v2284_v4  ;;  %v1528_v4 = vor.u32 %v1979_v61, %v1527_v60  ;;  %v2041_v60 = vld [vmem:[%s3315_s0 + $0x244] sm:$0xf]  ;;  %v1781_v61 = vld [vmem:[%s3315_s0 + $0x24c] sm:$0xf0] }
  0x2a   :  { %2099 = vmatpush.bf16.msrb.mxu3 %v2078_v7 }
  0x2e   :  { %2100 = vmatpush.bf16.msrb.mxu3 %v2077_v10  ;;  %v1827_v10 = vld [vmem:[%s3315_s0 + $0x2a0] sm:$0xf] }
  0x31   :  { %863 = vmatmul.bf16.gmra.mxu0 %v1504_v44  ;;  %983 = vmatmul.bf16.gmra.mxu3 %v1792_v45  ;;  %v1575_v44 = vld [vmem:[%s3315_s0 + $0xa8] sm:$0xf]  ;;  %v1991_v45 = vld [vmem:[%s3315_s0 + $0xb0] sm:$0xf0] }
  0x32   :  { %2101 = vmatpush.bf16.msrb.mxu3 %v2076_v13  ;;  %1032 = vmatmul.bf16.gmra.mxu1 %v1508_v46  ;;  %v1541_v13 = vld [vmem:[%s3315_s0 + $0x6c] sm:$0xf0]  ;;  %v1863_v46 = vld [vmem:[%s3315_s0 + $0x2e8] sm:$0xf]  ;;  %v1576_v52 = vor.u32 %v1991_v45, %v1575_v44  ;;  %v2000_v44 = vld [vmem:[%s3315_s0 + $0xf8] sm:$0xf0] }
  0x33   :  { %1201 = vmatmul.bf16.gmra.mxu2 %v1512_v47  ;;  %v1544_v18 = vor.u32 %v1981_v12, %v1541_v13  ;;  %v2063_v47 = vld [vmem:[%s3315_s0 + $0x2f0] sm:$0xf0] }
  0x34   :  { %v1864_v53 = vor.u32 %v2063_v47, %v1863_v46  ;;  %v1999_v45 = vld [vmem:[%s3315_s0 + $0xf4] sm:$0xf]  ;;  %v1805_v47 = vld [vmem:[%s3315_s0 + $0x27c] sm:$0xf0] }
  0x35   :  { %v2047_v46 = vld [vmem:[%s3315_s0 + $0x274] sm:$0xf] }
  0x36   :  { %2102 = vmatpush.bf16.msrb.mxu3 %v2075_v16 }
  0x3a   :  { %2103 = vmatpush.bf16.msrb.mxu3 %v2074_v19 }
  0x3e   :  { %2104 = vmatpush.bf16.msrb.mxu3 %v2073_v22  ;;  %v1839_v22 = vld [vmem:[%s3315_s0 + $0x2b8] sm:$0xf] }
  0x41   :  { %868 = vmatmul.bf16.gmra.mxu0 %v1516_v56  ;;  %988 = vmatmul.bf16.gmra.mxu3 %v1804_v57  ;;  %v2570_v56 = vld [vmem:[%s3314_s2] ss:$0 sm:$0xff] }
  0x42   :  { %2105 = vmatpush.bf16.msra.mxu3 %v2274_v2  ;;  %1037 = vmatmul.bf16.gmra.mxu1 %v1520_v58  ;;  %v1535_v2 = vld [vmem:[%s3315_s0 + $0x50] sm:$0xf]  ;;  %v1587_v57 = vld [vmem:[%s3315_s0 + $0xc0] sm:$0xf]  ;;  %v1994_v58 = vld [vmem:[%s3315_s0 + $0xc8] sm:$0xf0] }
  0x43   :  { %1206 = vmatmul.bf16.gmra.mxu2 %v1524_v59  ;;  %v1536_v7 = vor.u32 %v1980_v3, %v1535_v2  ;;  %v1993_v59 = vld [vmem:[%s3315_s0 + $0xc4] sm:$0xf]  ;;  %v1588_v1 = vor.u32 %v1994_v58, %v1587_v57  ;;  %v1784_v2 = vor.u32 %v2041_v60, %v1781_v61  ;;  %v1616_v60 = vor.u32 %v1999_v45, %v1613_v48  ;;  %v1643_v45 = vld [vmem:[%s3315_s0 + $0x128] sm:$0xf] }
  0x44   :  { %v1620_v61 = vor.u32 %v2001_v50, %v1619_v49 }
  0x46   :  { %2106 = vmatpush.bf16.msra.mxu3 %v2289_v5  ;;  %v1816_v5 = vor.u32 %v2051_v63, %v1815_v62  ;;  %v1589_v62 = vld [vmem:[%s3315_s0 + $0xcc] sm:$0xf0]  ;;  %v1595_v63 = vld [vmem:[%s3315_s0 + $0xc8] sm:$0xf] }
  0x4a   :  { %2107 = vmatpush.bf16.msra.mxu3 %v2302_v8  ;;  %v1539_v8 = vld [vmem:[%s3315_s0 + $0x60] sm:$0xf] }
  0x4b   :  { %v1540_v16 = vor.u32 %v1982_v9, %v1539_v8 }
  0x4e   :  { %2108 = vmatpush.bf16.msra.mxu3 %v2314_v11  ;;  %v2054_v11 = vld [vmem:[%s3315_s0 + $0x2a8] sm:$0xf0] }
  0x51   :  { %873 = vmatmul.bf16.gmra.mxu0 %v1528_v4  ;;  %993 = vmatmul.bf16.gmra.mxu3 %v1816_v5  ;;  %v1592_v4 = vor.u32 %v1993_v59, %v1589_v62  ;;  %v1596_v5 = vor.u32 %v1995_v0, %v1595_v63 }
  0x52   :  { %2109 = vmatpush.bf16.msra.mxu3 %v2326_v14  ;;  %1042 = vmatmul.bf16.gmra.mxu1 %v1532_v6  ;;  %v1547_v14 = vld [vmem:[%s3315_s0 + $0x68] sm:$0xf] }
  0x53   :  { %1211 = vmatmul.bf16.gmra.mxu2 %v1536_v7  ;;  %v1548_v19 = vor.u32 %v1983_v15, %v1547_v14  ;;  %v1599_v15 = vld [vmem:[%s3315_s0 + $0xd8] sm:$0xf] }
  0x56   :  { %2110 = vmatpush.bf16.msra.mxu3 %v2338_v17  ;;  %v1828_v17 = vor.u32 %v2054_v11, %v1827_v10 }
  0x5a   :  { %2111 = vmatpush.bf16.msra.mxu3 %v2350_v20  ;;  %v1551_v20 = vld [vmem:[%s3315_s0 + $0x78] sm:$0xf] }
  0x5b   :  { %v1552_v28 = vor.u32 %v1985_v21, %v1551_v20  ;;  %v1601_v20 = vld [vmem:[%s3315_s0 + $0xe4] sm:$0xf0]  ;;  %v1607_v21 = vld [vmem:[%s3315_s0 + $0xe0] sm:$0xf] }
  0x5e   :  { %2112 = vmatpush.bf16.msra.mxu3 %v2361_v23  ;;  %v2057_v23 = vld [vmem:[%s3315_s0 + $0x2c0] sm:$0xf0] }
  0x5f   :  { %v1840_v29 = vor.u32 %v2057_v23, %v1839_v22  ;;  %v1998_v22 = vld [vmem:[%s3315_s0 + $0xe8] sm:$0xf0] }
  0x60   :  { %v1608_v32 = vor.u32 %v1998_v22, %v1607_v21 }
  0x61   :  { %878 = vmatmul.bf16.gmra.mxu0 %v1540_v16  ;;  %998 = vmatmul.bf16.gmra.mxu3 %v1828_v17  ;;  %v1997_v16 = vld [vmem:[%s3315_s0 + $0xe0] sm:$0xf0]  ;;  %v1996_v17 = vld [vmem:[%s3315_s0 + $0xdc] sm:$0xf] }
  0x62   :  { %1047 = vmatmul.bf16.gmra.mxu1 %v1544_v18  ;;  %v2044_v18 = vld [vmem:[%s3315_s0 + $0x25c] sm:$0xf]  ;;  %v1600_v26 = vor.u32 %v1997_v16, %v1599_v15  ;;  %v1631_v15 = vld [vmem:[%s3315_s0 + $0x110] sm:$0xf] }
  0x63   :  { %1216 = vmatmul.bf16.gmra.mxu2 %v1548_v19  ;;  %v1793_v19 = vld [vmem:[%s3315_s0 + $0x264] sm:$0xf0]  ;;  %v2004_v16 = vld [vmem:[%s3315_s0 + $0x118] sm:$0xf0] }
  0x64   :  { %v1796_v27 = vor.u32 %v2044_v18, %v1793_v19 }
  0x71   :  { %883 = vmatmul.bf16.gmra.mxu0 %v1552_v28  ;;  %1003 = vmatmul.bf16.gmra.mxu3 %v1840_v29 }
  0x72   :  { %1052 = vmatmul.bf16.gmra.mxu1 %v1556_v30 }
  0x73   :  { %1221 = vmatmul.bf16.gmra.mxu2 %v1560_v31  ;;  %v1604_v31 = vor.u32 %v1996_v17, %v1601_v20 }
  0x81   :  { %888 = vmatmul.bf16.gmra.mxu0 %v1564_v40  ;;  %1008 = vmatmul.bf16.gmra.mxu3 %v1852_v41 }
  0x82   :  { %1057 = vmatmul.bf16.gmra.mxu1 %v1568_v42 }
  0x83   :  { %1226 = vmatmul.bf16.gmra.mxu2 %v1572_v43  ;;  %v1611_v43 = vld [vmem:[%s3315_s0 + $0xf0] sm:$0xf] }
  0x91   :  { %893 = vmatmul.bf16.gmra.mxu0 %v1576_v52  ;;  %1013 = vmatmul.bf16.gmra.mxu3 %v1864_v53 }
  0x92   :  { %1062 = vmatmul.bf16.gmra.mxu1 %v1580_v54  ;;  %v1612_v54 = vor.u32 %v2000_v44, %v1611_v43  ;;  %v1829_v43 = vld [vmem:[%s3315_s0 + $0x2ac] sm:$0xf0] }
  0x93   :  { %1231 = vmatmul.bf16.gmra.mxu2 %v1584_v55  ;;  %v1808_v55 = vor.u32 %v2047_v46, %v1805_v47  ;;  %v1637_v44 = vld [vmem:[%s3315_s0 + $0x12c] sm:$0xf0]  ;;  %v2007_v46 = vld [vmem:[%s3315_s0 + $0x130] sm:$0xf0] }
  0x9e   :  { %v859_v3 = vpop.f32.mrf.mxu0 }
  0x9f   :  { %v860_v6 = vadd.f32 %v2570_v56, %v859_v3  ;;  %v1028_v7 = vpop.f32.mrf.mxu1 }
  0xa1   :  { %898 = vmatmul.bf16.gmra.mxu0 %v1588_v1  ;;  %1147 = vmatmul.bf16.vlgmr.msrb.gmra.mxu3 %v1784_v2  ;;  %v1029_v8 = vadd.f32 %v1028_v7, %v860_v6 }
  0xa2   :  { %1067 = vmatmul.bf16.gmra.mxu1 %v1592_v4 }
  0xa3   :  { %1236 = vmatmul.bf16.gmra.mxu2 %v1596_v5 }
  0xa4   :  { %v2597_v9 = vpop.f32.mrf.mxu3 }
  0xa6   :  { %v1197_v10 = vpop.f32.mrf.mxu2  ;;  %v861_v12 = vpop.f32.mrf.mxu0 }
  0xa7   :  { %v1198_v11 = vadd.f32 %v1197_v10, %v1029_v8  ;;  %v1030_v13 = vpop.f32.mrf.mxu1  ;;  %v862_v14 = vadd.f32 %v2570_v56, %v861_v12  ;;  %v1623_v8 = vld [vmem:[%s3315_s0 + $0x108] sm:$0xf]  ;;  %v2003_v10 = vld [vmem:[%s3315_s0 + $0x110] sm:$0xf0]  ;;  %v2050_v12 = vld [vmem:[%s3315_s0 + $0x28c] sm:$0xf] }
  0xa8   :  { %v1624_v20 = vor.u32 %v2003_v10, %v1623_v8  ;;  %v2008_v8 = vld [vmem:[%s3315_s0 + $0x13c] sm:$0xf] }
  0xa9   :  { %2114 = vtanh.f32 %v1198_v11  ;;  %v1031_v23 = vadd.f32 %v1030_v13, %v862_v14  ;;  %v2002_v11 = vld [vmem:[%s3315_s0 + $0x10c] sm:$0xf]  ;;  %v1817_v13 = vld [vmem:[%s3315_s0 + $0x294] sm:$0xf0]  ;;  %v2056_v10 = vld [vmem:[%s3315_s0 + $0x2bc] sm:$0xf] }
  0xaa   :  { %v1625_v14 = vld [vmem:[%s3315_s0 + $0x114] sm:$0xf0]  ;;  %v1820_v21 = vor.u32 %v2050_v12, %v1817_v13  ;;  %v1649_v12 = vld [vmem:[%s3315_s0 + $0x144] sm:$0xf0]  ;;  %v1655_v13 = vld [vmem:[%s3315_s0 + $0x140] sm:$0xf] }
  0xac   :  { %v2624_v24 = vpop.f32.mrf.mxu3 }
  0xae   :  { %v1199_v25 = vpop.f32.mrf.mxu2  ;;  %v864_v30 = vpop.f32.mrf.mxu0 }
  0xaf   :  { %v2115_v28 = vpop.eup %2114  ;;  %v1200_v29 = vadd.f32 %v1199_v25, %v1031_v23  ;;  %v865_v33 = vadd.f32 %v2570_v56, %v864_v30  ;;  %v1033_v34 = vpop.f32.mrf.mxu1 }
  0xb0   :  { %1421 = vst [vmem:[%s3316_s3] sm:$0xff] %v2115_v28 }
  0xb1   :  { %2116 = vtanh.f32 %v1200_v29  ;;  %903 = vmatmul.bf16.gmra.mxu0 %v1600_v26  ;;  %1152 = vmatmul.bf16.gmra.mxu3 %v1796_v27  ;;  %v1034_v35 = vadd.f32 %v1033_v34, %v865_v33  ;;  %v1628_v26 = vor.u32 %v2002_v11, %v1625_v14  ;;  %v1632_v27 = vor.u32 %v2004_v16, %v1631_v15  ;;  %v1841_v11 = vld [vmem:[%s3315_s0 + $0x2c4] sm:$0xf0]  ;;  %v2010_v14 = vld [vmem:[%s3315_s0 + $0x148] sm:$0xf0] }
  0xb2   :  { %1072 = vmatmul.bf16.gmra.mxu1 %v1604_v31 }
  0xb3   :  { %1241 = vmatmul.bf16.gmra.mxu2 %v1608_v32 }
  0xb4   :  { %v2630_v36 = vpop.f32.mrf.mxu3 }
  0xb6   :  { %v1202_v37 = vpop.f32.mrf.mxu2  ;;  %v866_v40 = vpop.f32.mrf.mxu0 }
  0xb7   :  { %v2117_v38 = vpop.eup %2116  ;;  %v1203_v39 = vadd.f32 %v1202_v37, %v1034_v35  ;;  %v1035_v41 = vpop.f32.mrf.mxu1  ;;  %v867_v42 = vadd.f32 %v2570_v56, %v866_v40  ;;  %v2006_v40 = vld [vmem:[%s3315_s0 + $0x128] sm:$0xf0] }
  0xb8   :  { %1422 = vst [vmem:[%s3316_s3 + $0x8] sm:$0xff] %v2117_v38 }
  0xb9   :  { %2118 = vtanh.f32 %v1203_v39  ;;  %v1036_v51 = vadd.f32 %v1035_v41, %v867_v42  ;;  %v1635_v39 = vld [vmem:[%s3315_s0 + $0x120] sm:$0xf]  ;;  %v2005_v41 = vld [vmem:[%s3315_s0 + $0x124] sm:$0xf] }
  0xba   :  { %v2053_v42 = vld [vmem:[%s3315_s0 + $0x2a4] sm:$0xf]  ;;  %v1636_v50 = vor.u32 %v2006_v40, %v1635_v39  ;;  %v1659_v39 = vld [vmem:[%s3315_s0 + $0x150] sm:$0xf]  ;;  %v2012_v40 = vld [vmem:[%s3315_s0 + $0x158] sm:$0xf0] }
  0xbc   :  { %v2660_v52 = vpop.f32.mrf.mxu3 }
  0xbe   :  { %v1204_v53 = vpop.f32.mrf.mxu2  ;;  %v869_v59 = vpop.f32.mrf.mxu0 }
  0xbf   :  { %v2119_v57 = vpop.eup %2118  ;;  %v1205_v58 = vadd.f32 %v1204_v53, %v1036_v51  ;;  %v870_v62 = vadd.f32 %v2570_v56, %v869_v59  ;;  %v1038_v63 = vpop.f32.mrf.mxu1  ;;  %v1832_v51 = vor.u32 %v2053_v42, %v1829_v43  ;;  %v2059_v42 = vld [vmem:[%s3315_s0 + $0x2d4] sm:$0xf]  ;;  %v1853_v43 = vld [vmem:[%s3315_s0 + $0x2dc] sm:$0xf0] }
  0xc0   :  { %1423 = vst [vmem:[%s3316_s3 + $0x10] sm:$0xff] %v2119_v57  ;;  %v1640_v57 = vor.u32 %v2005_v41, %v1637_v44  ;;  %v2011_v41 = vld [vmem:[%s3315_s0 + $0x154] sm:$0xf]  ;;  %v1661_v44 = vld [vmem:[%s3315_s0 + $0x15c] sm:$0xf0] }
  0xc1   :  { %2120 = vtanh.f32 %v1205_v58  ;;  %908 = vmatmul.bf16.gmra.mxu0 %v1612_v54  ;;  %1157 = vmatmul.bf16.gmra.mxu3 %v1808_v55  ;;  %v1039_v0 = vadd.f32 %v1038_v63, %v870_v62  ;;  %v1644_v58 = vor.u32 %v2007_v46, %v1643_v45  ;;  %v1667_v45 = vld [vmem:[%s3315_s0 + $0x158] sm:$0xf]  ;;  %v2013_v46 = vld [vmem:[%s3315_s0 + $0x160] sm:$0xf0] }
  0xc2   :  { %1077 = vmatmul.bf16.gmra.mxu1 %v1616_v60 }
  0xc3   :  { %1246 = vmatmul.bf16.gmra.mxu2 %v1620_v61 }
  0xc4   :  { %v2666_v1 = vpop.f32.mrf.mxu3 }
  0xc6   :  { %v1207_v2 = vpop.f32.mrf.mxu2  ;;  %v871_v5 = vpop.f32.mrf.mxu0 }
  0xc7   :  { %v2121_v3 = vpop.eup %2120  ;;  %v1208_v4 = vadd.f32 %v1207_v2, %v1039_v0  ;;  %v1040_v6 = vpop.f32.mrf.mxu1  ;;  %v872_v7 = vadd.f32 %v2570_v56, %v871_v5 }
  0xc8   :  { %1424 = vst [vmem:[%s3316_s3 + $0x18] sm:$0xff] %v2121_v3 }
  0xc9   :  { %2122 = vtanh.f32 %v1208_v4  ;;  %v1041_v17 = vadd.f32 %v1040_v6, %v872_v7  ;;  %v1647_v6 = vld [vmem:[%s3315_s0 + $0x138] sm:$0xf]  ;;  %v2009_v7 = vld [vmem:[%s3315_s0 + $0x140] sm:$0xf0] }
  0xcc   :  { %v2696_v18 = vpop.f32.mrf.mxu3 }
  0xce   :  { %v1209_v19 = vpop.f32.mrf.mxu2  ;;  %v874_v25 = vpop.f32.mrf.mxu0 }
  0xcf   :  { %v2123_v22 = vpop.eup %2122  ;;  %v1210_v23 = vadd.f32 %v1209_v19, %v1041_v17  ;;  %v875_v28 = vadd.f32 %v2570_v56, %v874_v25  ;;  %v1043_v29 = vpop.f32.mrf.mxu1  ;;  %v1648_v19 = vor.u32 %v2009_v7, %v1647_v6  ;;  %v1652_v25 = vor.u32 %v2008_v8, %v1649_v12  ;;  %v1671_v8 = vld [vmem:[%s3315_s0 + $0x168] sm:$0xf]  ;;  %v2062_v12 = vld [vmem:[%s3315_s0 + $0x2ec] sm:$0xf] }
  0xd0   :  { %1425 = vst [vmem:[%s3316_s3 + $0x20] sm:$0xff] %v2123_v22 }
  0xd1   :  { %2124 = vtanh.f32 %v1210_v23  ;;  %913 = vmatmul.bf16.gmra.mxu0 %v1624_v20  ;;  %1162 = vmatmul.bf16.gmra.mxu3 %v1820_v21  ;;  %v1044_v30 = vadd.f32 %v1043_v29, %v875_v28  ;;  %v1844_v20 = vor.u32 %v2056_v10, %v1841_v11  ;;  %v2015_v10 = vld [vmem:[%s3315_s0 + $0x170] sm:$0xf0]  ;;  %v2014_v11 = vld [vmem:[%s3315_s0 + $0x16c] sm:$0xf] }
  0xd2   :  { %1082 = vmatmul.bf16.gmra.mxu1 %v1628_v26  ;;  %v1656_v26 = vor.u32 %v2010_v14, %v1655_v13  ;;  %v1865_v13 = vld [vmem:[%s3315_s0 + $0x2f4] sm:$0xf0] }
  0xd3   :  { %1251 = vmatmul.bf16.gmra.mxu2 %v1632_v27  ;;  %v1673_v14 = vld [vmem:[%s3315_s0 + $0x174] sm:$0xf0] }
  0xd4   :  { %v2702_v31 = vpop.f32.mrf.mxu3 }
  0xd6   :  { %v1212_v32 = vpop.f32.mrf.mxu2  ;;  %v876_v35 = vpop.f32.mrf.mxu0 }
  0xd7   :  { %v2125_v33 = vpop.eup %2124  ;;  %v1213_v34 = vadd.f32 %v1212_v32, %v1044_v30  ;;  %v1045_v37 = vpop.f32.mrf.mxu1  ;;  %v877_v38 = vadd.f32 %v2570_v56, %v876_v35 }
  0xd8   :  { %1426 = vst [vmem:[%s3316_s3 + $0x28] sm:$0xff] %v2125_v33 }
  0xd9   :  { %2126 = vtanh.f32 %v1213_v34  ;;  %v1046_v47 = vadd.f32 %v1045_v37, %v877_v38 }
  0xdc   :  { %v2732_v48 = vpop.f32.mrf.mxu3 }
  0xde   :  { %v1214_v49 = vpop.f32.mrf.mxu2  ;;  %v879_v55 = vpop.f32.mrf.mxu0 }
  0xdf   :  { %v2127_v53 = vpop.eup %2126  ;;  %v1215_v54 = vadd.f32 %v1214_v49, %v1046_v47  ;;  %v880_v59 = vadd.f32 %v2570_v56, %v879_v55  ;;  %v1048_v60 = vpop.f32.mrf.mxu1 }
  0xe0   :  { %1427 = vst [vmem:[%s3316_s3 + $0x30] sm:$0xff] %v2127_v53  ;;  %v1856_v53 = vor.u32 %v2059_v42, %v1853_v43  ;;  %v1683_v43 = vld [vmem:[%s3315_s0 + $0x180] sm:$0xf] }
  0xe1   :  { %2128 = vtanh.f32 %v1215_v54  ;;  %918 = vmatmul.bf16.gmra.mxu0 %v1636_v50  ;;  %1167 = vmatmul.bf16.gmra.mxu3 %v1832_v51  ;;  %v1049_v61 = vadd.f32 %v1048_v60, %v880_v59  ;;  %v1660_v51 = vor.u32 %v2012_v40, %v1659_v39  ;;  %v1668_v59 = vor.u32 %v2013_v46, %v1667_v45  ;;  %v2017_v45 = vld [vmem:[%s3315_s0 + $0x184] sm:$0xf]  ;;  %v1787_v46 = vld [vmem:[%s3315_s0 + $0x248] sm:$0xf] }
  0xe2   :  { %1087 = vmatmul.bf16.gmra.mxu1 %v1640_v57 }
  0xe3   :  { %1256 = vmatmul.bf16.gmra.mxu2 %v1644_v58  ;;  %v1664_v58 = vor.u32 %v2011_v41, %v1661_v44  ;;  %v2018_v44 = vld [vmem:[%s3315_s0 + $0x188] sm:$0xf0] }
  0xe4   :  { %v2738_v62 = vpop.f32.mrf.mxu3 }
  0xe6   :  { %v1217_v63 = vpop.f32.mrf.mxu2  ;;  %v881_v3 = vpop.f32.mrf.mxu0 }
  0xe7   :  { %v2129_v0 = vpop.eup %2128  ;;  %v1218_v2 = vadd.f32 %v1217_v63, %v1049_v61  ;;  %v1050_v4 = vpop.f32.mrf.mxu1  ;;  %v882_v5 = vadd.f32 %v2570_v56, %v881_v3 }
  0xe8   :  { %1428 = vst [vmem:[%s3316_s3 + $0x38] sm:$0xff] %v2129_v0 }
  0xe9   :  { %2130 = vtanh.f32 %v1218_v2  ;;  %v1051_v15 = vadd.f32 %v1050_v4, %v882_v5 }
  0xec   :  { %v2768_v16 = vpop.f32.mrf.mxu3 }
  0xee   :  { %v1219_v17 = vpop.f32.mrf.mxu2  ;;  %v884_v23 = vpop.f32.mrf.mxu0 }
  0xef   :  { %v2131_v21 = vpop.eup %2130  ;;  %v1220_v22 = vadd.f32 %v1219_v17, %v1051_v15  ;;  %v885_v27 = vadd.f32 %v2570_v56, %v884_v23  ;;  %v1053_v28 = vpop.f32.mrf.mxu1  ;;  %v1679_v15 = vld [vmem:[%s3315_s0 + $0x170] sm:$0xf]  ;;  %v2016_v17 = vld [vmem:[%s3315_s0 + $0x178] sm:$0xf0]  ;;  %v1868_v23 = vor.u32 %v2062_v12, %v1865_v13 }
  0xf0   :  { %1429 = vst [vmem:[%s3316_s3 + $0x40] sm:$0xff] %v2131_v21 }
  0xf1   :  { %2132 = vtanh.f32 %v1220_v22  ;;  %923 = vmatmul.bf16.gmra.mxu0 %v1648_v19  ;;  %1172 = vmatmul.bf16.gmra.mxu3 %v1844_v20  ;;  %v1054_v29 = vadd.f32 %v1053_v28, %v885_v27  ;;  %v1672_v22 = vor.u32 %v2015_v10, %v1671_v8  ;;  %v1676_v28 = vor.u32 %v2014_v11, %v1673_v14 }
  0xf2   :  { %1092 = vmatmul.bf16.gmra.mxu1 %v1652_v25 }
  0xf3   :  { %1261 = vmatmul.bf16.gmra.mxu2 %v1656_v26 }
  0xf4   :  { %v2774_v30 = vpop.f32.mrf.mxu3 }
  0xf6   :  { %v1222_v32 = vpop.f32.mrf.mxu2  ;;  %v886_v35 = vpop.f32.mrf.mxu0 }
  0xf7   :  { %v2133_v33 = vpop.eup %2132  ;;  %v1223_v34 = vadd.f32 %v1222_v32, %v1054_v29  ;;  %v1055_v37 = vpop.f32.mrf.mxu1  ;;  %v887_v38 = vadd.f32 %v2570_v56, %v886_v35  ;;  %v1680_v29 = vor.u32 %v2016_v17, %v1679_v15 }
  0xf8   :  { %1430 = vst [vmem:[%s3316_s3 + $0x48] sm:$0xff] %v2133_v33 }
  0xf9   :  { %2134 = vtanh.f32 %v1223_v34  ;;  %v1056_v47 = vadd.f32 %v1055_v37, %v887_v38 }
  0xfc   :  { %v2804_v49 = vpop.f32.mrf.mxu3 }
  0xfe   :  { %v1224_v50 = vpop.f32.mrf.mxu2  ;;  %v889_v57 = vpop.f32.mrf.mxu0 }
  0xff   :  { %v2135_v54 = vpop.eup %2134  ;;  %v1225_v55 = vadd.f32 %v1224_v50, %v1056_v47  ;;  %v890_v60 = vadd.f32 %v2570_v56, %v889_v57  ;;  %v1058_v61 = vpop.f32.mrf.mxu1  ;;  %v2043_v47 = vld [vmem:[%s3315_s0 + $0x250] sm:$0xf0]  ;;  %v1685_v50 = vld [vmem:[%s3315_s0 + $0x18c] sm:$0xf0] }
 0x100   :  { %1431 = vst [vmem:[%s3316_s3 + $0x50] sm:$0xff] %v2135_v54 }
 0x101   :  { %2136 = vtanh.f32 %v1225_v55  ;;  %928 = vmatmul.bf16.gmra.mxu0 %v1660_v51  ;;  %1177 = vmatmul.bf16.gmra.mxu3 %v1856_v53  ;;  %v1059_v63 = vadd.f32 %v1058_v61, %v890_v60  ;;  %v1691_v51 = vld [vmem:[%s3315_s0 + $0x188] sm:$0xf]  ;;  %v2019_v53 = vld [vmem:[%s3315_s0 + $0x190] sm:$0xf0] }
 0x102   :  { %1097 = vmatmul.bf16.gmra.mxu1 %v1664_v58  ;;  %v1684_v58 = vor.u32 %v2018_v44, %v1683_v43 }
 0x103   :  { %1266 = vmatmul.bf16.gmra.mxu2 %v1668_v59  ;;  %v1788_v59 = vor.u32 %v2043_v47, %v1787_v46  ;;  %v985_v46 = vadd.f32 %v2570_v56, %v2630_v36  ;;  %v2024_v36 = vld [vmem:[%s3315_s0 + $0x1b8] sm:$0xf0] }
 0x104   :  { %v2810_v0 = vpop.f32.mrf.mxu3 }
 0x106   :  { %v1227_v2 = vpop.f32.mrf.mxu2  ;;  %v891_v5 = vpop.f32.mrf.mxu0 }
 0x107   :  { %v2137_v3 = vpop.eup %2136  ;;  %v1228_v4 = vadd.f32 %v1227_v2, %v1059_v63  ;;  %v1060_v6 = vpop.f32.mrf.mxu1  ;;  %v892_v7 = vadd.f32 %v2570_v56, %v891_v5  ;;  %v1688_v2 = vor.u32 %v2017_v45, %v1685_v50 }
 0x108   :  { %1432 = vst [vmem:[%s3316_s3 + $0x58] sm:$0xff] %v2137_v3  ;;  %v1692_v3 = vor.u32 %v2019_v53, %v1691_v51 }
 0x109   :  { %2138 = vtanh.f32 %v1228_v4  ;;  %v1061_v19 = vadd.f32 %v1060_v6, %v892_v7  ;;  %v980_v7 = vadd.f32 %v2570_v56, %v2597_v9  ;;  %v2021_v9 = vld [vmem:[%s3315_s0 + $0x1a0] sm:$0xf0] }
 0x10c   :  { %v2840_v20 = vpop.f32.mrf.mxu3 }
 0x10e   :  { %v1229_v21 = vpop.f32.mrf.mxu2  ;;  %v894_v27 = vpop.f32.mrf.mxu0 }
 0x10f   :  { %v2139_v25 = vpop.eup %2138  ;;  %v1230_v26 = vadd.f32 %v1229_v21, %v1061_v19  ;;  %v895_v32 = vadd.f32 %v2570_v56, %v894_v27  ;;  %v1063_v33 = vpop.f32.mrf.mxu1  ;;  %v1695_v19 = vld [vmem:[%s3315_s0 + $0x198] sm:$0xf]  ;;  %v2020_v21 = vld [vmem:[%s3315_s0 + $0x19c] sm:$0xf]  ;;  %v1703_v27 = vld [vmem:[%s3315_s0 + $0x1a0] sm:$0xf] }
 0x110   :  { %1433 = vst [vmem:[%s3316_s3 + $0x60] sm:$0xff] %v2139_v25  ;;  %v982_v25 = vadd.f32 %v2570_v56, %v2624_v24 }
 0x111   :  { %2140 = vtanh.f32 %v1230_v26  ;;  %933 = vmatmul.bf16.gmra.mxu0 %v1672_v22  ;;  %1182 = vmatmul.bf16.gmra.mxu3 %v1868_v23  ;;  %v1064_v34 = vadd.f32 %v1063_v33, %v895_v32  ;;  %v1799_v22 = vld [vmem:[%s3315_s0 + $0x260] sm:$0xf]  ;;  %v2046_v23 = vld [vmem:[%s3315_s0 + $0x268] sm:$0xf0]  ;;  %v1697_v26 = vld [vmem:[%s3315_s0 + $0x1a4] sm:$0xf0] }
 0x112   :  { %1102 = vmatmul.bf16.gmra.mxu1 %v1676_v28  ;;  %v2022_v28 = vld [vmem:[%s3315_s0 + $0x1a8] sm:$0xf0] }
 0x113   :  { %1271 = vmatmul.bf16.gmra.mxu2 %v1680_v29 }
 0x114   :  { %v2846_v35 = vpop.f32.mrf.mxu3 }
 0x116   :  { %v1232_v37 = vpop.f32.mrf.mxu2  ;;  %v896_v40 = vpop.f32.mrf.mxu0 }
 0x117   :  { %v2141_v38 = vpop.eup %2140  ;;  %v1233_v39 = vadd.f32 %v1232_v37, %v1064_v34  ;;  %v1065_v41 = vpop.f32.mrf.mxu1  ;;  %v897_v42 = vadd.f32 %v2570_v56, %v896_v40  ;;  %v1696_v37 = vor.u32 %v2021_v9, %v1695_v19 }
 0x118   :  { %1434 = vst [vmem:[%s3316_s3 + $0x68] sm:$0xff] %v2141_v38  ;;  %v1800_v38 = vor.u32 %v2046_v23, %v1799_v22 }
 0x119   :  { %2142 = vtanh.f32 %v1233_v39  ;;  %v1066_v54 = vadd.f32 %v1065_v41, %v897_v42  ;;  %v1700_v41 = vor.u32 %v2020_v21, %v1697_v26  ;;  %v1704_v42 = vor.u32 %v2022_v28, %v1703_v27 }
 0x11c   :  { %v2876_v55 = vpop.f32.mrf.mxu3 }
 0x11e   :  { %v1234_v57 = vpop.f32.mrf.mxu2  ;;  %v899_v63 = vpop.f32.mrf.mxu0 }
 0x11f   :  { %v2143_v60 = vpop.eup %2142  ;;  %v1235_v61 = vadd.f32 %v1234_v57, %v1066_v54  ;;  %v900_v4 = vadd.f32 %v2570_v56, %v899_v63  ;;  %v1068_v5 = vpop.f32.mrf.mxu1  ;;  %v1811_v63 = vld [vmem:[%s3315_s0 + $0x278] sm:$0xf] }
 0x120   :  { %1435 = vst [vmem:[%s3316_s3 + $0x70] sm:$0xff] %v2143_v60  ;;  %v1707_v60 = vld [vmem:[%s3315_s0 + $0x1b0] sm:$0xf] }
 0x121   :  { %2144 = vtanh.f32 %v1235_v61  ;;  %938 = vmatmul.bf16.gmra.mxu0 %v1684_v58  ;;  %1316 = vmatmul.bf16.vlgmr.msra.gmra.mxu3 %v1788_v59  ;;  %v1069_v6 = vadd.f32 %v1068_v5, %v900_v4  ;;  %v2023_v61 = vld [vmem:[%s3315_s0 + $0x1b4] sm:$0xf]  ;;  %v1709_v4 = vld [vmem:[%s3315_s0 + $0x1bc] sm:$0xf0]  ;;  %v1715_v5 = vld [vmem:[%s3315_s0 + $0x1b8] sm:$0xf] }
 0x122   :  { %1107 = vmatmul.bf16.gmra.mxu1 %v1688_v2  ;;  %v2049_v2 = vld [vmem:[%s3315_s0 + $0x280] sm:$0xf0]  ;;  %v1712_v19 = vor.u32 %v2023_v61, %v1709_v4 }
 0x123   :  { %1276 = vmatmul.bf16.gmra.mxu2 %v1692_v3  ;;  %v987_v3 = vadd.f32 %v2570_v56, %v2660_v52 }
 0x124   :  { %v1148_v8 = vpop.f32.mrf.mxu3 }
 0x125   :  { %v2884_v10 = vadd.f32 %v1148_v8, %v980_v7 }
 0x126   :  { %v1237_v11 = vpop.f32.mrf.mxu2  ;;  %v901_v14 = vpop.f32.mrf.mxu0 }
 0x127   :  { %v2145_v12 = vpop.eup %2144  ;;  %v1238_v13 = vadd.f32 %v1237_v11, %v1069_v6  ;;  %v1070_v15 = vpop.f32.mrf.mxu1  ;;  %v902_v17 = vadd.f32 %v2570_v56, %v901_v14  ;;  %v2025_v6 = vld [vmem:[%s3315_s0 + $0x1c0] sm:$0xf0]  ;;  %v1812_v14 = vor.u32 %v2049_v2, %v1811_v63 }
 0x128   :  { %1436 = vst [vmem:[%s3316_s3 + $0x78] sm:$0xff] %v2145_v12  ;;  %v1716_v9 = vor.u32 %v2025_v6, %v1715_v5 }
 0x129   :  { %2146 = vtanh.f32 %v1238_v13  ;;  %v1071_v29 = vadd.f32 %v1070_v15, %v902_v17  ;;  %v1708_v13 = vor.u32 %v2024_v36, %v1707_v60 }
 0x12c   :  { %v1150_v32 = vpop.f32.mrf.mxu3 }
 0x12d   :  { %v2916_v33 = vadd.f32 %v1150_v32, %v982_v25  ;;  %v990_v25 = vadd.f32 %v2570_v56, %v2666_v1  ;;  %v2027_v1 = vld [vmem:[%s3315_s0 + $0x1d0] sm:$0xf0] }
 0x12e   :  { %v1239_v34 = vpop.f32.mrf.mxu2  ;;  %v904_v40 = vpop.f32.mrf.mxu0 }
 0x12f   :  { %v2147_v24 = vpop.eup %2146  ;;  %v1240_v39 = vadd.f32 %v1239_v34, %v1071_v29  ;;  %v905_v43 = vadd.f32 %v2570_v56, %v904_v40  ;;  %v1073_v44 = vpop.f32.mrf.mxu1  ;;  %v1823_v40 = vld [vmem:[%s3315_s0 + $0x290] sm:$0xf] }
 0x130   :  { %1437 = vst [vmem:[%s3316_s3 + $0x80] sm:$0xff] %v2147_v24  ;;  %v1719_v24 = vld [vmem:[%s3315_s0 + $0x1c8] sm:$0xf] }
 0x131   :  { %2148 = vtanh.f32 %v1240_v39  ;;  %943 = vmatmul.bf16.gmra.mxu0 %v1696_v37  ;;  %1321 = vmatmul.bf16.gmra.mxu3 %v1800_v38  ;;  %v1074_v45 = vadd.f32 %v1073_v44, %v905_v43  ;;  %v2026_v39 = vld [vmem:[%s3315_s0 + $0x1cc] sm:$0xf]  ;;  %v1721_v43 = vld [vmem:[%s3315_s0 + $0x1d4] sm:$0xf0]  ;;  %v1727_v44 = vld [vmem:[%s3315_s0 + $0x1d0] sm:$0xf] }
 0x132   :  { %1112 = vmatmul.bf16.gmra.mxu1 %v1700_v41  ;;  %v2052_v41 = vld [vmem:[%s3315_s0 + $0x298] sm:$0xf0]  ;;  %v1724_v60 = vor.u32 %v2026_v39, %v1721_v43 }
 0x133   :  { %1281 = vmatmul.bf16.gmra.mxu2 %v1704_v42  ;;  %v992_v42 = vadd.f32 %v2570_v56, %v2696_v18 }
 0x134   :  { %v1153_v47 = vpop.f32.mrf.mxu3 }
 0x135   :  { %v2924_v50 = vadd.f32 %v1153_v47, %v985_v46 }
 0x136   :  { %v1242_v51 = vpop.f32.mrf.mxu2  ;;  %v906_v57 = vpop.f32.mrf.mxu0 }
 0x137   :  { %v2149_v53 = vpop.eup %2148  ;;  %v1243_v54 = vadd.f32 %v1242_v51, %v1074_v45  ;;  %v1075_v58 = vpop.f32.mrf.mxu1  ;;  %v907_v59 = vadd.f32 %v2570_v56, %v906_v57  ;;  %v2028_v45 = vld [vmem:[%s3315_s0 + $0x1d8] sm:$0xf0]  ;;  %v1824_v57 = vor.u32 %v2052_v41, %v1823_v40 }
 0x138   :  { %1438 = vst [vmem:[%s3316_s3 + $0x88] sm:$0xff] %v2149_v53  ;;  %v1728_v36 = vor.u32 %v2028_v45, %v1727_v44 }
 0x139   :  { %2150 = vtanh.f32 %v1243_v54  ;;  %v1076_v7 = vadd.f32 %v1075_v58, %v907_v59  ;;  %v1720_v54 = vor.u32 %v2027_v1, %v1719_v24 }
 0x13c   :  { %v1155_v8 = vpop.f32.mrf.mxu3 }
 0x13d   :  { %v2956_v11 = vadd.f32 %v1155_v8, %v987_v3  ;;  %v995_v3 = vadd.f32 %v2570_v56, %v2702_v31  ;;  %v2030_v31 = vld [vmem:[%s3315_s0 + $0x1e8] sm:$0xf0] }
 0x13e   :  { %v1244_v12 = vpop.f32.mrf.mxu2  ;;  %v909_v17 = vpop.f32.mrf.mxu0 }
 0x13f   :  { %v2151_v52 = vpop.eup %2150  ;;  %v1245_v15 = vadd.f32 %v1244_v12, %v1076_v7  ;;  %v910_v21 = vadd.f32 %v2570_v56, %v909_v17  ;;  %v1078_v22 = vpop.f32.mrf.mxu1  ;;  %v1835_v17 = vld [vmem:[%s3315_s0 + $0x2a8] sm:$0xf] }
 0x140   :  { %1439 = vst [vmem:[%s3316_s3 + $0x90] sm:$0xff] %v2151_v52  ;;  %v1731_v52 = vld [vmem:[%s3315_s0 + $0x1e0] sm:$0xf] }
 0x141   :  { %2152 = vtanh.f32 %v1245_v15  ;;  %948 = vmatmul.bf16.gmra.mxu0 %v1708_v13  ;;  %1326 = vmatmul.bf16.gmra.mxu3 %v1812_v14  ;;  %v1079_v23 = vadd.f32 %v1078_v22, %v910_v21  ;;  %v2029_v15 = vld [vmem:[%s3315_s0 + $0x1e4] sm:$0xf]  ;;  %v1733_v21 = vld [vmem:[%s3315_s0 + $0x1ec] sm:$0xf0]  ;;  %v1739_v22 = vld [vmem:[%s3315_s0 + $0x1e8] sm:$0xf] }
 0x142   :  { %1117 = vmatmul.bf16.gmra.mxu1 %v1712_v19  ;;  %v2055_v19 = vld [vmem:[%s3315_s0 + $0x2b0] sm:$0xf0]  ;;  %v1736_v24 = vor.u32 %v2029_v15, %v1733_v21 }
 0x143   :  { %1286 = vmatmul.bf16.gmra.mxu2 %v1716_v9  ;;  %v997_v9 = vadd.f32 %v2570_v56, %v2732_v48 }
 0x144   :  { %v1158_v26 = vpop.f32.mrf.mxu3 }
 0x145   :  { %v2964_v27 = vadd.f32 %v1158_v26, %v990_v25 }
 0x146   :  { %v1247_v28 = vpop.f32.mrf.mxu2  ;;  %v911_v34 = vpop.f32.mrf.mxu0 }
 0x147   :  { %v2153_v29 = vpop.eup %2152  ;;  %v1248_v32 = vadd.f32 %v1247_v28, %v1079_v23  ;;  %v1080_v37 = vpop.f32.mrf.mxu1  ;;  %v912_v38 = vadd.f32 %v2570_v56, %v911_v34  ;;  %v2031_v23 = vld [vmem:[%s3315_s0 + $0x1f0] sm:$0xf0]  ;;  %v1836_v34 = vor.u32 %v2055_v19, %v1835_v17 }
 0x148   :  { %1440 = vst [vmem:[%s3316_s3 + $0x98] sm:$0xff] %v2153_v29  ;;  %v1740_v1 = vor.u32 %v2031_v23, %v1739_v22 }
 0x149   :  { %2154 = vtanh.f32 %v1248_v32  ;;  %v1081_v46 = vadd.f32 %v1080_v37, %v912_v38  ;;  %v1732_v32 = vor.u32 %v2030_v31, %v1731_v52 }
 0x14c   :  { %v1160_v47 = vpop.f32.mrf.mxu3 }
 0x14d   :  { %v2996_v51 = vadd.f32 %v1160_v47, %v992_v42  ;;  %v1000_v42 = vadd.f32 %v2570_v56, %v2738_v62  ;;  %v2033_v62 = vld [vmem:[%s3315_s0 + $0x200] sm:$0xf0] }
 0x14e   :  { %v1249_v53 = vpop.f32.mrf.mxu2  ;;  %v914_v59 = vpop.f32.mrf.mxu0 }
 0x14f   :  { %v2155_v18 = vpop.eup %2154  ;;  %v1250_v58 = vadd.f32 %v1249_v53, %v1081_v46  ;;  %v915_v61 = vadd.f32 %v2570_v56, %v914_v59  ;;  %v1083_v63 = vpop.f32.mrf.mxu1  ;;  %v1847_v59 = vld [vmem:[%s3315_s0 + $0x2c0] sm:$0xf] }
 0x150   :  { %1441 = vst [vmem:[%s3316_s3 + $0xa0] sm:$0xff] %v2155_v18  ;;  %v1743_v18 = vld [vmem:[%s3315_s0 + $0x1f8] sm:$0xf] }
 0x151   :  { %2156 = vtanh.f32 %v1250_v58  ;;  %953 = vmatmul.bf16.gmra.mxu0 %v1720_v54  ;;  %1331 = vmatmul.bf16.gmra.mxu3 %v1824_v57  ;;  %v1084_v2 = vadd.f32 %v1083_v63, %v915_v61  ;;  %v2032_v58 = vld [vmem:[%s3315_s0 + $0x1fc] sm:$0xf]  ;;  %v1745_v61 = vld [vmem:[%s3315_s0 + $0x204] sm:$0xf0]  ;;  %v1751_v63 = vld [vmem:[%s3315_s0 + $0x200] sm:$0xf] }
 0x152   :  { %1122 = vmatmul.bf16.gmra.mxu1 %v1724_v60  ;;  %v2058_v60 = vld [vmem:[%s3315_s0 + $0x2c8] sm:$0xf0]  ;;  %v1748_v52 = vor.u32 %v2032_v58, %v1745_v61 }
 0x153   :  { %1291 = vmatmul.bf16.gmra.mxu2 %v1728_v36  ;;  %v1002_v36 = vadd.f32 %v2570_v56, %v2768_v16 }
 0x154   :  { %v1163_v4 = vpop.f32.mrf.mxu3 }
 0x155   :  { %v3004_v5 = vadd.f32 %v1163_v4, %v995_v3 }
 0x156   :  { %v1252_v6 = vpop.f32.mrf.mxu2  ;;  %v916_v12 = vpop.f32.mrf.mxu0 }
 0x157   :  { %v2157_v7 = vpop.eup %2156  ;;  %v1253_v8 = vadd.f32 %v1252_v6, %v1084_v2  ;;  %v1085_v13 = vpop.f32.mrf.mxu1  ;;  %v917_v14 = vadd.f32 %v2570_v56, %v916_v12  ;;  %v2034_v2 = vld [vmem:[%s3315_s0 + $0x208] sm:$0xf0]  ;;  %v1848_v12 = vor.u32 %v2058_v60, %v1847_v59 }
 0x158   :  { %1442 = vst [vmem:[%s3316_s3 + $0xa8] sm:$0xff] %v2157_v7  ;;  %v1752_v31 = vor.u32 %v2034_v2, %v1751_v63 }
 0x159   :  { %2158 = vtanh.f32 %v1253_v8  ;;  %v1086_v25 = vadd.f32 %v1085_v13, %v917_v14  ;;  %v1744_v8 = vor.u32 %v2033_v62, %v1743_v18 }
 0x15c   :  { %v1165_v26 = vpop.f32.mrf.mxu3 }
 0x15d   :  { %v3036_v28 = vadd.f32 %v1165_v26, %v997_v9  ;;  %v1005_v9 = vadd.f32 %v2570_v56, %v2774_v30  ;;  %v1755_v30 = vld [vmem:[%s3315_s0 + $0x210] sm:$0xf] }
 0x15e   :  { %v1254_v29 = vpop.f32.mrf.mxu2  ;;  %v919_v38 = vpop.f32.mrf.mxu0 }
 0x15f   :  { %v2159_v48 = vpop.eup %2158  ;;  %v1255_v37 = vadd.f32 %v1254_v29, %v1086_v25  ;;  %v920_v39 = vadd.f32 %v2570_v56, %v919_v38  ;;  %v1088_v40 = vpop.f32.mrf.mxu1  ;;  %v1859_v38 = vld [vmem:[%s3315_s0 + $0x2d8] sm:$0xf] }
 0x160   :  { %1443 = vst [vmem:[%s3316_s3 + $0xb0] sm:$0xff] %v2159_v48  ;;  %v2036_v48 = vld [vmem:[%s3315_s0 + $0x218] sm:$0xf0] }
 0x161   :  { %2160 = vtanh.f32 %v1255_v37  ;;  %958 = vmatmul.bf16.gmra.mxu0 %v1732_v32  ;;  %1336 = vmatmul.bf16.gmra.mxu3 %v1836_v34  ;;  %v1089_v41 = vadd.f32 %v1088_v40, %v920_v39  ;;  %v3092_v34 = vld [vmem:[%s3314_s2] ss:$0 sm:$0xff]  ;;  %v2035_v37 = vld [vmem:[%s3315_s0 + $0x214] sm:$0xf]  ;;  %v1763_v40 = vld [vmem:[%s3315_s0 + $0x218] sm:$0xf] }
 0x162   :  { %1127 = vmatmul.bf16.gmra.mxu1 %v1736_v24  ;;  %v2061_v24 = vld [vmem:[%s3315_s0 + $0x2e0] sm:$0xf0]  ;;  %v1757_v39 = vld [vmem:[%s3315_s0 + $0x21c] sm:$0xf0] }
 0x163   :  { %1296 = vmatmul.bf16.gmra.mxu2 %v1740_v1  ;;  %v1007_v1 = vadd.f32 %v3092_v34, %v2804_v49  ;;  %v1760_v18 = vor.u32 %v2035_v37, %v1757_v39 }
 0x164   :  { %v1168_v43 = vpop.f32.mrf.mxu3 }
 0x165   :  { %v3044_v44 = vadd.f32 %v1168_v43, %v1000_v42 }
 0x166   :  { %v1257_v45 = vpop.f32.mrf.mxu2  ;;  %v921_v53 = vpop.f32.mrf.mxu0 }
 0x167   :  { %v2161_v46 = vpop.eup %2160  ;;  %v1258_v47 = vadd.f32 %v1257_v45, %v1089_v41  ;;  %v1090_v54 = vpop.f32.mrf.mxu1  ;;  %v922_v57 = vadd.f32 %v2570_v56, %v921_v53  ;;  %v2037_v41 = vld [vmem:[%s3315_s0 + $0x220] sm:$0xf0]  ;;  %v1860_v53 = vor.u32 %v2061_v24, %v1859_v38 }
 0x168   :  { %1444 = vst [vmem:[%s3316_s3 + $0xb8] sm:$0xff] %v2161_v46  ;;  %v1764_v62 = vor.u32 %v2037_v41, %v1763_v40 }
 0x169   :  { %2162 = vtanh.f32 %v1258_v47  ;;  %v1091_v3 = vadd.f32 %v1090_v54, %v922_v57  ;;  %v1756_v47 = vor.u32 %v2036_v48, %v1755_v30 }
 0x16c   :  { %v1170_v4 = vpop.f32.mrf.mxu3 }
 0x16d   :  { %v3076_v6 = vadd.f32 %v1170_v4, %v1002_v36  ;;  %v1010_v36 = vadd.f32 %v3092_v34, %v2810_v0  ;;  %v2039_v0 = vld [vmem:[%s3315_s0 + $0x230] sm:$0xf0] }
 0x16e   :  { %v1259_v7 = vpop.f32.mrf.mxu2  ;;  %v924_v14 = vpop.f32.mrf.mxu0 }
 0x16f   :  { %v2163_v16 = vpop.eup %2162  ;;  %v1260_v13 = vadd.f32 %v1259_v7, %v1091_v3  ;;  %v925_v15 = vadd.f32 %v2570_v56, %v924_v14  ;;  %v1093_v17 = vpop.f32.mrf.mxu1  ;;  %v1871_v14 = vld [vmem:[%s3315_s0 + $0x2f0] sm:$0xf] }
 0x170   :  { %1445 = vst [vmem:[%s3316_s3 + $0xc0] sm:$0xff] %v2163_v16  ;;  %v1767_v16 = vld [vmem:[%s3315_s0 + $0x228] sm:$0xf] }
 0x171   :  { %2164 = vtanh.f32 %v1260_v13  ;;  %963 = vmatmul.bf16.gmra.mxu0 %v1744_v8  ;;  %1341 = vmatmul.bf16.gmra.mxu3 %v1848_v12  ;;  %v1094_v19 = vadd.f32 %v1093_v17, %v925_v15  ;;  %v2038_v13 = vld [vmem:[%s3315_s0 + $0x22c] sm:$0xf]  ;;  %v1769_v15 = vld [vmem:[%s3315_s0 + $0x234] sm:$0xf0]  ;;  %v1775_v17 = vld [vmem:[%s3315_s0 + $0x230] sm:$0xf] }
 0x172   :  { %1132 = vmatmul.bf16.gmra.mxu1 %v1748_v52  ;;  %v2064_v52 = vld [vmem:[%s3315_s0 + $0x2f8] sm:$0xf0]  ;;  %v1772_v30 = vor.u32 %v2038_v13, %v1769_v15 }
 0x173   :  { %1301 = vmatmul.bf16.gmra.mxu2 %v1752_v31  ;;  %v1012_v31 = vadd.f32 %v3092_v34, %v2840_v20 }
 0x174   :  { %v1173_v21 = vpop.f32.mrf.mxu3 }
 0x175   :  { %v3084_v22 = vadd.f32 %v1173_v21, %v1005_v9 }
 0x176   :  { %v1262_v23 = vpop.f32.mrf.mxu2  ;;  %v926_v29 = vpop.f32.mrf.mxu0 }
 0x177   :  { %v2165_v25 = vpop.eup %2164  ;;  %v1263_v26 = vadd.f32 %v1262_v23, %v1094_v19  ;;  %v1095_v32 = vpop.f32.mrf.mxu1  ;;  %v927_v56 = vadd.f32 %v3092_v34, %v926_v29  ;;  %v2040_v19 = vld [vmem:[%s3315_s0 + $0x238] sm:$0xf0]  ;;  %v1872_v29 = vor.u32 %v2064_v52, %v1871_v14 }
 0x178   :  { %1446 = vst [vmem:[%s3316_s3 + $0xc8] sm:$0xff] %v2165_v25  ;;  %v1776_v48 = vor.u32 %v2040_v19, %v1775_v17 }
 0x179   :  { %2166 = vtanh.f32 %v1263_v26  ;;  %v1096_v42 = vadd.f32 %v1095_v32, %v927_v56  ;;  %v1768_v26 = vor.u32 %v2039_v0, %v1767_v16 }
 0x17c   :  { %v1175_v43 = vpop.f32.mrf.mxu3 }
 0x17d   :  { %v3121_v45 = vadd.f32 %v1175_v43, %v1007_v1  ;;  %v1015_v1 = vadd.f32 %v3092_v34, %v2846_v35 }
 0x17e   :  { %v1264_v46 = vpop.f32.mrf.mxu2  ;;  %v929_v57 = vpop.f32.mrf.mxu0 }
 0x17f   :  { %v2167_v49 = vpop.eup %2166  ;;  %v1265_v54 = vadd.f32 %v1264_v46, %v1096_v42  ;;  %v930_v58 = vadd.f32 %v3092_v34, %v929_v57  ;;  %v1098_v59 = vpop.f32.mrf.mxu1 }
 0x180   :  { %1447 = vst [vmem:[%s3316_s3 + $0xd0] sm:$0xff] %v2167_v49  ;;  %v1017_v49 = vadd.f32 %v3092_v34, %v2876_v55 }
 0x181   :  { %2168 = vtanh.f32 %v1265_v54  ;;  %968 = vmatmul.bf16.gmra.mxu0 %v1756_v47  ;;  %1346 = vmatmul.bf16.gmra.mxu3 %v1860_v53  ;;  %v1099_v60 = vadd.f32 %v1098_v59, %v930_v58 }
 0x182   :  { %1137 = vmatmul.bf16.gmra.mxu1 %v1760_v18 }
 0x183   :  { %1306 = vmatmul.bf16.gmra.mxu2 %v1764_v62 }
 0x184   :  { %v1178_v61 = vpop.f32.mrf.mxu3 }
 0x185   :  { %v3129_v63 = vadd.f32 %v1178_v61, %v1010_v36 }
 0x186   :  { %v1267_v2 = vpop.f32.mrf.mxu2  ;;  %v931_v7 = vpop.f32.mrf.mxu0 }
 0x187   :  { %v2169_v3 = vpop.eup %2168  ;;  %v1268_v4 = vadd.f32 %v1267_v2, %v1099_v60  ;;  %v1100_v8 = vpop.f32.mrf.mxu1  ;;  %v932_v12 = vadd.f32 %v3092_v34, %v931_v7 }
 0x188   :  { %1448 = vst [vmem:[%s3316_s3 + $0xd8] sm:$0xff] %v2169_v3 }
 0x189   :  { %2170 = vtanh.f32 %v1268_v4  ;;  %v1101_v9 = vadd.f32 %v1100_v8, %v932_v12 }
 0x18c   :  { %v1180_v21 = vpop.f32.mrf.mxu3 }
 0x18d   :  { %v3161_v23 = vadd.f32 %v1180_v21, %v1012_v31 }
 0x18e   :  { %v1269_v25 = vpop.f32.mrf.mxu2  ;;  %v934_v56 = vpop.f32.mrf.mxu0 }
 0x18f   :  { %v2171_v20 = vpop.eup %2170  ;;  %v1270_v32 = vadd.f32 %v1269_v25, %v1101_v9  ;;  %v935_v37 = vadd.f32 %v3092_v34, %v934_v56  ;;  %v1103_v38 = vpop.f32.mrf.mxu1 }
 0x190   :  { %1449 = vst [vmem:[%s3316_s3 + $0xe0] sm:$0xff] %v2171_v20 }
 0x191   :  { %2172 = vtanh.f32 %v1270_v32  ;;  %973 = vmatmul.bf16.gmra.mxu0 %v1768_v26  ;;  %1351 = vmatmul.bf16.gmra.mxu3 %v1872_v29  ;;  %v1104_v24 = vadd.f32 %v1103_v38, %v935_v37 }
 0x192   :  { %1142 = vmatmul.bf16.gmra.mxu1 %v1772_v30 }
 0x193   :  { %1311 = vmatmul.bf16.gmra.mxu2 %v1776_v48 }
 0x194   :  { %v1183_v39 = vpop.f32.mrf.mxu3 }
 0x195   :  { %v3169_v40 = vadd.f32 %v1183_v39, %v1015_v1 }
 0x196   :  { %v1272_v41 = vpop.f32.mrf.mxu2  ;;  %v936_v46 = vpop.f32.mrf.mxu0 }
 0x197   :  { %v2173_v42 = vpop.eup %2172  ;;  %v1273_v43 = vadd.f32 %v1272_v41, %v1104_v24  ;;  %v1105_v47 = vpop.f32.mrf.mxu1  ;;  %v937_v53 = vadd.f32 %v3092_v34, %v936_v46 }
 0x198   :  { %1450 = vst [vmem:[%s3316_s3 + $0xe8] sm:$0xff] %v2173_v42 }
 0x199   :  { %2174 = vtanh.f32 %v1273_v43  ;;  %v1106_v54 = vadd.f32 %v1105_v47, %v937_v53 }
 0x19c   :  { %v1185_v35 = vpop.f32.mrf.mxu3 }
 0x19d   :  { %v3177_v57 = vadd.f32 %v1185_v35, %v1017_v49 }
 0x19e   :  { %v1274_v18 = vpop.f32.mrf.mxu2  ;;  %v939_v59 = vpop.f32.mrf.mxu0 }
 0x19f   :  { %v2175_v62 = vpop.eup %2174  ;;  %v1275_v58 = vadd.f32 %v1274_v18, %v1106_v54  ;;  %v940_v60 = vadd.f32 %v3092_v34, %v939_v59  ;;  %v1108_v36 = vpop.f32.mrf.mxu1 }
 0x1a0   :  { %1451 = vst [vmem:[%s3316_s3 + $0xf0] sm:$0xff] %v2175_v62 }
 0x1a1   :  { %2176 = vtanh.f32 %v1275_v58  ;;  %v1109_v61 = vadd.f32 %v1108_v36, %v940_v60 }
 0x1a4   :  { %v1317_v2 = vpop.f32.mrf.mxu3 }
 0x1a5   :  { %v1318_v55 = vadd.f32 %v1317_v2, %v2884_v10 }
 0x1a6   :  { %v1277_v3 = vpop.f32.mrf.mxu2  ;;  %v941_v8 = vpop.f32.mrf.mxu0 }
 0x1a7   :  { %v2177_v4 = vpop.eup %2176  ;;  %v1278_v7 = vadd.f32 %v1277_v3, %v1109_v61  ;;  %2178 = vtanh.f32 %v1318_v55  ;;  %v1110_v12 = vpop.f32.mrf.mxu1  ;;  %v942_v16 = vadd.f32 %v3092_v34, %v941_v8 }
 0x1a8   :  { %1452 = vst [vmem:[%s3316_s3 + $0xf8] sm:$0xff] %v2177_v4 }
 0x1a9   :  { %2180 = vtanh.f32 %v1278_v7  ;;  %v1111_v0 = vadd.f32 %v1110_v12, %v942_v16 }
 0x1ac   :  { %v1319_v13 = vpop.f32.mrf.mxu3 }
 0x1ad   :  { %v2179_v14 = vpop.eup %2178  ;;  %v1320_v31 = vadd.f32 %v1319_v13, %v2916_v33 }
 0x1ae   :  { %v1279_v52 = vpop.f32.mrf.mxu2  ;;  %1469 = vst [vmem:[%s3316_s3 + $0x180] sm:$0xff] %v2179_v14  ;;  %v944_v17 = vpop.f32.mrf.mxu0 }
 0x1af   :  { %v2181_v15 = vpop.eup %2180  ;;  %v1280_v10 = vadd.f32 %v1279_v52, %v1111_v0  ;;  %2182 = vtanh.f32 %v1320_v31  ;;  %v945_v19 = vadd.f32 %v3092_v34, %v944_v17  ;;  %v1113_v9 = vpop.f32.mrf.mxu1 }
 0x1b0   :  { %1453 = vst [vmem:[%s3316_s3 + $0x100] sm:$0xff] %v2181_v15 }
 0x1b1   :  { %2184 = vtanh.f32 %v1280_v10  ;;  %v1114_v21 = vadd.f32 %v1113_v9, %v945_v19 }
 0x1b4   :  { %v1322_v25 = vpop.f32.mrf.mxu3 }
 0x1b5   :  { %v2183_v26 = vpop.eup %2182  ;;  %v1323_v29 = vadd.f32 %v1322_v25, %v2924_v50 }
 0x1b6   :  { %v1282_v33 = vpop.f32.mrf.mxu2  ;;  %1470 = vst [vmem:[%s3316_s3 + $0x188] sm:$0xff] %v2183_v26  ;;  %v946_v56 = vpop.f32.mrf.mxu0 }
 0x1b7   :  { %v2185_v20 = vpop.eup %2184  ;;  %v1283_v32 = vadd.f32 %v1282_v33, %v1114_v21  ;;  %2186 = vtanh.f32 %v1323_v29  ;;  %v1115_v30 = vpop.f32.mrf.mxu1  ;;  %v947_v48 = vadd.f32 %v3092_v34, %v946_v56 }
 0x1b8   :  { %1454 = vst [vmem:[%s3316_s3 + $0x108] sm:$0xff] %v2185_v20 }
 0x1b9   :  { %2188 = vtanh.f32 %v1283_v32  ;;  %v1116_v37 = vadd.f32 %v1115_v30, %v947_v48 }
 0x1bc   :  { %v1324_v38 = vpop.f32.mrf.mxu3 }
 0x1bd   :  { %v2187_v24 = vpop.eup %2186  ;;  %v1325_v1 = vadd.f32 %v1324_v38, %v2956_v11 }
 0x1be   :  { %v1284_v50 = vpop.f32.mrf.mxu2  ;;  %1471 = vst [vmem:[%s3316_s3 + $0x190] sm:$0xff] %v2187_v24  ;;  %v949_v42 = vpop.f32.mrf.mxu0 }
 0x1bf   :  { %v2189_v39 = vpop.eup %2188  ;;  %v1285_v41 = vadd.f32 %v1284_v50, %v1116_v37  ;;  %2190 = vtanh.f32 %v1325_v1  ;;  %v950_v43 = vadd.f32 %v3092_v34, %v949_v42  ;;  %v1118_v46 = vpop.f32.mrf.mxu1 }
 0x1c0   :  { %1455 = vst [vmem:[%s3316_s3 + $0x110] sm:$0xff] %v2189_v39 }
 0x1c1   :  { %2192 = vtanh.f32 %v1285_v41  ;;  %v1119_v47 = vadd.f32 %v1118_v46, %v950_v43 }
 0x1c4   :  { %v1327_v53 = vpop.f32.mrf.mxu3 }
 0x1c5   :  { %v2191_v49 = vpop.eup %2190  ;;  %v1328_v54 = vadd.f32 %v1327_v53, %v2964_v27 }
 0x1c6   :  { %v1287_v11 = vpop.f32.mrf.mxu2  ;;  %1472 = vst [vmem:[%s3316_s3 + $0x198] sm:$0xff] %v2191_v49  ;;  %v951_v62 = vpop.f32.mrf.mxu0 }
 0x1c7   :  { %v2193_v35 = vpop.eup %2192  ;;  %v1288_v18 = vadd.f32 %v1287_v11, %v1119_v47  ;;  %2194 = vtanh.f32 %v1328_v54  ;;  %v1120_v58 = vpop.f32.mrf.mxu1  ;;  %v952_v59 = vadd.f32 %v3092_v34, %v951_v62 }
 0x1c8   :  { %1456 = vst [vmem:[%s3316_s3 + $0x118] sm:$0xff] %v2193_v35 }
 0x1c9   :  { %2196 = vtanh.f32 %v1288_v18  ;;  %v1121_v60 = vadd.f32 %v1120_v58, %v952_v59 }
 0x1cc   :  { %v1329_v36 = vpop.f32.mrf.mxu3 }
 0x1cd   :  { %v2195_v61 = vpop.eup %2194  ;;  %v1330_v2 = vadd.f32 %v1329_v36, %v2996_v51 }
 0x1ce   :  { %v1289_v27 = vpop.f32.mrf.mxu2  ;;  %1473 = vst [vmem:[%s3316_s3 + $0x1a0] sm:$0xff] %v2195_v61  ;;  %v954_v4 = vpop.f32.mrf.mxu0 }
 0x1cf   :  { %v2197_v3 = vpop.eup %2196  ;;  %v1290_v55 = vadd.f32 %v1289_v27, %v1121_v60  ;;  %2198 = vtanh.f32 %v1330_v2  ;;  %v955_v7 = vadd.f32 %v3092_v34, %v954_v4  ;;  %v1123_v8 = vpop.f32.mrf.mxu1 }
 0x1d0   :  { %1457 = vst [vmem:[%s3316_s3 + $0x120] sm:$0xff] %v2197_v3 }
 0x1d1   :  { %2200 = vtanh.f32 %v1290_v55  ;;  %v1124_v12 = vadd.f32 %v1123_v8, %v955_v7 }
 0x1d4   :  { %v1332_v16 = vpop.f32.mrf.mxu3 }
 0x1d5   :  { %v2199_v0 = vpop.eup %2198  ;;  %v1333_v13 = vadd.f32 %v1332_v16, %v3004_v5 }
 0x1d6   :  { %v1292_v51 = vpop.f32.mrf.mxu2  ;;  %1474 = vst [vmem:[%s3316_s3 + $0x1a8] sm:$0xff] %v2199_v0  ;;  %v956_v31 = vpop.f32.mrf.mxu0 }
 0x1d7   :  { %v2201_v14 = vpop.eup %2200  ;;  %v1293_v52 = vadd.f32 %v1292_v51, %v1124_v12  ;;  %2202 = vtanh.f32 %v1333_v13  ;;  %v1125_v15 = vpop.f32.mrf.mxu1  ;;  %v957_v10 = vadd.f32 %v3092_v34, %v956_v31 }
 0x1d8   :  { %1458 = vst [vmem:[%s3316_s3 + $0x128] sm:$0xff] %v2201_v14 }
 0x1d9   :  { %2204 = vtanh.f32 %v1293_v52  ;;  %v1126_v17 = vadd.f32 %v1125_v15, %v957_v10 }
 0x1dc   :  { %v1334_v19 = vpop.f32.mrf.mxu3 }
 0x1dd   :  { %v2203_v9 = vpop.eup %2202  ;;  %v1335_v21 = vadd.f32 %v1334_v19, %v3036_v28 }
 0x1de   :  { %v1294_v5 = vpop.f32.mrf.mxu2  ;;  %1475 = vst [vmem:[%s3316_s3 + $0x1b0] sm:$0xff] %v2203_v9  ;;  %v959_v33 = vpop.f32.mrf.mxu0 }
 0x1df   :  { %v2205_v25 = vpop.eup %2204  ;;  %v1295_v26 = vadd.f32 %v1294_v5, %v1126_v17  ;;  %2206 = vtanh.f32 %v1335_v21  ;;  %v960_v29 = vadd.f32 %v3092_v34, %v959_v33  ;;  %v1128_v20 = vpop.f32.mrf.mxu1 }
 0x1e0   :  { %1459 = vst [vmem:[%s3316_s3 + $0x130] sm:$0xff] %v2205_v25 }
 0x1e1   :  { %2208 = vtanh.f32 %v1295_v26  ;;  %v1129_v32 = vadd.f32 %v1128_v20, %v960_v29 }
 0x1e4   :  { %v1337_v56 = vpop.f32.mrf.mxu3 }
 0x1e5   :  { %v2207_v30 = vpop.eup %2206  ;;  %v1338_v48 = vadd.f32 %v1337_v56, %v3044_v44 }
 0x1e6   :  { %v1297_v28 = vpop.f32.mrf.mxu2  ;;  %1476 = vst [vmem:[%s3316_s3 + $0x1b8] sm:$0xff] %v2207_v30  ;;  %v961_v24 = vpop.f32.mrf.mxu0 }
 0x1e7   :  { %v2209_v37 = vpop.eup %2208  ;;  %v1298_v38 = vadd.f32 %v1297_v28, %v1129_v32  ;;  %2210 = vtanh.f32 %v1338_v48  ;;  %v1130_v50 = vpop.f32.mrf.mxu1  ;;  %v962_v1 = vadd.f32 %v3092_v34, %v961_v24 }
 0x1e8   :  { %1460 = vst [vmem:[%s3316_s3 + $0x138] sm:$0xff] %v2209_v37 }
 0x1e9   :  { %2212 = vtanh.f32 %v1298_v38  ;;  %v1131_v39 = vadd.f32 %v1130_v50, %v962_v1 }
 0x1ec   :  { %v1339_v41 = vpop.f32.mrf.mxu3 }
 0x1ed   :  { %v2211_v42 = vpop.eup %2210  ;;  %v1340_v43 = vadd.f32 %v1339_v41, %v3076_v6 }
 0x1ee   :  { %v1299_v44 = vpop.f32.mrf.mxu2  ;;  %1477 = vst [vmem:[%s3316_s3 + $0x1c0] sm:$0xff] %v2211_v42  ;;  %v964_v53 = vpop.f32.mrf.mxu0 }
 0x1ef   :  { %v2213_v46 = vpop.eup %2212  ;;  %v1300_v47 = vadd.f32 %v1299_v44, %v1131_v39  ;;  %2214 = vtanh.f32 %v1340_v43  ;;  %v965_v49 = vadd.f32 %v3092_v34, %v964_v53  ;;  %v1133_v11 = vpop.f32.mrf.mxu1 }
 0x1f0   :  { %1461 = vst [vmem:[%s3316_s3 + $0x140] sm:$0xff] %v2213_v46 }
 0x1f1   :  { %2216 = vtanh.f32 %v1300_v47  ;;  %v1134_v54 = vadd.f32 %v1133_v11, %v965_v49 }
 0x1f4   :  { %v1342_v35 = vpop.f32.mrf.mxu3 }
 0x1f5   :  { %v2215_v18 = vpop.eup %2214  ;;  %v1343_v62 = vadd.f32 %v1342_v35, %v3084_v22 }
 0x1f6   :  { %v1302_v6 = vpop.f32.mrf.mxu2  ;;  %1478 = vst [vmem:[%s3316_s3 + $0x1c8] sm:$0xff] %v2215_v18  ;;  %v966_v60 = vpop.f32.mrf.mxu0 }
 0x1f7   :  { %v2217_v58 = vpop.eup %2216  ;;  %v1303_v59 = vadd.f32 %v1302_v6, %v1134_v54  ;;  %2218 = vtanh.f32 %v1343_v62  ;;  %v1135_v36 = vpop.f32.mrf.mxu1  ;;  %v967_v61 = vadd.f32 %v3092_v34, %v966_v60 }
 0x1f8   :  { %1462 = vst [vmem:[%s3316_s3 + $0x148] sm:$0xff] %v2217_v58 }
 0x1f9   :  { %2220 = vtanh.f32 %v1303_v59  ;;  %v1136_v27 = vadd.f32 %v1135_v36, %v967_v61 }
 0x1fc   :  { %v1344_v2 = vpop.f32.mrf.mxu3 }
 0x1fd   :  { %v2219_v3 = vpop.eup %2218  ;;  %v1345_v55 = vadd.f32 %v1344_v2, %v3121_v45 }
 0x1fe   :  { %v1304_v22 = vpop.f32.mrf.mxu2  ;;  %1479 = vst [vmem:[%s3316_s3 + $0x1d0] sm:$0xff] %v2219_v3  ;;  %v969_v8 = vpop.f32.mrf.mxu0 }
 0x1ff   :  { %v2221_v4 = vpop.eup %2220  ;;  %v1305_v7 = vadd.f32 %v1304_v22, %v1136_v27  ;;  %2222 = vtanh.f32 %v1345_v55  ;;  %v970_v12 = vadd.f32 %v3092_v34, %v969_v8  ;;  %v1138_v16 = vpop.f32.mrf.mxu1 }
 0x200   :  { %1463 = vst [vmem:[%s3316_s3 + $0x150] sm:$0xff] %v2221_v4 }
 0x201   :  { %2224 = vtanh.f32 %v1305_v7  ;;  %v1139_v0 = vadd.f32 %v1138_v16, %v970_v12 }
 0x204   :  { %v1347_v51 = vpop.f32.mrf.mxu3 }
 0x205   :  { %v2223_v13 = vpop.eup %2222  ;;  %v1348_v14 = vadd.f32 %v1347_v51, %v3129_v63 }
 0x206   :  { %v1307_v45 = vpop.f32.mrf.mxu2  ;;  %1480 = vst [vmem:[%s3316_s3 + $0x1d8] sm:$0xff] %v2223_v13  ;;  %v971_v15 = vpop.f32.mrf.mxu0 }
 0x207   :  { %v2225_v52 = vpop.eup %2224  ;;  %v1308_v31 = vadd.f32 %v1307_v45, %v1139_v0  ;;  %2226 = vtanh.f32 %v1348_v14  ;;  %v1140_v10 = vpop.f32.mrf.mxu1  ;;  %v972_v17 = vadd.f32 %v3092_v34, %v971_v15 }
 0x208   :  { %1464 = vst [vmem:[%s3316_s3 + $0x158] sm:$0xff] %v2225_v52 }
 0x209   :  { %2228 = vtanh.f32 %v1308_v31  ;;  %v1141_v19 = vadd.f32 %v1140_v10, %v972_v17 }
 0x20c   :  { %v1349_v9 = vpop.f32.mrf.mxu3 }
 0x20d   :  { %v2227_v5 = vpop.eup %2226  ;;  %v1350_v21 = vadd.f32 %v1349_v9, %v3161_v23 }
 0x20e   :  { %v1309_v63 = vpop.f32.mrf.mxu2  ;;  %1481 = vst [vmem:[%s3316_s3 + $0x1e0] sm:$0xff] %v2227_v5  ;;  %v974_v33 = vpop.f32.mrf.mxu0 }
 0x20f   :  { %v2229_v25 = vpop.eup %2228  ;;  %v1310_v26 = vadd.f32 %v1309_v63, %v1141_v19  ;;  %2230 = vtanh.f32 %v1350_v21  ;;  %v975_v29 = vadd.f32 %v3092_v34, %v974_v33  ;;  %v1143_v20 = vpop.f32.mrf.mxu1 }
 0x210   :  { %1465 = vst [vmem:[%s3316_s3 + $0x160] sm:$0xff] %v2229_v25 }
 0x211   :  { %2232 = vtanh.f32 %v1310_v26  ;;  %v1144_v32 = vadd.f32 %v1143_v20, %v975_v29 }
 0x214   :  { %v1352_v56 = vpop.f32.mrf.mxu3 }
 0x215   :  { %v2231_v30 = vpop.eup %2230  ;;  %v1353_v28 = vadd.f32 %v1352_v56, %v3169_v40 }
 0x216   :  { %v1312_v23 = vpop.f32.mrf.mxu2  ;;  %1482 = vst [vmem:[%s3316_s3 + $0x1e8] sm:$0xff] %v2231_v30  ;;  %v976_v38 = vpop.f32.mrf.mxu0 }
 0x217   :  { %v2233_v48 = vpop.eup %2232  ;;  %v1313_v37 = vadd.f32 %v1312_v23, %v1144_v32  ;;  %2234 = vtanh.f32 %v1353_v28  ;;  %v977_v24 = vadd.f32 %v3092_v34, %v976_v38  ;;  %v1145_v50 = vpop.f32.mrf.mxu1 }
 0x218   :  { %1466 = vst [vmem:[%s3316_s3 + $0x168] sm:$0xff] %v2233_v48 }
 0x219   :  { %2236 = vtanh.f32 %v1313_v37  ;;  %v1146_v1 = vadd.f32 %v1145_v50, %v977_v24 }
 0x21c   :  { %v1354_v39 = vpop.f32.mrf.mxu3 }
 0x21d   :  { %v2235_v41 = vpop.eup %2234  ;;  %v1355_v42 = vadd.f32 %v1354_v39, %v3177_v57 }
 0x21e   :  { %v1314_v40 = vpop.f32.mrf.mxu2  ;;  %1483 = vst [vmem:[%s3316_s3 + $0x1f0] sm:$0xff] %v2235_v41 }
 0x21f   :  { %v2237_v44 = vpop.eup %2236  ;;  %v1315_v43 = vadd.f32 %v1314_v40, %v1146_v1  ;;  %2238 = vtanh.f32 %v1355_v42 }
 0x220   :  { %1467 = vst [vmem:[%s3316_s3 + $0x170] sm:$0xff] %v2237_v44 }
 0x221   :  { %2240 = vtanh.f32 %v1315_v43 }
 0x225   :  { %v2239_v34 = vpop.eup %2238 }
 0x226   :  { %1484 = vst [vmem:[%s3316_s3 + $0x1f8] sm:$0xff] %v2239_v34 }
 0x227   :  { %v2241_v46 = vpop.eup %2240 }
 0x228   :  { %1468 = vst [vmem:[%s3316_s3 + $0x178] sm:$0xff] %v2241_v46 }

// kernel: _forward_impl.14
= control target key start
LH: loop header
LB: loop body
LE: loop exit
PB: predicated region body
PF: predicated region fallthrough
CT: control target
= control target key end

     0   :  { %s1637_s12 = smov 0   ;;  %s1639_s13 = smov 0   ;;  %s1841_s0 = inlined_call_operand.vmem [shape: bf16[1024,128], index: 0, kind: input, shape index: {}]   ;;  %s1842_s1 = inlined_call_operand.vmem [shape: bf16[128,128], index: 1, kind: input, shape index: {}]   ;;  %s1843_s2 = inlined_call_operand.vmem [shape: f32[1,128], index: 2, kind: input, shape index: {}]   ;;  %s1844_s3 = inlined_call_operand.vmem [shape: bf16[1024,128], index: 3, kind: output, shape index: {}]  }
   0x1   :  { %s1641_s14 = smov 0  }
   0x2 LB: > { %s25_s15 = sadd.s32 1, %s1611_s13  ;;  %p1146_p0 = scmp.ge.s32.totalorder %s1615_s14, 1  ;;  %s1615_s14 = sphi %s1641_s14, %s13_s14   ;;  %s1611_s13 = sphi %s1639_s13, %s1846_s13   ;;  %s1607_s12 = sphi %s1637_s12, %s1845_s12  }
   0x3   : > { %p27_p1 = scmp.ge.s32.totalorder %s25_s15, 2  ;;  %p169_p2 = scmp.lt.s32.totalorder %s1615_s14, 3 }
   0x5   : > { %s1848_s15 = smov (%p27_p1, %s25_s15), 0  ;;  %p170_p3 = pnand %p1146_p0, %p169_p2 }
   0x6   : > { %s1147_s24 = sshll.u32 (!%p170_p3), %s1607_s12, 6 }
   0x7   : > { %173 = sbr.rel (%p170_p3) target bundleno = 306 (0x132), region = 32  ;;  %p204_p4 = scmp.lt.s32.totalorder (!%p170_p3), %s1147_s24, 127 }
   0xc   : > { %v1352_v0 = vld [vmem:[%s1842_s1 + $0x38] sm:$0xff]  ;;  %v1351_v1 = vld [vmem:[%s1842_s1 + $0x30] sm:$0xff]  ;;  %v1350_v2 = vld [vmem:[%s1842_s1 + $0x28] sm:$0xff]  ;;  %s1850_s24 = smov (!%p204_p4, %s1147_s24), 127 }
   0xd   : > { %549 = vmatpush.bf16.msra.mxu0 %v1352_v0  ;;  %1544 = vmatpush.bf16.msra.mxu1 %v1352_v0  ;;  %v1349_v3 = vld [vmem:[%s1842_s1 + $0x20] sm:$0xff]  ;;  %v1348_v4 = vld [vmem:[%s1842_s1 + $0x18] sm:$0xff]  ;;  %v1347_v5 = vld [vmem:[%s1842_s1 + $0x10] sm:$0xff]  ;;  %s1148_s4 = sshll.u32 %s1850_s24, 2 }
   0xe   : > { %1545 = vmatpush.bf16.msra.mxu2 %v1352_v0  ;;  %1546 = vmatpush.bf16.msra.mxu3 %v1352_v0  ;;  %v1346_v6 = vld [vmem:[%s1842_s1 + $0x8] sm:$0xff]  ;;  %v1345_v7 = vld [vmem:[%s1842_s1] sm:$0xff]  ;;  %s1690_s9 = scalar_lea.vmem %s1841_s0, %s1148_s4  ;;  %s1740_s17 = scalar_lea.vmem %s1844_s3, %s1148_s4 }
   0xf   : > { %v1313_v8 = vld [vmem:[%s1690_s9] sm:$0xff]  ;;  %v1314_v12 = vld [vmem:[%s1690_s9 + $0x8] sm:$0xff]  ;;  %v1315_v16 = vld [vmem:[%s1690_s9 + $0x10] sm:$0xff] }
  0x10   : > { %v1321_v9 = vld [vmem:[%s1690_s9 + $0x40] sm:$0xff]  ;;  %v1322_v13 = vld [vmem:[%s1690_s9 + $0x48] sm:$0xff]  ;;  %v1323_v17 = vld [vmem:[%s1690_s9 + $0x50] sm:$0xff] }
  0x11   : > { %550 = vmatpush.bf16.msra.mxu0 %v1351_v1  ;;  %1547 = vmatpush.bf16.msra.mxu1 %v1351_v1  ;;  %v1329_v10 = vld [vmem:[%s1690_s9 + $0x80] sm:$0xff]  ;;  %v1330_v14 = vld [vmem:[%s1690_s9 + $0x88] sm:$0xff]  ;;  %v1331_v18 = vld [vmem:[%s1690_s9 + $0x90] sm:$0xff] }
  0x12   : > { %1548 = vmatpush.bf16.msra.mxu2 %v1351_v1  ;;  %1549 = vmatpush.bf16.msra.mxu3 %v1351_v1  ;;  %v1337_v11 = vld [vmem:[%s1690_s9 + $0xc0] sm:$0xff]  ;;  %v1338_v15 = vld [vmem:[%s1690_s9 + $0xc8] sm:$0xff]  ;;  %v1339_v19 = vld [vmem:[%s1690_s9 + $0xd0] sm:$0xff] }
  0x13   : > { %v1316_v20 = vld [vmem:[%s1690_s9 + $0x18] sm:$0xff]  ;;  %v1317_v24 = vld [vmem:[%s1690_s9 + $0x20] sm:$0xff]  ;;  %v1318_v28 = vld [vmem:[%s1690_s9 + $0x28] sm:$0xff] }
  0x14   : > { %v1324_v21 = vld [vmem:[%s1690_s9 + $0x58] sm:$0xff]  ;;  %v1325_v25 = vld [vmem:[%s1690_s9 + $0x60] sm:$0xff]  ;;  %v1326_v29 = vld [vmem:[%s1690_s9 + $0x68] sm:$0xff] }
  0x15   : > { %551 = vmatpush.bf16.msra.mxu0 %v1350_v2  ;;  %1550 = vmatpush.bf16.msra.mxu1 %v1350_v2  ;;  %v1332_v22 = vld [vmem:[%s1690_s9 + $0x98] sm:$0xff]  ;;  %v1333_v26 = vld [vmem:[%s1690_s9 + $0xa0] sm:$0xff]  ;;  %v1334_v30 = vld [vmem:[%s1690_s9 + $0xa8] sm:$0xff] }
  0x16   : > { %1551 = vmatpush.bf16.msra.mxu2 %v1350_v2  ;;  %1552 = vmatpush.bf16.msra.mxu3 %v1350_v2  ;;  %v1340_v23 = vld [vmem:[%s1690_s9 + $0xd8] sm:$0xff]  ;;  %v1341_v27 = vld [vmem:[%s1690_s9 + $0xe0] sm:$0xff]  ;;  %v1342_v31 = vld [vmem:[%s1690_s9 + $0xe8] sm:$0xff] }
  0x17   : > { %v1319_v32 = vld [vmem:[%s1690_s9 + $0x30] sm:$0xff]  ;;  %v1320_v36 = vld [vmem:[%s1690_s9 + $0x38] sm:$0xff]  ;;  %v1727_v42 = vld [vmem:[%s1843_s2] ss:$0 sm:$0xff] }
  0x18   : > { %v1327_v33 = vld [vmem:[%s1690_s9 + $0x70] sm:$0xff]  ;;  %v1328_v37 = vld [vmem:[%s1690_s9 + $0x78] sm:$0xff] }
  0x19   : > { %552 = vmatpush.bf16.msra.mxu0 %v1349_v3  ;;  %1553 = vmatpush.bf16.msra.mxu1 %v1349_v3  ;;  %v1335_v34 = vld [vmem:[%s1690_s9 + $0xb0] sm:$0xff]  ;;  %v1336_v38 = vld [vmem:[%s1690_s9 + $0xb8] sm:$0xff] }
  0x1a   : > { %1554 = vmatpush.bf16.msra.mxu2 %v1349_v3  ;;  %1555 = vmatpush.bf16.msra.mxu3 %v1349_v3  ;;  %v1343_v35 = vld [vmem:[%s1690_s9 + $0xf0] sm:$0xff]  ;;  %v1344_v39 = vld [vmem:[%s1690_s9 + $0xf8] sm:$0xff] }
  0x1d   : > { %553 = vmatpush.bf16.msra.mxu0 %v1348_v4  ;;  %1556 = vmatpush.bf16.msra.mxu1 %v1348_v4 }
  0x1e   : > { %1557 = vmatpush.bf16.msra.mxu2 %v1348_v4  ;;  %1558 = vmatpush.bf16.msra.mxu3 %v1348_v4 }
  0x21   : > { %554 = vmatpush.bf16.msra.mxu0 %v1347_v5  ;;  %1559 = vmatpush.bf16.msra.mxu1 %v1347_v5 }
  0x22   : > { %1560 = vmatpush.bf16.msra.mxu2 %v1347_v5  ;;  %1561 = vmatpush.bf16.msra.mxu3 %v1347_v5 }
  0x25   : > { %555 = vmatpush.bf16.msra.mxu0 %v1346_v6  ;;  %1562 = vmatpush.bf16.msra.mxu1 %v1346_v6 }
  0x26   : > { %1563 = vmatpush.bf16.msra.mxu2 %v1346_v6  ;;  %1564 = vmatpush.bf16.msra.mxu3 %v1346_v6 }
  0x29   : > { %556 = vmatpush.bf16.msra.mxu0 %v1345_v7  ;;  %1565 = vmatpush.bf16.msra.mxu1 %v1345_v7 }
  0x2a   : > { %1566 = vmatpush.bf16.msra.mxu2 %v1345_v7  ;;  %1567 = vmatpush.bf16.msra.mxu3 %v1345_v7 }
  0x2c   : > { %557 = vmatmul.bf16.vlgmr.msra.gmra.mxu0 %v1313_v8  ;;  %597 = vmatmul.bf16.vlgmr.msra.gmra.mxu1 %v1321_v9 }
  0x2d   : > { %637 = vmatmul.bf16.vlgmr.msra.gmra.mxu2 %v1329_v10  ;;  %677 = vmatmul.bf16.vlgmr.msra.gmra.mxu3 %v1337_v11 }
  0x3c   : > { %562 = vmatmul.bf16.gmra.mxu0 %v1314_v12  ;;  %602 = vmatmul.bf16.gmra.mxu1 %v1322_v13 }
  0x3d   : > { %642 = vmatmul.bf16.gmra.mxu2 %v1330_v14  ;;  %682 = vmatmul.bf16.gmra.mxu3 %v1338_v15 }
  0x4c   : > { %567 = vmatmul.bf16.gmra.mxu0 %v1315_v16  ;;  %607 = vmatmul.bf16.gmra.mxu1 %v1323_v17 }
  0x4d   : > { %647 = vmatmul.bf16.gmra.mxu2 %v1331_v18  ;;  %687 = vmatmul.bf16.gmra.mxu3 %v1339_v19 }
  0x5c   : > { %572 = vmatmul.bf16.gmra.mxu0 %v1316_v20  ;;  %612 = vmatmul.bf16.gmra.mxu1 %v1324_v21 }
  0x5d   : > { %652 = vmatmul.bf16.gmra.mxu2 %v1332_v22  ;;  %692 = vmatmul.bf16.gmra.mxu3 %v1340_v23 }
  0x6c   : > { %577 = vmatmul.bf16.gmra.mxu0 %v1317_v24  ;;  %617 = vmatmul.bf16.gmra.mxu1 %v1325_v25 }
  0x6d   : > { %657 = vmatmul.bf16.gmra.mxu2 %v1333_v26  ;;  %697 = vmatmul.bf16.gmra.mxu3 %v1341_v27 }
  0x7c   : > { %582 = vmatmul.bf16.gmra.mxu0 %v1318_v28  ;;  %622 = vmatmul.bf16.gmra.mxu1 %v1326_v29 }
  0x7d   : > { %662 = vmatmul.bf16.gmra.mxu2 %v1334_v30  ;;  %702 = vmatmul.bf16.gmra.mxu3 %v1342_v31 }
  0x8c   : > { %587 = vmatmul.bf16.gmra.mxu0 %v1319_v32  ;;  %627 = vmatmul.bf16.gmra.mxu1 %v1327_v33 }
  0x8d   : > { %667 = vmatmul.bf16.gmra.mxu2 %v1335_v34  ;;  %707 = vmatmul.bf16.gmra.mxu3 %v1343_v35 }
  0x9c   : > { %592 = vmatmul.bf16.gmra.mxu0 %v1320_v36  ;;  %632 = vmatmul.bf16.gmra.mxu1 %v1328_v37 }
  0x9d   : > { %672 = vmatmul.bf16.gmra.mxu2 %v1336_v38  ;;  %712 = vmatmul.bf16.gmra.mxu3 %v1344_v39 }
  0xa9   : > { %v558_v40 = vpop.f32.mrf.mxu0  ;;  %v598_v41 = vpop.f32.mrf.mxu1 }
  0xaa   : > { %v559_v43 = vadd.f32 %v1727_v42, %v558_v40  ;;  %v599_v44 = vadd.f32 %v1727_v42, %v598_v41 }
  0xac   : > { %v782_v49 = vmul.f32 0.2, %v559_v43  ;;  %v798_v50 = vmul.f32 0.2, %v599_v44  ;;  %vm718_vm0 = vcmp.gt.f32.partialorder %v559_v43, 0.0  ;;  %vm734_vm1 = vcmp.gt.f32.partialorder %v599_v44, 0.0 }
  0xae   : > { %v846_v57 = vsel %vm718_vm0, %v559_v43, %v782_v49  ;;  %v862_v58 = vsel %vm734_vm1, %v599_v44, %v798_v50 }
  0xb0   : > { %v638_v45 = vpop.f32.mrf.mxu2  ;;  %v678_v46 = vpop.f32.mrf.mxu3 }
  0xb1   : > { %v560_v47 = vpop.f32.mrf.mxu0  ;;  %v600_v48 = vpop.f32.mrf.mxu1  ;;  %v639_v55 = vadd.f32 %v1727_v42, %v638_v45  ;;  %v679_v56 = vadd.f32 %v1727_v42, %v678_v46 }
  0xb2   : > { %v561_v51 = vadd.f32 %v1727_v42, %v560_v47  ;;  %v601_v52 = vadd.f32 %v1727_v42, %v600_v48 }
  0xb3   : > { %v814_v1 = vmul.f32 0.2, %v639_v55  ;;  %v830_v2 = vmul.f32 0.2, %v679_v56  ;;  %vm750_vm4 = vcmp.gt.f32.partialorder %v639_v55, 0.0  ;;  %vm766_vm5 = vcmp.gt.f32.partialorder %v679_v56, 0.0 }
  0xb4   : > { %vm719_vm2 = vcmp.gt.f32.partialorder %v561_v51, 0.0  ;;  %v783_v53 = vmul.f32 0.2, %v561_v51  ;;  %vm735_vm3 = vcmp.gt.f32.partialorder %v601_v52, 0.0  ;;  %v799_v54 = vmul.f32 0.2, %v601_v52 }
  0xb5   : > { %v878_v9 = vsel %vm750_vm4, %v639_v55, %v814_v1  ;;  %v894_v10 = vsel %vm766_vm5, %v679_v56, %v830_v2 }
  0xb6   : > { %v847_v59 = vsel %vm719_vm2, %v561_v51, %v783_v53  ;;  %v863_v60 = vsel %vm735_vm3, %v601_v52, %v799_v54 }
  0xb7   : > { %v1356_v61 = vpack.c.bf16 %v847_v59, %v846_v57  ;;  %v1396_v62 = vpack.c.bf16 %v863_v60, %v862_v58 }
  0xb8   : > { %v640_v63 = vpop.f32.mrf.mxu2  ;;  %v680_v0 = vpop.f32.mrf.mxu3 }
  0xb9   : > { %1357 = vst [vmem:[%s1740_s17] sm:$0xff] %v1356_v61   ;;  %v641_v3 = vadd.f32 %v1727_v42, %v640_v63  ;;  %v681_v4 = vadd.f32 %v1727_v42, %v680_v0  ;;  %v563_v5 = vpop.f32.mrf.mxu0  ;;  %v603_v6 = vpop.f32.mrf.mxu1 }
  0xba   : > { %1520 = vst [vmem:[%s1740_s17 + $0x40] sm:$0xff] %v1396_v62   ;;  %v564_v15 = vadd.f32 %v1727_v42, %v563_v5  ;;  %v604_v16 = vadd.f32 %v1727_v42, %v603_v6 }
  0xbb   : > { %vm751_vm6 = vcmp.gt.f32.partialorder %v641_v3, 0.0  ;;  %v815_v7 = vmul.f32 0.2, %v641_v3  ;;  %vm767_vm7 = vcmp.gt.f32.partialorder %v681_v4, 0.0  ;;  %v831_v8 = vmul.f32 0.2, %v681_v4 }
  0xbc   : > { %v784_v21 = vmul.f32 0.2, %v564_v15  ;;  %v800_v22 = vmul.f32 0.2, %v604_v16  ;;  %vm720_vm8 = vcmp.gt.f32.partialorder %v564_v15, 0.0  ;;  %vm736_vm9 = vcmp.gt.f32.partialorder %v604_v16, 0.0 }
  0xbd   : > { %v879_v11 = vsel %vm751_vm6, %v641_v3, %v815_v7  ;;  %v895_v12 = vsel %vm767_vm7, %v681_v4, %v831_v8 }
  0xbe   : > { %v1436_v13 = vpack.c.bf16 %v879_v11, %v878_v9  ;;  %v1476_v14 = vpack.c.bf16 %v895_v12, %v894_v10  ;;  %v848_v29 = vsel %vm720_vm8, %v564_v15, %v784_v21  ;;  %v864_v30 = vsel %vm736_vm9, %v604_v16, %v800_v22 }
  0xc0   : > { %1528 = vst [vmem:[%s1740_s17 + $0x80] sm:$0xff] %v1436_v13   ;;  %v643_v17 = vpop.f32.mrf.mxu2  ;;  %v683_v18 = vpop.f32.mrf.mxu3 }
  0xc1   : > { %1536 = vst [vmem:[%s1740_s17 + $0xc0] sm:$0xff] %v1476_v14   ;;  %v565_v19 = vpop.f32.mrf.mxu0  ;;  %v605_v20 = vpop.f32.mrf.mxu1  ;;  %v644_v27 = vadd.f32 %v1727_v42, %v643_v17  ;;  %v684_v28 = vadd.f32 %v1727_v42, %v683_v18 }
  0xc2   : > { %v566_v23 = vadd.f32 %v1727_v42, %v565_v19  ;;  %v606_v24 = vadd.f32 %v1727_v42, %v605_v20 }
  0xc3   : > { %v816_v37 = vmul.f32 0.2, %v644_v27  ;;  %v832_v38 = vmul.f32 0.2, %v684_v28  ;;  %vm752_vm12 = vcmp.gt.f32.partialorder %v644_v27, 0.0  ;;  %vm768_vm13 = vcmp.gt.f32.partialorder %v684_v28, 0.0 }
  0xc4   : > { %vm721_vm10 = vcmp.gt.f32.partialorder %v566_v23, 0.0  ;;  %v785_v25 = vmul.f32 0.2, %v566_v23  ;;  %vm737_vm11 = vcmp.gt.f32.partialorder %v606_v24, 0.0  ;;  %v801_v26 = vmul.f32 0.2, %v606_v24 }
  0xc5   : > { %v880_v46 = vsel %vm752_vm12, %v644_v27, %v816_v37  ;;  %v896_v47 = vsel %vm768_vm13, %v684_v28, %v832_v38 }
  0xc6   : > { %v849_v31 = vsel %vm721_vm10, %v566_v23, %v785_v25  ;;  %v865_v32 = vsel %vm737_vm11, %v606_v24, %v801_v26 }
  0xc7   : > { %v1361_v33 = vpack.c.bf16 %v849_v31, %v848_v29  ;;  %v1401_v34 = vpack.c.bf16 %v865_v32, %v864_v30 }
  0xc8   : > { %v645_v35 = vpop.f32.mrf.mxu2  ;;  %v685_v36 = vpop.f32.mrf.mxu3 }
  0xc9   : > { %1513 = vst [vmem:[%s1740_s17 + $0x8] sm:$0xff] %v1361_v33   ;;  %v646_v39 = vadd.f32 %v1727_v42, %v645_v35  ;;  %v686_v40 = vadd.f32 %v1727_v42, %v685_v36  ;;  %v568_v41 = vpop.f32.mrf.mxu0  ;;  %v608_v43 = vpop.f32.mrf.mxu1 }
  0xca   : > { %1521 = vst [vmem:[%s1740_s17 + $0x48] sm:$0xff] %v1401_v34   ;;  %v569_v52 = vadd.f32 %v1727_v42, %v568_v41  ;;  %v609_v53 = vadd.f32 %v1727_v42, %v608_v43 }
  0xcb   : > { %vm753_vm14 = vcmp.gt.f32.partialorder %v646_v39, 0.0  ;;  %v817_v44 = vmul.f32 0.2, %v646_v39  ;;  %vm769_vm15 = vcmp.gt.f32.partialorder %v686_v40, 0.0  ;;  %v833_v45 = vmul.f32 0.2, %v686_v40 }
  0xcc   : > { %v786_v58 = vmul.f32 0.2, %v569_v52  ;;  %v802_v59 = vmul.f32 0.2, %v609_v53  ;;  %vm722_vm0 = vcmp.gt.f32.partialorder %v569_v52, 0.0  ;;  %vm738_vm1 = vcmp.gt.f32.partialorder %v609_v53, 0.0 }
  0xcd   : > { %v881_v48 = vsel %vm753_vm14, %v646_v39, %v817_v44  ;;  %v897_v49 = vsel %vm769_vm15, %v686_v40, %v833_v45 }
  0xce   : > { %v1441_v50 = vpack.c.bf16 %v881_v48, %v880_v46  ;;  %v1481_v51 = vpack.c.bf16 %v897_v49, %v896_v47  ;;  %v850_v2 = vsel %vm722_vm0, %v569_v52, %v786_v58  ;;  %v866_v3 = vsel %vm738_vm1, %v609_v53, %v802_v59 }
  0xd0   : > { %1529 = vst [vmem:[%s1740_s17 + $0x88] sm:$0xff] %v1441_v50   ;;  %v648_v54 = vpop.f32.mrf.mxu2  ;;  %v688_v55 = vpop.f32.mrf.mxu3 }
  0xd1   : > { %1537 = vst [vmem:[%s1740_s17 + $0xc8] sm:$0xff] %v1481_v51   ;;  %v570_v56 = vpop.f32.mrf.mxu0  ;;  %v610_v57 = vpop.f32.mrf.mxu1  ;;  %v649_v0 = vadd.f32 %v1727_v42, %v648_v54  ;;  %v689_v1 = vadd.f32 %v1727_v42, %v688_v55 }
  0xd2   : > { %v571_v60 = vadd.f32 %v1727_v42, %v570_v56  ;;  %v611_v61 = vadd.f32 %v1727_v42, %v610_v57 }
  0xd3   : > { %v818_v10 = vmul.f32 0.2, %v649_v0  ;;  %v834_v11 = vmul.f32 0.2, %v689_v1  ;;  %vm754_vm4 = vcmp.gt.f32.partialorder %v649_v0, 0.0  ;;  %vm770_vm5 = vcmp.gt.f32.partialorder %v689_v1, 0.0 }
  0xd4   : > { %vm723_vm2 = vcmp.gt.f32.partialorder %v571_v60, 0.0  ;;  %v787_v62 = vmul.f32 0.2, %v571_v60  ;;  %vm739_vm3 = vcmp.gt.f32.partialorder %v611_v61, 0.0  ;;  %v803_v63 = vmul.f32 0.2, %v611_v61 }
  0xd5   : > { %v882_v18 = vsel %vm754_vm4, %v649_v0, %v818_v10  ;;  %v898_v19 = vsel %vm770_vm5, %v689_v1, %v834_v11 }
  0xd6   : > { %v851_v4 = vsel %vm723_vm2, %v571_v60, %v787_v62  ;;  %v867_v5 = vsel %vm739_vm3, %v611_v61, %v803_v63 }
  0xd7   : > { %v1366_v6 = vpack.c.bf16 %v851_v4, %v850_v2  ;;  %v1406_v7 = vpack.c.bf16 %v867_v5, %v866_v3 }
  0xd8   : > { %v650_v8 = vpop.f32.mrf.mxu2  ;;  %v690_v9 = vpop.f32.mrf.mxu3 }
  0xd9   : > { %1514 = vst [vmem:[%s1740_s17 + $0x10] sm:$0xff] %v1366_v6   ;;  %v651_v12 = vadd.f32 %v1727_v42, %v650_v8  ;;  %v691_v13 = vadd.f32 %v1727_v42, %v690_v9  ;;  %v573_v14 = vpop.f32.mrf.mxu0  ;;  %v613_v15 = vpop.f32.mrf.mxu1 }
  0xda   : > { %1522 = vst [vmem:[%s1740_s17 + $0x50] sm:$0xff] %v1406_v7   ;;  %v574_v24 = vadd.f32 %v1727_v42, %v573_v14  ;;  %v614_v25 = vadd.f32 %v1727_v42, %v613_v15 }
  0xdb   : > { %vm755_vm6 = vcmp.gt.f32.partialorder %v651_v12, 0.0  ;;  %v819_v16 = vmul.f32 0.2, %v651_v12  ;;  %vm771_vm7 = vcmp.gt.f32.partialorder %v691_v13, 0.0  ;;  %v835_v17 = vmul.f32 0.2, %v691_v13 }
  0xdc   : > { %v788_v30 = vmul.f32 0.2, %v574_v24  ;;  %v804_v31 = vmul.f32 0.2, %v614_v25  ;;  %vm724_vm8 = vcmp.gt.f32.partialorder %v574_v24, 0.0  ;;  %vm740_vm9 = vcmp.gt.f32.partialorder %v614_v25, 0.0 }
  0xdd   : > { %v883_v20 = vsel %vm755_vm6, %v651_v12, %v819_v16  ;;  %v899_v21 = vsel %vm771_vm7, %v691_v13, %v835_v17 }
  0xde   : > { %v1446_v22 = vpack.c.bf16 %v883_v20, %v882_v18  ;;  %v1486_v23 = vpack.c.bf16 %v899_v21, %v898_v19  ;;  %v852_v38 = vsel %vm724_vm8, %v574_v24, %v788_v30  ;;  %v868_v39 = vsel %vm740_vm9, %v614_v25, %v804_v31 }
  0xe0   : > { %1530 = vst [vmem:[%s1740_s17 + $0x90] sm:$0xff] %v1446_v22   ;;  %v653_v26 = vpop.f32.mrf.mxu2  ;;  %v693_v27 = vpop.f32.mrf.mxu3 }
  0xe1   : > { %1538 = vst [vmem:[%s1740_s17 + $0xd0] sm:$0xff] %v1486_v23   ;;  %v575_v28 = vpop.f32.mrf.mxu0  ;;  %v615_v29 = vpop.f32.mrf.mxu1  ;;  %v654_v36 = vadd.f32 %v1727_v42, %v653_v26  ;;  %v694_v37 = vadd.f32 %v1727_v42, %v693_v27 }
  0xe2   : > { %v576_v32 = vadd.f32 %v1727_v42, %v575_v28  ;;  %v616_v33 = vadd.f32 %v1727_v42, %v615_v29 }
  0xe3   : > { %v820_v47 = vmul.f32 0.2, %v654_v36  ;;  %v836_v48 = vmul.f32 0.2, %v694_v37  ;;  %vm756_vm12 = vcmp.gt.f32.partialorder %v654_v36, 0.0  ;;  %vm772_vm13 = vcmp.gt.f32.partialorder %v694_v37, 0.0 }
  0xe4   : > { %vm725_vm10 = vcmp.gt.f32.partialorder %v576_v32, 0.0  ;;  %v789_v34 = vmul.f32 0.2, %v576_v32  ;;  %vm741_vm11 = vcmp.gt.f32.partialorder %v616_v33, 0.0  ;;  %v805_v35 = vmul.f32 0.2, %v616_v33 }
  0xe5   : > { %v884_v55 = vsel %vm756_vm12, %v654_v36, %v820_v47  ;;  %v900_v56 = vsel %vm772_vm13, %v694_v37, %v836_v48 }
  0xe6   : > { %v853_v40 = vsel %vm725_vm10, %v576_v32, %v789_v34  ;;  %v869_v41 = vsel %vm741_vm11, %v616_v33, %v805_v35 }
  0xe7   : > { %v1371_v43 = vpack.c.bf16 %v853_v40, %v852_v38  ;;  %v1411_v44 = vpack.c.bf16 %v869_v41, %v868_v39 }
  0xe8   : > { %v655_v45 = vpop.f32.mrf.mxu2  ;;  %v695_v46 = vpop.f32.mrf.mxu3 }
  0xe9   : > { %1515 = vst [vmem:[%s1740_s17 + $0x18] sm:$0xff] %v1371_v43   ;;  %v656_v49 = vadd.f32 %v1727_v42, %v655_v45  ;;  %v696_v50 = vadd.f32 %v1727_v42, %v695_v46  ;;  %v578_v51 = vpop.f32.mrf.mxu0  ;;  %v618_v52 = vpop.f32.mrf.mxu1 }
  0xea   : > { %1523 = vst [vmem:[%s1740_s17 + $0x58] sm:$0xff] %v1411_v44   ;;  %v579_v61 = vadd.f32 %v1727_v42, %v578_v51  ;;  %v619_v62 = vadd.f32 %v1727_v42, %v618_v52 }
  0xeb   : > { %vm757_vm14 = vcmp.gt.f32.partialorder %v656_v49, 0.0  ;;  %v821_v53 = vmul.f32 0.2, %v656_v49  ;;  %vm773_vm15 = vcmp.gt.f32.partialorder %v696_v50, 0.0  ;;  %v837_v54 = vmul.f32 0.2, %v696_v50 }
  0xec   : > { %v790_v3 = vmul.f32 0.2, %v579_v61  ;;  %v806_v4 = vmul.f32 0.2, %v619_v62  ;;  %vm726_vm0 = vcmp.gt.f32.partialorder %v579_v61, 0.0  ;;  %vm742_vm1 = vcmp.gt.f32.partialorder %v619_v62, 0.0 }
  0xed   : > { %v885_v57 = vsel %vm757_vm14, %v656_v49, %v821_v53  ;;  %v901_v58 = vsel %vm773_vm15, %v696_v50, %v837_v54 }
  0xee   : > { %v1451_v59 = vpack.c.bf16 %v885_v57, %v884_v55  ;;  %v1491_v60 = vpack.c.bf16 %v901_v58, %v900_v56  ;;  %v854_v11 = vsel %vm726_vm0, %v579_v61, %v790_v3  ;;  %v870_v12 = vsel %vm742_vm1, %v619_v62, %v806_v4 }
  0xf0   : > { %1531 = vst [vmem:[%s1740_s17 + $0x98] sm:$0xff] %v1451_v59   ;;  %v658_v63 = vpop.f32.mrf.mxu2  ;;  %v698_v0 = vpop.f32.mrf.mxu3 }
  0xf1   : > { %1539 = vst [vmem:[%s1740_s17 + $0xd8] sm:$0xff] %v1491_v60   ;;  %v580_v1 = vpop.f32.mrf.mxu0  ;;  %v620_v2 = vpop.f32.mrf.mxu1  ;;  %v659_v9 = vadd.f32 %v1727_v42, %v658_v63  ;;  %v699_v10 = vadd.f32 %v1727_v42, %v698_v0 }
  0xf2   : > { %v581_v5 = vadd.f32 %v1727_v42, %v580_v1  ;;  %v621_v6 = vadd.f32 %v1727_v42, %v620_v2 }
  0xf3   : > { %v822_v19 = vmul.f32 0.2, %v659_v9  ;;  %v838_v20 = vmul.f32 0.2, %v699_v10  ;;  %vm758_vm4 = vcmp.gt.f32.partialorder %v659_v9, 0.0  ;;  %vm774_vm5 = vcmp.gt.f32.partialorder %v699_v10, 0.0 }
  0xf4   : > { %vm727_vm2 = vcmp.gt.f32.partialorder %v581_v5, 0.0  ;;  %v791_v7 = vmul.f32 0.2, %v581_v5  ;;  %vm743_vm3 = vcmp.gt.f32.partialorder %v621_v6, 0.0  ;;  %v807_v8 = vmul.f32 0.2, %v621_v6 }
  0xf5   : > { %v886_v27 = vsel %vm758_vm4, %v659_v9, %v822_v19  ;;  %v902_v28 = vsel %vm774_vm5, %v699_v10, %v838_v20 }
  0xf6   : > { %v855_v13 = vsel %vm727_vm2, %v581_v5, %v791_v7  ;;  %v871_v14 = vsel %vm743_vm3, %v621_v6, %v807_v8 }
  0xf7   : > { %v1376_v15 = vpack.c.bf16 %v855_v13, %v854_v11  ;;  %v1416_v16 = vpack.c.bf16 %v871_v14, %v870_v12 }
  0xf8   : > { %v660_v17 = vpop.f32.mrf.mxu2  ;;  %v700_v18 = vpop.f32.mrf.mxu3 }
  0xf9   : > { %1516 = vst [vmem:[%s1740_s17 + $0x20] sm:$0xff] %v1376_v15   ;;  %v661_v21 = vadd.f32 %v1727_v42, %v660_v17  ;;  %v701_v22 = vadd.f32 %v1727_v42, %v700_v18  ;;  %v583_v23 = vpop.f32.mrf.mxu0  ;;  %v623_v24 = vpop.f32.mrf.mxu1 }
  0xfa   : > { %1524 = vst [vmem:[%s1740_s17 + $0x60] sm:$0xff] %v1416_v16   ;;  %v584_v33 = vadd.f32 %v1727_v42, %v583_v23  ;;  %v624_v34 = vadd.f32 %v1727_v42, %v623_v24 }
  0xfb   : > { %vm759_vm6 = vcmp.gt.f32.partialorder %v661_v21, 0.0  ;;  %v823_v25 = vmul.f32 0.2, %v661_v21  ;;  %vm775_vm7 = vcmp.gt.f32.partialorder %v701_v22, 0.0  ;;  %v839_v26 = vmul.f32 0.2, %v701_v22 }
  0xfc   : > { %v792_v39 = vmul.f32 0.2, %v584_v33  ;;  %v808_v40 = vmul.f32 0.2, %v624_v34  ;;  %vm728_vm8 = vcmp.gt.f32.partialorder %v584_v33, 0.0  ;;  %vm744_vm9 = vcmp.gt.f32.partialorder %v624_v34, 0.0 }
  0xfd   : > { %v887_v29 = vsel %vm759_vm6, %v661_v21, %v823_v25  ;;  %v903_v30 = vsel %vm775_vm7, %v701_v22, %v839_v26 }
  0xfe   : > { %v1456_v31 = vpack.c.bf16 %v887_v29, %v886_v27  ;;  %v1496_v32 = vpack.c.bf16 %v903_v30, %v902_v28  ;;  %v856_v48 = vsel %vm728_vm8, %v584_v33, %v792_v39  ;;  %v872_v49 = vsel %vm744_vm9, %v624_v34, %v808_v40 }
 0x100   : > { %1532 = vst [vmem:[%s1740_s17 + $0xa0] sm:$0xff] %v1456_v31   ;;  %v663_v35 = vpop.f32.mrf.mxu2  ;;  %v703_v36 = vpop.f32.mrf.mxu3 }
 0x101   : > { %1540 = vst [vmem:[%s1740_s17 + $0xe0] sm:$0xff] %v1496_v32   ;;  %v585_v37 = vpop.f32.mrf.mxu0  ;;  %v625_v38 = vpop.f32.mrf.mxu1  ;;  %v664_v46 = vadd.f32 %v1727_v42, %v663_v35  ;;  %v704_v47 = vadd.f32 %v1727_v42, %v703_v36 }
 0x102   : > { %v586_v41 = vadd.f32 %v1727_v42, %v585_v37  ;;  %v626_v43 = vadd.f32 %v1727_v42, %v625_v38 }
 0x103   : > { %v824_v56 = vmul.f32 0.2, %v664_v46  ;;  %v840_v57 = vmul.f32 0.2, %v704_v47  ;;  %vm760_vm12 = vcmp.gt.f32.partialorder %v664_v46, 0.0  ;;  %vm776_vm13 = vcmp.gt.f32.partialorder %v704_v47, 0.0 }
 0x104   : > { %vm729_vm10 = vcmp.gt.f32.partialorder %v586_v41, 0.0  ;;  %v793_v44 = vmul.f32 0.2, %v586_v41  ;;  %vm745_vm11 = vcmp.gt.f32.partialorder %v626_v43, 0.0  ;;  %v809_v45 = vmul.f32 0.2, %v626_v43 }
 0x105   : > { %v888_v0 = vsel %vm760_vm12, %v664_v46, %v824_v56  ;;  %v904_v1 = vsel %vm776_vm13, %v704_v47, %v840_v57 }
 0x106   : > { %v857_v50 = vsel %vm729_vm10, %v586_v41, %v793_v44  ;;  %v873_v51 = vsel %vm745_vm11, %v626_v43, %v809_v45 }
 0x107   : > { %v1381_v52 = vpack.c.bf16 %v857_v50, %v856_v48  ;;  %v1421_v53 = vpack.c.bf16 %v873_v51, %v872_v49 }
 0x108   : > { %v665_v54 = vpop.f32.mrf.mxu2  ;;  %v705_v55 = vpop.f32.mrf.mxu3 }
 0x109   : > { %1517 = vst [vmem:[%s1740_s17 + $0x28] sm:$0xff] %v1381_v52   ;;  %v666_v58 = vadd.f32 %v1727_v42, %v665_v54  ;;  %v706_v59 = vadd.f32 %v1727_v42, %v705_v55  ;;  %v588_v60 = vpop.f32.mrf.mxu0  ;;  %v628_v61 = vpop.f32.mrf.mxu1 }
 0x10a   : > { %1525 = vst [vmem:[%s1740_s17 + $0x68] sm:$0xff] %v1421_v53   ;;  %v589_v6 = vadd.f32 %v1727_v42, %v588_v60  ;;  %v629_v7 = vadd.f32 %v1727_v42, %v628_v61 }
 0x10b   : > { %vm761_vm14 = vcmp.gt.f32.partialorder %v666_v58, 0.0  ;;  %v825_v62 = vmul.f32 0.2, %v666_v58  ;;  %vm777_vm15 = vcmp.gt.f32.partialorder %v706_v59, 0.0  ;;  %v841_v63 = vmul.f32 0.2, %v706_v59 }
 0x10c   : > { %v794_v12 = vmul.f32 0.2, %v589_v6  ;;  %v810_v13 = vmul.f32 0.2, %v629_v7  ;;  %vm730_vm0 = vcmp.gt.f32.partialorder %v589_v6, 0.0  ;;  %vm746_vm1 = vcmp.gt.f32.partialorder %v629_v7, 0.0 }
 0x10d   : > { %v889_v2 = vsel %vm761_vm14, %v666_v58, %v825_v62  ;;  %v905_v3 = vsel %vm777_vm15, %v706_v59, %v841_v63 }
 0x10e   : > { %v1461_v4 = vpack.c.bf16 %v889_v2, %v888_v0  ;;  %v1501_v5 = vpack.c.bf16 %v905_v3, %v904_v1  ;;  %v858_v20 = vsel %vm730_vm0, %v589_v6, %v794_v12  ;;  %v874_v21 = vsel %vm746_vm1, %v629_v7, %v810_v13 }
 0x110   : > { %1533 = vst [vmem:[%s1740_s17 + $0xa8] sm:$0xff] %v1461_v4   ;;  %v668_v8 = vpop.f32.mrf.mxu2  ;;  %v708_v9 = vpop.f32.mrf.mxu3 }
 0x111   : > { %1541 = vst [vmem:[%s1740_s17 + $0xe8] sm:$0xff] %v1501_v5   ;;  %v590_v10 = vpop.f32.mrf.mxu0  ;;  %v630_v11 = vpop.f32.mrf.mxu1  ;;  %v669_v18 = vadd.f32 %v1727_v42, %v668_v8  ;;  %v709_v19 = vadd.f32 %v1727_v42, %v708_v9 }
 0x112   : > { %v591_v14 = vadd.f32 %v1727_v42, %v590_v10  ;;  %v631_v15 = vadd.f32 %v1727_v42, %v630_v11 }
 0x113   : > { %v826_v28 = vmul.f32 0.2, %v669_v18  ;;  %v842_v29 = vmul.f32 0.2, %v709_v19  ;;  %vm762_vm4 = vcmp.gt.f32.partialorder %v669_v18, 0.0  ;;  %vm778_vm5 = vcmp.gt.f32.partialorder %v709_v19, 0.0 }
 0x114   : > { %vm731_vm2 = vcmp.gt.f32.partialorder %v591_v14, 0.0  ;;  %v795_v16 = vmul.f32 0.2, %v591_v14  ;;  %vm747_vm3 = vcmp.gt.f32.partialorder %v631_v15, 0.0  ;;  %v811_v17 = vmul.f32 0.2, %v631_v15 }
 0x115   : > { %v890_v36 = vsel %vm762_vm4, %v669_v18, %v826_v28  ;;  %v906_v37 = vsel %vm778_vm5, %v709_v19, %v842_v29 }
 0x116   : > { %v859_v22 = vsel %vm731_vm2, %v591_v14, %v795_v16  ;;  %v875_v23 = vsel %vm747_vm3, %v631_v15, %v811_v17 }
 0x117   : > { %v1386_v24 = vpack.c.bf16 %v859_v22, %v858_v20  ;;  %v1426_v25 = vpack.c.bf16 %v875_v23, %v874_v21 }
 0x118   : > { %v670_v26 = vpop.f32.mrf.mxu2  ;;  %v710_v27 = vpop.f32.mrf.mxu3 }
 0x119   : > { %1518 = vst [vmem:[%s1740_s17 + $0x30] sm:$0xff] %v1386_v24   ;;  %v671_v30 = vadd.f32 %v1727_v42, %v670_v26  ;;  %v711_v31 = vadd.f32 %v1727_v42, %v710_v27  ;;  %v593_v32 = vpop.f32.mrf.mxu0  ;;  %v633_v33 = vpop.f32.mrf.mxu1 }
 0x11a   : > { %1526 = vst [vmem:[%s1740_s17 + $0x70] sm:$0xff] %v1426_v25   ;;  %v594_v43 = vadd.f32 %v1727_v42, %v593_v32  ;;  %v634_v44 = vadd.f32 %v1727_v42, %v633_v33 }
 0x11b   : > { %vm763_vm6 = vcmp.gt.f32.partialorder %v671_v30, 0.0  ;;  %v827_v34 = vmul.f32 0.2, %v671_v30  ;;  %vm779_vm7 = vcmp.gt.f32.partialorder %v711_v31, 0.0  ;;  %v843_v35 = vmul.f32 0.2, %v711_v31 }
 0x11c   : > { %v796_v49 = vmul.f32 0.2, %v594_v43  ;;  %v812_v50 = vmul.f32 0.2, %v634_v44  ;;  %vm732_vm8 = vcmp.gt.f32.partialorder %v594_v43, 0.0  ;;  %vm748_vm9 = vcmp.gt.f32.partialorder %v634_v44, 0.0 }
 0x11d   : > { %v891_v38 = vsel %vm763_vm6, %v671_v30, %v827_v34  ;;  %v907_v39 = vsel %vm779_vm7, %v711_v31, %v843_v35 }
 0x11e   : > { %v1466_v40 = vpack.c.bf16 %v891_v38, %v890_v36  ;;  %v1506_v41 = vpack.c.bf16 %v907_v39, %v906_v37  ;;  %v860_v57 = vsel %vm732_vm8, %v594_v43, %v796_v49  ;;  %v876_v58 = vsel %vm748_vm9, %v634_v44, %v812_v50 }
 0x120   : > { %1534 = vst [vmem:[%s1740_s17 + $0xb0] sm:$0xff] %v1466_v40   ;;  %v673_v45 = vpop.f32.mrf.mxu2  ;;  %v713_v46 = vpop.f32.mrf.mxu3 }
 0x121   : > { %1542 = vst [vmem:[%s1740_s17 + $0xf0] sm:$0xff] %v1506_v41   ;;  %v595_v47 = vpop.f32.mrf.mxu0  ;;  %v635_v48 = vpop.f32.mrf.mxu1  ;;  %v674_v55 = vadd.f32 %v1727_v42, %v673_v45  ;;  %v714_v56 = vadd.f32 %v1727_v42, %v713_v46 }
 0x122   : > { %v596_v51 = vadd.f32 %v1727_v42, %v595_v47  ;;  %v636_v52 = vadd.f32 %v1727_v42, %v635_v48 }
 0x123   : > { %v828_v1 = vmul.f32 0.2, %v674_v55  ;;  %v844_v2 = vmul.f32 0.2, %v714_v56  ;;  %vm764_vm12 = vcmp.gt.f32.partialorder %v674_v55, 0.0  ;;  %vm780_vm13 = vcmp.gt.f32.partialorder %v714_v56, 0.0 }
 0x124   : > { %vm733_vm10 = vcmp.gt.f32.partialorder %v596_v51, 0.0  ;;  %v797_v53 = vmul.f32 0.2, %v596_v51  ;;  %vm749_vm11 = vcmp.gt.f32.partialorder %v636_v52, 0.0  ;;  %v813_v54 = vmul.f32 0.2, %v636_v52 }
 0x125   : > { %v892_v7 = vsel %vm764_vm12, %v674_v55, %v828_v1  ;;  %v908_v8 = vsel %vm780_vm13, %v714_v56, %v844_v2 }
 0x126   : > { %v861_v59 = vsel %vm733_vm10, %v596_v51, %v797_v53  ;;  %v877_v60 = vsel %vm749_vm11, %v636_v52, %v813_v54 }
 0x127   : > { %v1391_v61 = vpack.c.bf16 %v861_v59, %v860_v57  ;;  %v1431_v62 = vpack.c.bf16 %v877_v60, %v876_v58 }
 0x128   : > { %v675_v63 = vpop.f32.mrf.mxu2  ;;  %v715_v0 = vpop.f32.mrf.mxu3 }
 0x129   : > { %1519 = vst [vmem:[%s1740_s17 + $0x38] sm:$0xff] %v1391_v61   ;;  %v676_v3 = vadd.f32 %v1727_v42, %v675_v63  ;;  %v716_v4 = vadd.f32 %v1727_v42, %v715_v0 }
 0x12a   : > { %1527 = vst [vmem:[%s1740_s17 + $0x78] sm:$0xff] %v1431_v62  }
 0x12b   : > { %vm765_vm14 = vcmp.gt.f32.partialorder %v676_v3, 0.0  ;;  %v829_v5 = vmul.f32 0.2, %v676_v3  ;;  %vm781_vm15 = vcmp.gt.f32.partialorder %v716_v4, 0.0  ;;  %v845_v6 = vmul.f32 0.2, %v716_v4 }
 0x12d   : > { %v893_v9 = vsel %vm765_vm14, %v676_v3, %v829_v5  ;;  %v909_v10 = vsel %vm781_vm15, %v716_v4, %v845_v6 }
 0x12e   : > { %v1471_v11 = vpack.c.bf16 %v893_v9, %v892_v7  ;;  %v1511_v12 = vpack.c.bf16 %v909_v10, %v908_v8 }
 0x130   : > { %1535 = vst [vmem:[%s1740_s17 + $0xb8] sm:$0xff] %v1471_v11  }
 0x131   : > { %1543 = vst [vmem:[%s1740_s17 + $0xf8] sm:$0xff] %v1511_v12  }
 0x132 PF: > { %s13_s14 = sadd.s32 1, %s1615_s14   ;;  %s1845_s12 = smov %s1611_s13 }
 0x133   : > { %p10_p5 = scmp.ge.s32.totalorder %s13_s14, 4   ;;  %s1846_s13 = smov %s1848_s15 }
 0x135   :  { %12 = sbr.rel (!%p10_p5) target bundleno = 2 (0x2), region = 68 }

// kernel: _forward_impl.15
= control target key start
LH: loop header
LB: loop body
LE: loop exit
PB: predicated region body
PF: predicated region fallthrough
CT: control target
= control target key end

     0   :  { %s1819_s1 = inlined_call_operand.vmem [shape: bf16[384,128], index: 1, kind: input, shape index: {}]   ;;  %s1820_s2 = inlined_call_operand.vmem [shape: f32[1,128], index: 2, kind: input, shape index: {}]   ;;  %s1821_s0 = inlined_call_operand.vmem [shape: bf16[256,384], index: 0, kind: input, shape index: {}]   ;;  %s1822_s3 = inlined_call_operand.vmem [shape: f32[256,128], index: 3, kind: output, shape index: {}]  }
   0x1   :  { %v1176_v0 = vld [vmem:[%s1819_s1 + $0x38] sm:$0xff]  ;;  %v1175_v3 = vld [vmem:[%s1819_s1 + $0x30] sm:$0xff]  ;;  %v1174_v6 = vld [vmem:[%s1819_s1 + $0x28] sm:$0xff] }
   0x2   :  { %v1244_v1 = vld [vmem:[%s1819_s1 + $0x78] sm:$0xff]  ;;  %530 = vmatpush.bf16.msra.mxu0 %v1176_v0  ;;  %1193 = vmatpush.bf16.msra.mxu3 %v1176_v0  ;;  %v1259_v4 = vld [vmem:[%s1819_s1 + $0x70] sm:$0xff]  ;;  %v1182_v7 = vld [vmem:[%s1819_s1 + $0x68] sm:$0xff] }
   0x3   :  { %v1249_v2 = vld [vmem:[%s1819_s1 + $0xb8] sm:$0xff]  ;;  %619 = vmatpush.bf16.msra.mxu1 %v1244_v1  ;;  %v1264_v5 = vld [vmem:[%s1819_s1 + $0xb0] sm:$0xff]  ;;  %v1277_v8 = vld [vmem:[%s1819_s1 + $0xa8] sm:$0xff] }
   0x4   :  { %708 = vmatpush.bf16.msra.mxu2 %v1249_v2  ;;  %v1173_v9 = vld [vmem:[%s1819_s1 + $0x20] sm:$0xff]  ;;  %v1172_v12 = vld [vmem:[%s1819_s1 + $0x18] sm:$0xff]  ;;  %v1171_v15 = vld [vmem:[%s1819_s1 + $0x10] sm:$0xff] }
   0x5   :  { %v1181_v10 = vld [vmem:[%s1819_s1 + $0x60] sm:$0xff]  ;;  %v1180_v13 = vld [vmem:[%s1819_s1 + $0x58] sm:$0xff]  ;;  %v1179_v16 = vld [vmem:[%s1819_s1 + $0x50] sm:$0xff] }
   0x6   :  { %531 = vmatpush.bf16.msra.mxu0 %v1175_v3  ;;  %1194 = vmatpush.bf16.msra.mxu3 %v1175_v3  ;;  %v1289_v11 = vld [vmem:[%s1819_s1 + $0xa0] sm:$0xff]  ;;  %v1301_v14 = vld [vmem:[%s1819_s1 + $0x98] sm:$0xff]  ;;  %v1313_v17 = vld [vmem:[%s1819_s1 + $0x90] sm:$0xff] }
   0x7   :  { %620 = vmatpush.bf16.msra.mxu1 %v1259_v4  ;;  %v1170_v18 = vld [vmem:[%s1819_s1 + $0x8] sm:$0xff]  ;;  %v1169_v21 = vld [vmem:[%s1819_s1] sm:$0xff]  ;;  %v837_v29 = vld [vmem:[%s1821_s0 + $0xc] sm:$0xf0] }
   0x8   :  { %709 = vmatpush.bf16.msra.mxu2 %v1264_v5  ;;  %v1178_v19 = vld [vmem:[%s1819_s1 + $0x48] sm:$0xff]  ;;  %v1177_v22 = vld [vmem:[%s1819_s1 + $0x40] sm:$0xff]  ;;  %v1123_v31 = vld [vmem:[%s1821_s0 + $0x10] sm:$0xf0] }
   0x9   :  { %v1325_v20 = vld [vmem:[%s1819_s1 + $0x88] sm:$0xff]  ;;  %v1336_v23 = vld [vmem:[%s1819_s1 + $0x80] sm:$0xff]  ;;  %v847_v36 = vld [vmem:[%s1821_s0 + $0x18] sm:$0xf] }
   0xa   :  { %532 = vmatpush.bf16.msra.mxu0 %v1174_v6  ;;  %1195 = vmatpush.bf16.msra.mxu3 %v1174_v6  ;;  %v835_v24 = vld [vmem:[%s1821_s0] sm:$0xf]  ;;  %v1122_v25 = vld [vmem:[%s1821_s0 + $0x8] sm:$0xf0]  ;;  %v1121_v28 = vld [vmem:[%s1821_s0 + $0x4] sm:$0xf] }
   0xb   :  { %621 = vmatpush.bf16.msra.mxu1 %v1182_v7  ;;  %v979_v26 = vld [vmem:[%s1821_s0 + $0x120] sm:$0xf]  ;;  %v1158_v27 = vld [vmem:[%s1821_s0 + $0x128] sm:$0xf0]  ;;  %v843_v30 = vld [vmem:[%s1821_s0 + $0x8] sm:$0xf]  ;;  %v836_v32 = vor.u32 %v1122_v25, %v835_v24  ;;  %v840_v34 = vor.u32 %v1121_v28, %v837_v29 }
   0xc   :  { %710 = vmatpush.bf16.msra.mxu2 %v1277_v8  ;;  %v980_v33 = vor.u32 %v1158_v27, %v979_v26  ;;  %v844_v35 = vor.u32 %v1123_v31, %v843_v30  ;;  %v1125_v37 = vld [vmem:[%s1821_s0 + $0x20] sm:$0xf0]  ;;  %v991_v38 = vld [vmem:[%s1821_s0 + $0x138] sm:$0xf]  ;;  %v1124_v40 = vld [vmem:[%s1821_s0 + $0x1c] sm:$0xf] }
   0xd   :  { %v1161_v39 = vld [vmem:[%s1821_s0 + $0x140] sm:$0xf0]  ;;  %v849_v41 = vld [vmem:[%s1821_s0 + $0x24] sm:$0xf0]  ;;  %v855_v42 = vld [vmem:[%s1821_s0 + $0x20] sm:$0xf]  ;;  %v848_v44 = vor.u32 %v1125_v37, %v847_v36 }
   0xe   :  { %533 = vmatpush.bf16.msra.mxu0 %v1173_v9  ;;  %1196 = vmatpush.bf16.msra.mxu3 %v1173_v9  ;;  %v1126_v43 = vld [vmem:[%s1821_s0 + $0x28] sm:$0xf0]  ;;  %v992_v45 = vor.u32 %v1161_v39, %v991_v38  ;;  %v852_v46 = vor.u32 %v1124_v40, %v849_v41  ;;  %v859_v48 = vld [vmem:[%s1821_s0 + $0x30] sm:$0xf]  ;;  %v1128_v49 = vld [vmem:[%s1821_s0 + $0x38] sm:$0xf0] }
   0xf   :  { %622 = vmatpush.bf16.msra.mxu1 %v1181_v10  ;;  %v856_v47 = vor.u32 %v1126_v43, %v855_v42  ;;  %v1003_v50 = vld [vmem:[%s1821_s0 + $0x150] sm:$0xf]  ;;  %v1164_v51 = vld [vmem:[%s1821_s0 + $0x158] sm:$0xf0]  ;;  %v1127_v52 = vld [vmem:[%s1821_s0 + $0x34] sm:$0xf]  ;;  %v860_v56 = vor.u32 %v1128_v49, %v859_v48 }
  0x10   :  { %711 = vmatpush.bf16.msra.mxu2 %v1289_v11  ;;  %v861_v53 = vld [vmem:[%s1821_s0 + $0x3c] sm:$0xf0]  ;;  %v867_v54 = vld [vmem:[%s1821_s0 + $0x38] sm:$0xf]  ;;  %v1129_v55 = vld [vmem:[%s1821_s0 + $0x40] sm:$0xf0]  ;;  %v1004_v57 = vor.u32 %v1164_v51, %v1003_v50 }
  0x11   :  { %v864_v58 = vor.u32 %v1127_v52, %v861_v53  ;;  %v868_v59 = vor.u32 %v1129_v55, %v867_v54  ;;  %v871_v60 = vld [vmem:[%s1821_s0 + $0x48] sm:$0xf]  ;;  %v1131_v61 = vld [vmem:[%s1821_s0 + $0x50] sm:$0xf0]  ;;  %v1130_v0 = vld [vmem:[%s1821_s0 + $0x4c] sm:$0xf] }
  0x12   :  { %534 = vmatpush.bf16.msra.mxu0 %v1172_v12  ;;  %1197 = vmatpush.bf16.msra.mxu3 %v1172_v12  ;;  %v1015_v62 = vld [vmem:[%s1821_s0 + $0x168] sm:$0xf]  ;;  %v1167_v63 = vld [vmem:[%s1821_s0 + $0x170] sm:$0xf0]  ;;  %v1132_v3 = vld [vmem:[%s1821_s0 + $0x58] sm:$0xf0] }
  0x13   :  { %623 = vmatpush.bf16.msra.mxu1 %v1180_v13  ;;  %v1134_v9 = vld [vmem:[%s1821_s0 + $0x68] sm:$0xf0]  ;;  %v981_v12 = vld [vmem:[%s1821_s0 + $0x12c] sm:$0xf0]  ;;  %v993_v24 = vld [vmem:[%s1821_s0 + $0x144] sm:$0xf0] }
  0x14   :  { %712 = vmatpush.bf16.msra.mxu2 %v1301_v14  ;;  %v897_v25 = vld [vmem:[%s1821_s0 + $0x84] sm:$0xf0]  ;;  %v903_v26 = vld [vmem:[%s1821_s0 + $0x80] sm:$0xf]  ;;  %v1138_v27 = vld [vmem:[%s1821_s0 + $0x88] sm:$0xf0] }
  0x15   :  { %v904_v31 = vor.u32 %v1138_v27, %v903_v26  ;;  %v1005_v36 = vld [vmem:[%s1821_s0 + $0x15c] sm:$0xf0]  ;;  %v915_v38 = vld [vmem:[%s1821_s0 + $0x98] sm:$0xf]  ;;  %v1141_v39 = vld [vmem:[%s1821_s0 + $0xa0] sm:$0xf0] }
  0x16   :  { %535 = vmatpush.bf16.msra.mxu0 %v1171_v15  ;;  %1198 = vmatpush.bf16.msra.mxu3 %v1171_v15  ;;  %v1135_v15 = vld [vmem:[%s1821_s0 + $0x70] sm:$0xf0]  ;;  %v909_v37 = vld [vmem:[%s1821_s0 + $0x9c] sm:$0xf0]  ;;  %v916_v43 = vor.u32 %v1141_v39, %v915_v38  ;;  %v1017_v48 = vld [vmem:[%s1821_s0 + $0x174] sm:$0xf0] }
  0x17   :  { %624 = vmatpush.bf16.msra.mxu1 %v1179_v16  ;;  %v921_v49 = vld [vmem:[%s1821_s0 + $0xb4] sm:$0xf0]  ;;  %v927_v50 = vld [vmem:[%s1821_s0 + $0xb0] sm:$0xf]  ;;  %v1144_v51 = vld [vmem:[%s1821_s0 + $0xb8] sm:$0xf0] }
  0x18   :  { %713 = vmatpush.bf16.msra.mxu2 %v1313_v17  ;;  %v928_v55 = vor.u32 %v1144_v51, %v927_v50 }
  0x1a   :  { %536 = vmatpush.bf16.msra.mxu0 %v1170_v18  ;;  %1199 = vmatpush.bf16.msra.mxu3 %v1170_v18 }
  0x1b   :  { %625 = vmatpush.bf16.msra.mxu1 %v1178_v19 }
  0x1c   :  { %714 = vmatpush.bf16.msra.mxu2 %v1325_v20 }
  0x1e   :  { %537 = vmatpush.bf16.msra.mxu0 %v1169_v21  ;;  %1200 = vmatpush.bf16.msra.mxu3 %v1169_v21  ;;  %v1137_v21 = vld [vmem:[%s1821_s0 + $0x80] sm:$0xf0] }
  0x1f   :  { %626 = vmatpush.bf16.msra.mxu1 %v1177_v22 }
  0x20   :  { %715 = vmatpush.bf16.msra.mxu2 %v1336_v23 }
  0x21   :  { %538 = vmatmul.bf16.vlgmr.msra.gmra.mxu0 %v836_v32  ;;  %598 = vmatmul.bf16.vlgmr.msra.gmra.mxu3 %v980_v33  ;;  %v907_v32 = vld [vmem:[%s1821_s0 + $0x90] sm:$0xf]  ;;  %v1140_v33 = vld [vmem:[%s1821_s0 + $0x98] sm:$0xf0] }
  0x22   :  { %1201 = vmatpush.bf16.msrb.mxu3 %v1244_v1  ;;  %627 = vmatmul.bf16.vlgmr.msra.gmra.mxu1 %v840_v34  ;;  %v873_v1 = vld [vmem:[%s1821_s0 + $0x54] sm:$0xf0]  ;;  %v1139_v34 = vld [vmem:[%s1821_s0 + $0x94] sm:$0xf]  ;;  %v908_v40 = vor.u32 %v1140_v33, %v907_v32 }
  0x23   :  { %716 = vmatmul.bf16.vlgmr.msra.gmra.mxu2 %v844_v35  ;;  %v876_v6 = vor.u32 %v1130_v0, %v873_v1  ;;  %v1163_v35 = vld [vmem:[%s1821_s0 + $0x154] sm:$0xf]  ;;  %v912_v42 = vor.u32 %v1139_v34, %v909_v37 }
  0x24   :  { %v1008_v41 = vor.u32 %v1163_v35, %v1005_v36  ;;  %v1147_v0 = vld [vmem:[%s1821_s0 + $0xd0] sm:$0xf0] }
  0x26   :  { %1202 = vmatpush.bf16.msrb.mxu3 %v1259_v4  ;;  %v872_v4 = vor.u32 %v1131_v61, %v871_v60  ;;  %v987_v60 = vld [vmem:[%s1821_s0 + $0x128] sm:$0xf]  ;;  %v1159_v61 = vld [vmem:[%s1821_s0 + $0x130] sm:$0xf0] }
  0x2a   :  { %1203 = vmatpush.bf16.msrb.mxu3 %v1182_v7 }
  0x2e   :  { %1204 = vmatpush.bf16.msrb.mxu3 %v1181_v10  ;;  %v1133_v10 = vld [vmem:[%s1821_s0 + $0x64] sm:$0xf] }
  0x31   :  { %543 = vmatmul.bf16.gmra.mxu0 %v848_v44  ;;  %603 = vmatmul.bf16.gmra.mxu3 %v992_v45  ;;  %v919_v44 = vld [vmem:[%s1821_s0 + $0xa8] sm:$0xf]  ;;  %v1143_v45 = vld [vmem:[%s1821_s0 + $0xb0] sm:$0xf0] }
  0x32   :  { %1205 = vmatpush.bf16.msrb.mxu3 %v1180_v13  ;;  %632 = vmatmul.bf16.gmra.mxu1 %v852_v46  ;;  %v885_v13 = vld [vmem:[%s1821_s0 + $0x6c] sm:$0xf0]  ;;  %v1142_v46 = vld [vmem:[%s1821_s0 + $0xac] sm:$0xf]  ;;  %v920_v52 = vor.u32 %v1143_v45, %v919_v44  ;;  %v1011_v44 = vld [vmem:[%s1821_s0 + $0x158] sm:$0xf] }
  0x33   :  { %721 = vmatmul.bf16.gmra.mxu2 %v856_v47  ;;  %v888_v18 = vor.u32 %v1133_v10, %v885_v13  ;;  %v1166_v47 = vld [vmem:[%s1821_s0 + $0x16c] sm:$0xf]  ;;  %v924_v54 = vor.u32 %v1142_v46, %v921_v49  ;;  %v1165_v45 = vld [vmem:[%s1821_s0 + $0x160] sm:$0xf0]  ;;  %v957_v46 = vld [vmem:[%s1821_s0 + $0xfc] sm:$0xf0] }
  0x34   :  { %v1020_v53 = vor.u32 %v1166_v47, %v1017_v48  ;;  %v963_v47 = vld [vmem:[%s1821_s0 + $0xf8] sm:$0xf]  ;;  %v1153_v48 = vld [vmem:[%s1821_s0 + $0x100] sm:$0xf0] }
  0x36   :  { %1206 = vmatpush.bf16.msrb.mxu3 %v1179_v16 }
  0x3a   :  { %1207 = vmatpush.bf16.msrb.mxu3 %v1178_v19 }
  0x3e   :  { %1208 = vmatpush.bf16.msrb.mxu3 %v1177_v22  ;;  %v1136_v22 = vld [vmem:[%s1821_s0 + $0x7c] sm:$0xf] }
  0x3f   :  { %v900_v30 = vor.u32 %v1136_v22, %v897_v25  ;;  %v1150_v22 = vld [vmem:[%s1821_s0 + $0xe8] sm:$0xf0] }
  0x41   :  { %548 = vmatmul.bf16.gmra.mxu0 %v860_v56  ;;  %608 = vmatmul.bf16.gmra.mxu3 %v1004_v57  ;;  %v1545_v56 = vld [vmem:[%s1820_s2] ss:$0 sm:$0xff] }
  0x42   :  { %1209 = vmatpush.bf16.msra.mxu3 %v1249_v2  ;;  %637 = vmatmul.bf16.gmra.mxu1 %v864_v58  ;;  %v879_v2 = vld [vmem:[%s1821_s0 + $0x50] sm:$0xf]  ;;  %v931_v57 = vld [vmem:[%s1821_s0 + $0xc0] sm:$0xf]  ;;  %v1146_v58 = vld [vmem:[%s1821_s0 + $0xc8] sm:$0xf0] }
  0x43   :  { %726 = vmatmul.bf16.gmra.mxu2 %v868_v59  ;;  %v880_v7 = vor.u32 %v1132_v3, %v879_v2  ;;  %v1145_v59 = vld [vmem:[%s1821_s0 + $0xc4] sm:$0xf]  ;;  %v932_v1 = vor.u32 %v1146_v58, %v931_v57  ;;  %v988_v2 = vor.u32 %v1159_v61, %v987_v60  ;;  %v964_v58 = vor.u32 %v1153_v48, %v963_v47 }
  0x46   :  { %1210 = vmatpush.bf16.msra.mxu3 %v1264_v5  ;;  %v1016_v5 = vor.u32 %v1167_v63, %v1015_v62  ;;  %v933_v62 = vld [vmem:[%s1821_s0 + $0xcc] sm:$0xf0]  ;;  %v939_v63 = vld [vmem:[%s1821_s0 + $0xc8] sm:$0xf] }
  0x4a   :  { %1211 = vmatpush.bf16.msra.mxu3 %v1277_v8  ;;  %v883_v8 = vld [vmem:[%s1821_s0 + $0x60] sm:$0xf] }
  0x4b   :  { %v884_v16 = vor.u32 %v1134_v9, %v883_v8 }
  0x4e   :  { %1212 = vmatpush.bf16.msra.mxu3 %v1289_v11  ;;  %v1157_v11 = vld [vmem:[%s1821_s0 + $0x124] sm:$0xf] }
  0x51   :  { %553 = vmatmul.bf16.gmra.mxu0 %v872_v4  ;;  %613 = vmatmul.bf16.gmra.mxu3 %v1016_v5  ;;  %v936_v4 = vor.u32 %v1145_v59, %v933_v62  ;;  %v940_v5 = vor.u32 %v1147_v0, %v939_v63 }
  0x52   :  { %1213 = vmatpush.bf16.msra.mxu3 %v1301_v14  ;;  %642 = vmatmul.bf16.gmra.mxu1 %v876_v6  ;;  %v891_v14 = vld [vmem:[%s1821_s0 + $0x68] sm:$0xf] }
  0x53   :  { %731 = vmatmul.bf16.gmra.mxu2 %v880_v7  ;;  %v892_v19 = vor.u32 %v1135_v15, %v891_v14  ;;  %v943_v15 = vld [vmem:[%s1821_s0 + $0xd8] sm:$0xf] }
  0x56   :  { %1214 = vmatpush.bf16.msra.mxu3 %v1313_v17  ;;  %v984_v17 = vor.u32 %v1157_v11, %v981_v12 }
  0x5a   :  { %1215 = vmatpush.bf16.msra.mxu3 %v1325_v20  ;;  %v895_v20 = vld [vmem:[%s1821_s0 + $0x78] sm:$0xf] }
  0x5b   :  { %v896_v28 = vor.u32 %v1137_v21, %v895_v20  ;;  %v945_v20 = vld [vmem:[%s1821_s0 + $0xe4] sm:$0xf0]  ;;  %v951_v21 = vld [vmem:[%s1821_s0 + $0xe0] sm:$0xf] }
  0x5e   :  { %1216 = vmatpush.bf16.msra.mxu3 %v1336_v23  ;;  %v1160_v23 = vld [vmem:[%s1821_s0 + $0x13c] sm:$0xf] }
  0x5f   :  { %v996_v29 = vor.u32 %v1160_v23, %v993_v24 }
  0x61   :  { %558 = vmatmul.bf16.gmra.mxu0 %v884_v16  ;;  %687 = vmatmul.bf16.vlgmr.msrb.gmra.mxu3 %v984_v17  ;;  %v1149_v16 = vld [vmem:[%s1821_s0 + $0xe0] sm:$0xf0]  ;;  %v1148_v17 = vld [vmem:[%s1821_s0 + $0xdc] sm:$0xf] }
  0x62   :  { %647 = vmatmul.bf16.gmra.mxu1 %v888_v18  ;;  %v999_v18 = vld [vmem:[%s1821_s0 + $0x140] sm:$0xf]  ;;  %v944_v26 = vor.u32 %v1149_v16, %v943_v15 }
  0x63   :  { %736 = vmatmul.bf16.gmra.mxu2 %v892_v19  ;;  %v1162_v19 = vld [vmem:[%s1821_s0 + $0x148] sm:$0xf0] }
  0x64   :  { %v1000_v27 = vor.u32 %v1162_v19, %v999_v18 }
  0x71   :  { %563 = vmatmul.bf16.gmra.mxu0 %v896_v28  ;;  %692 = vmatmul.bf16.gmra.mxu3 %v996_v29 }
  0x72   :  { %652 = vmatmul.bf16.gmra.mxu1 %v900_v30  ;;  %v948_v30 = vor.u32 %v1148_v17, %v945_v20 }
  0x73   :  { %741 = vmatmul.bf16.gmra.mxu2 %v904_v31  ;;  %v952_v31 = vor.u32 %v1150_v22, %v951_v21 }
  0x81   :  { %568 = vmatmul.bf16.gmra.mxu0 %v908_v40  ;;  %697 = vmatmul.bf16.gmra.mxu3 %v1008_v41  ;;  %v955_v41 = vld [vmem:[%s1821_s0 + $0xf0] sm:$0xf] }
  0x82   :  { %657 = vmatmul.bf16.gmra.mxu1 %v912_v42  ;;  %v1152_v42 = vld [vmem:[%s1821_s0 + $0xf8] sm:$0xf0] }
  0x83   :  { %746 = vmatmul.bf16.gmra.mxu2 %v916_v43  ;;  %v1151_v43 = vld [vmem:[%s1821_s0 + $0xf4] sm:$0xf] }
  0x84   :  { %v960_v57 = vor.u32 %v1151_v43, %v957_v46 }
  0x91   :  { %573 = vmatmul.bf16.gmra.mxu0 %v920_v52  ;;  %702 = vmatmul.bf16.gmra.mxu3 %v1020_v53  ;;  %v956_v52 = vor.u32 %v1152_v42, %v955_v41  ;;  %v1012_v53 = vor.u32 %v1165_v45, %v1011_v44 }
  0x92   :  { %662 = vmatmul.bf16.gmra.mxu1 %v924_v54 }
  0x93   :  { %751 = vmatmul.bf16.gmra.mxu2 %v928_v55 }
  0x9e   :  { %v539_v3 = vpop.f32.mrf.mxu0 }
  0x9f   :  { %v540_v6 = vadd.f32 %v1545_v56, %v539_v3  ;;  %v628_v7 = vpop.f32.mrf.mxu1 }
  0xa1   :  { %578 = vmatmul.bf16.gmra.mxu0 %v932_v1  ;;  %776 = vmatmul.bf16.vlgmr.msra.gmra.mxu3 %v988_v2  ;;  %v629_v8 = vadd.f32 %v628_v7, %v540_v6  ;;  %v1154_v6 = vld [vmem:[%s1821_s0 + $0x10c] sm:$0xf]  ;;  %v1023_v7 = vld [vmem:[%s1821_s0 + $0x170] sm:$0xf] }
  0xa2   :  { %667 = vmatmul.bf16.gmra.mxu1 %v936_v4  ;;  %v967_v4 = vld [vmem:[%s1821_s0 + $0x108] sm:$0xf] }
  0xa3   :  { %756 = vmatmul.bf16.gmra.mxu2 %v940_v5  ;;  %v1155_v5 = vld [vmem:[%s1821_s0 + $0x110] sm:$0xf0] }
  0xa4   :  { %v1572_v9 = vpop.f32.mrf.mxu3  ;;  %v968_v16 = vor.u32 %v1155_v5, %v967_v4 }
  0xa6   :  { %v717_v10 = vpop.f32.mrf.mxu2  ;;  %v541_v12 = vpop.f32.mrf.mxu0 }
  0xa7   :  { %v718_v11 = vadd.f32 %v717_v10, %v629_v8  ;;  %v630_v13 = vpop.f32.mrf.mxu1  ;;  %v542_v14 = vadd.f32 %v1545_v56, %v541_v12  ;;  %v1168_v8 = vld [vmem:[%s1821_s0 + $0x178] sm:$0xf0]  ;;  %v969_v10 = vld [vmem:[%s1821_s0 + $0x114] sm:$0xf0] }
  0xa8   :  { %v1156_v12 = vld [vmem:[%s1821_s0 + $0x118] sm:$0xf0]  ;;  %v1024_v17 = vor.u32 %v1168_v8, %v1023_v7  ;;  %v972_v20 = vor.u32 %v1154_v6, %v969_v10 }
  0xa9   :  { %797 = vst [vmem:[%s1822_s3] sm:$0xff] %v718_v11  ;;  %v631_v23 = vadd.f32 %v630_v13, %v542_v14  ;;  %v975_v11 = vld [vmem:[%s1821_s0 + $0x110] sm:$0xf] }
  0xaa   :  { %v976_v21 = vor.u32 %v1156_v12, %v975_v11 }
  0xac   :  { %v1602_v24 = vpop.f32.mrf.mxu3 }
  0xae   :  { %v719_v25 = vpop.f32.mrf.mxu2  ;;  %v544_v29 = vpop.f32.mrf.mxu0 }
  0xaf   :  { %v720_v28 = vadd.f32 %v719_v25, %v631_v23  ;;  %v545_v32 = vadd.f32 %v1545_v56, %v544_v29  ;;  %v633_v33 = vpop.f32.mrf.mxu1 }
  0xb1   :  { %798 = vst [vmem:[%s1822_s3 + $0x8] sm:$0xff] %v720_v28  ;;  %583 = vmatmul.bf16.gmra.mxu0 %v944_v26  ;;  %781 = vmatmul.bf16.gmra.mxu3 %v1000_v27  ;;  %v634_v34 = vadd.f32 %v633_v33, %v545_v32 }
  0xb2   :  { %672 = vmatmul.bf16.gmra.mxu1 %v948_v30 }
  0xb3   :  { %761 = vmatmul.bf16.gmra.mxu2 %v952_v31 }
  0xb4   :  { %v1608_v35 = vpop.f32.mrf.mxu3 }
  0xb6   :  { %v722_v36 = vpop.f32.mrf.mxu2  ;;  %v546_v38 = vpop.f32.mrf.mxu0 }
  0xb7   :  { %v723_v37 = vadd.f32 %v722_v36, %v634_v34  ;;  %v635_v39 = vpop.f32.mrf.mxu1  ;;  %v547_v40 = vadd.f32 %v1545_v56, %v546_v38 }
  0xb9   :  { %799 = vst [vmem:[%s1822_s3 + $0x10] sm:$0xff] %v723_v37  ;;  %v636_v49 = vadd.f32 %v635_v39, %v547_v40 }
  0xbc   :  { %v1638_v50 = vpop.f32.mrf.mxu3 }
  0xbe   :  { %v724_v51 = vpop.f32.mrf.mxu2  ;;  %v549_v55 = vpop.f32.mrf.mxu0 }
  0xbf   :  { %v725_v54 = vadd.f32 %v724_v51, %v636_v49  ;;  %v550_v59 = vadd.f32 %v1545_v56, %v549_v55  ;;  %v638_v60 = vpop.f32.mrf.mxu1 }
  0xc1   :  { %800 = vst [vmem:[%s1822_s3 + $0x18] sm:$0xff] %v725_v54  ;;  %588 = vmatmul.bf16.gmra.mxu0 %v956_v52  ;;  %786 = vmatmul.bf16.gmra.mxu3 %v1012_v53  ;;  %v639_v61 = vadd.f32 %v638_v60, %v550_v59 }
  0xc2   :  { %677 = vmatmul.bf16.gmra.mxu1 %v960_v57 }
  0xc3   :  { %766 = vmatmul.bf16.gmra.mxu2 %v964_v58 }
  0xc4   :  { %v1644_v62 = vpop.f32.mrf.mxu3 }
  0xc6   :  { %v727_v63 = vpop.f32.mrf.mxu2  ;;  %v551_v1 = vpop.f32.mrf.mxu0 }
  0xc7   :  { %v728_v0 = vadd.f32 %v727_v63, %v639_v61  ;;  %v640_v2 = vpop.f32.mrf.mxu1  ;;  %v552_v3 = vadd.f32 %v1545_v56, %v551_v1 }
  0xc9   :  { %801 = vst [vmem:[%s1822_s3 + $0x20] sm:$0xff] %v728_v0  ;;  %v641_v13 = vadd.f32 %v640_v2, %v552_v3 }
  0xcc   :  { %v1674_v14 = vpop.f32.mrf.mxu3 }
  0xce   :  { %v729_v15 = vpop.f32.mrf.mxu2  ;;  %v554_v19 = vpop.f32.mrf.mxu0 }
  0xcf   :  { %v730_v18 = vadd.f32 %v729_v15, %v641_v13  ;;  %v555_v22 = vadd.f32 %v1545_v56, %v554_v19  ;;  %v643_v23 = vpop.f32.mrf.mxu1 }
  0xd1   :  { %802 = vst [vmem:[%s1822_s3 + $0x28] sm:$0xff] %v730_v18  ;;  %593 = vmatmul.bf16.gmra.mxu0 %v968_v16  ;;  %791 = vmatmul.bf16.gmra.mxu3 %v1024_v17  ;;  %v644_v25 = vadd.f32 %v643_v23, %v555_v22 }
  0xd2   :  { %682 = vmatmul.bf16.gmra.mxu1 %v972_v20 }
  0xd3   :  { %771 = vmatmul.bf16.gmra.mxu2 %v976_v21 }
  0xd4   :  { %v1680_v26 = vpop.f32.mrf.mxu3 }
  0xd6   :  { %v732_v27 = vpop.f32.mrf.mxu2  ;;  %v556_v29 = vpop.f32.mrf.mxu0 }
  0xd7   :  { %v733_v28 = vadd.f32 %v732_v27, %v644_v25  ;;  %v645_v30 = vpop.f32.mrf.mxu1  ;;  %v557_v31 = vadd.f32 %v1545_v56, %v556_v29 }
  0xd9   :  { %803 = vst [vmem:[%s1822_s3 + $0x30] sm:$0xff] %v733_v28  ;;  %v646_v32 = vadd.f32 %v645_v30, %v557_v31 }
  0xdc   :  { %v1686_v33 = vpop.f32.mrf.mxu3 }
  0xde   :  { %v734_v34 = vpop.f32.mrf.mxu2  ;;  %v559_v37 = vpop.f32.mrf.mxu0 }
  0xdf   :  { %v735_v36 = vadd.f32 %v734_v34, %v646_v32  ;;  %v560_v38 = vadd.f32 %v1545_v56, %v559_v37  ;;  %v648_v39 = vpop.f32.mrf.mxu1 }
  0xe1   :  { %804 = vst [vmem:[%s1822_s3 + $0x38] sm:$0xff] %v735_v36  ;;  %v649_v40 = vadd.f32 %v648_v39, %v560_v38 }
  0xe4   :  { %v1692_v41 = vpop.f32.mrf.mxu3 }
  0xe6   :  { %v737_v42 = vpop.f32.mrf.mxu2  ;;  %v561_v44 = vpop.f32.mrf.mxu0 }
  0xe7   :  { %v738_v43 = vadd.f32 %v737_v42, %v649_v40  ;;  %v650_v45 = vpop.f32.mrf.mxu1  ;;  %v562_v46 = vadd.f32 %v1545_v56, %v561_v44  ;;  %v600_v42 = vadd.f32 %v1545_v56, %v1572_v9  ;;  %v602_v9 = vadd.f32 %v1545_v56, %v1602_v24 }
  0xe8   :  { %v605_v24 = vadd.f32 %v1545_v56, %v1608_v35  ;;  %v607_v35 = vadd.f32 %v1545_v56, %v1638_v50  ;;  %v610_v50 = vadd.f32 %v1545_v56, %v1644_v62  ;;  %v612_v62 = vadd.f32 %v1545_v56, %v1674_v14 }
  0xe9   :  { %805 = vst [vmem:[%s1822_s3 + $0x40] sm:$0xff] %v738_v43  ;;  %v651_v47 = vadd.f32 %v650_v45, %v562_v46  ;;  %v689_v44 = vadd.f32 %v1692_v41, %v600_v42  ;;  %v615_v14 = vadd.f32 %v1545_v56, %v1680_v26  ;;  %v617_v26 = vadd.f32 %v1545_v56, %v1686_v33 }
  0xec   :  { %v1698_v48 = vpop.f32.mrf.mxu3 }
  0xed   :  { %v691_v41 = vadd.f32 %v1698_v48, %v602_v9 }
  0xee   :  { %v739_v49 = vpop.f32.mrf.mxu2  ;;  %v564_v52 = vpop.f32.mrf.mxu0 }
  0xef   :  { %v740_v51 = vadd.f32 %v739_v49, %v651_v47  ;;  %v565_v53 = vadd.f32 %v1545_v56, %v564_v52  ;;  %v653_v54 = vpop.f32.mrf.mxu1 }
  0xf1   :  { %806 = vst [vmem:[%s1822_s3 + $0x48] sm:$0xff] %v740_v51  ;;  %v654_v55 = vadd.f32 %v653_v54, %v565_v53 }
  0xf4   :  { %v1704_v57 = vpop.f32.mrf.mxu3 }
  0xf6   :  { %v742_v58 = vpop.f32.mrf.mxu2  ;;  %v566_v60 = vpop.f32.mrf.mxu0 }
  0xf7   :  { %v743_v59 = vadd.f32 %v742_v58, %v654_v55  ;;  %v655_v61 = vpop.f32.mrf.mxu1  ;;  %v567_v63 = vadd.f32 %v1545_v56, %v566_v60 }
  0xf9   :  { %807 = vst [vmem:[%s1822_s3 + $0x50] sm:$0xff] %v743_v59  ;;  %v656_v0 = vadd.f32 %v655_v61, %v567_v63 }
  0xfc   :  { %v1710_v1 = vpop.f32.mrf.mxu3 }
  0xfe   :  { %v744_v2 = vpop.f32.mrf.mxu2  ;;  %v569_v4 = vpop.f32.mrf.mxu0 }
  0xff   :  { %v745_v3 = vadd.f32 %v744_v2, %v656_v0  ;;  %v570_v5 = vadd.f32 %v1545_v56, %v569_v4  ;;  %v658_v6 = vpop.f32.mrf.mxu1  ;;  %v694_v2 = vadd.f32 %v1704_v57, %v605_v24  ;;  %v696_v57 = vadd.f32 %v1710_v1, %v607_v35 }
 0x101   :  { %808 = vst [vmem:[%s1822_s3 + $0x58] sm:$0xff] %v745_v3  ;;  %v659_v7 = vadd.f32 %v658_v6, %v570_v5 }
 0x104   :  { %v1716_v8 = vpop.f32.mrf.mxu3 }
 0x106   :  { %v747_v10 = vpop.f32.mrf.mxu2  ;;  %v571_v12 = vpop.f32.mrf.mxu0 }
 0x107   :  { %v748_v11 = vadd.f32 %v747_v10, %v659_v7  ;;  %v660_v13 = vpop.f32.mrf.mxu1  ;;  %v572_v15 = vadd.f32 %v1545_v56, %v571_v12 }
 0x109   :  { %809 = vst [vmem:[%s1822_s3 + $0x60] sm:$0xff] %v748_v11  ;;  %v661_v16 = vadd.f32 %v660_v13, %v572_v15 }
 0x10c   :  { %v1722_v17 = vpop.f32.mrf.mxu3 }
 0x10e   :  { %v749_v18 = vpop.f32.mrf.mxu2  ;;  %v574_v20 = vpop.f32.mrf.mxu0 }
 0x10f   :  { %v750_v19 = vadd.f32 %v749_v18, %v661_v16  ;;  %v575_v21 = vadd.f32 %v1545_v56, %v574_v20  ;;  %v663_v22 = vpop.f32.mrf.mxu1 }
 0x111   :  { %810 = vst [vmem:[%s1822_s3 + $0x68] sm:$0xff] %v750_v19  ;;  %v664_v23 = vadd.f32 %v663_v22, %v575_v21  ;;  %v699_v22 = vadd.f32 %v1716_v8, %v610_v50  ;;  %v701_v8 = vadd.f32 %v1722_v17, %v612_v62 }
 0x114   :  { %v1728_v25 = vpop.f32.mrf.mxu3 }
 0x116   :  { %v752_v27 = vpop.f32.mrf.mxu2  ;;  %v576_v29 = vpop.f32.mrf.mxu0 }
 0x117   :  { %v753_v28 = vadd.f32 %v752_v27, %v664_v23  ;;  %v665_v30 = vpop.f32.mrf.mxu1  ;;  %v577_v31 = vadd.f32 %v1545_v56, %v576_v29 }
 0x119   :  { %811 = vst [vmem:[%s1822_s3 + $0x70] sm:$0xff] %v753_v28  ;;  %v666_v32 = vadd.f32 %v665_v30, %v577_v31 }
 0x11c   :  { %v1734_v34 = vpop.f32.mrf.mxu3 }
 0x11e   :  { %v754_v36 = vpop.f32.mrf.mxu2  ;;  %v579_v38 = vpop.f32.mrf.mxu0 }
 0x11f   :  { %v755_v37 = vadd.f32 %v754_v36, %v666_v32  ;;  %v580_v39 = vadd.f32 %v1545_v56, %v579_v38  ;;  %v668_v40 = vpop.f32.mrf.mxu1 }
 0x121   :  { %812 = vst [vmem:[%s1822_s3 + $0x78] sm:$0xff] %v755_v37  ;;  %v669_v43 = vadd.f32 %v668_v40, %v580_v39 }
 0x124   :  { %v777_v45 = vpop.f32.mrf.mxu3 }
 0x125   :  { %v778_v47 = vadd.f32 %v777_v45, %v689_v44  ;;  %v704_v45 = vadd.f32 %v1728_v25, %v615_v14  ;;  %v706_v25 = vadd.f32 %v1734_v34, %v617_v26 }
 0x126   :  { %v757_v46 = vpop.f32.mrf.mxu2  ;;  %v581_v51 = vpop.f32.mrf.mxu0 }
 0x127   :  { %v758_v49 = vadd.f32 %v757_v46, %v669_v43  ;;  %821 = vst [vmem:[%s1822_s3 + $0xc0] sm:$0xff] %v778_v47  ;;  %v670_v52 = vpop.f32.mrf.mxu1  ;;  %v582_v53 = vadd.f32 %v1545_v56, %v581_v51 }
 0x129   :  { %813 = vst [vmem:[%s1822_s3 + $0x80] sm:$0xff] %v758_v49  ;;  %v671_v54 = vadd.f32 %v670_v52, %v582_v53 }
 0x12c   :  { %v779_v55 = vpop.f32.mrf.mxu3 }
 0x12d   :  { %v780_v59 = vadd.f32 %v779_v55, %v691_v41 }
 0x12e   :  { %v759_v58 = vpop.f32.mrf.mxu2  ;;  %v584_v61 = vpop.f32.mrf.mxu0 }
 0x12f   :  { %v760_v60 = vadd.f32 %v759_v58, %v671_v54  ;;  %822 = vst [vmem:[%s1822_s3 + $0xc8] sm:$0xff] %v780_v59  ;;  %v585_v63 = vadd.f32 %v1545_v56, %v584_v61  ;;  %v673_v0 = vpop.f32.mrf.mxu1 }
 0x131   :  { %814 = vst [vmem:[%s1822_s3 + $0x88] sm:$0xff] %v760_v60  ;;  %v674_v48 = vadd.f32 %v673_v0, %v585_v63 }
 0x134   :  { %v782_v3 = vpop.f32.mrf.mxu3 }
 0x135   :  { %v783_v5 = vadd.f32 %v782_v3, %v694_v2 }
 0x136   :  { %v762_v4 = vpop.f32.mrf.mxu2  ;;  %v586_v7 = vpop.f32.mrf.mxu0 }
 0x137   :  { %v763_v6 = vadd.f32 %v762_v4, %v674_v48  ;;  %823 = vst [vmem:[%s1822_s3 + $0xd0] sm:$0xff] %v783_v5  ;;  %v675_v10 = vpop.f32.mrf.mxu1  ;;  %v587_v11 = vadd.f32 %v1545_v56, %v586_v7 }
 0x139   :  { %815 = vst [vmem:[%s1822_s3 + $0x90] sm:$0xff] %v763_v6  ;;  %v676_v12 = vadd.f32 %v675_v10, %v587_v11 }
 0x13c   :  { %v784_v13 = vpop.f32.mrf.mxu3 }
 0x13d   :  { %v785_v16 = vadd.f32 %v784_v13, %v696_v57 }
 0x13e   :  { %v764_v15 = vpop.f32.mrf.mxu2  ;;  %v589_v19 = vpop.f32.mrf.mxu0 }
 0x13f   :  { %v765_v18 = vadd.f32 %v764_v15, %v676_v12  ;;  %824 = vst [vmem:[%s1822_s3 + $0xd8] sm:$0xff] %v785_v16  ;;  %v590_v20 = vadd.f32 %v1545_v56, %v589_v19  ;;  %v678_v21 = vpop.f32.mrf.mxu1 }
 0x141   :  { %816 = vst [vmem:[%s1822_s3 + $0x98] sm:$0xff] %v765_v18  ;;  %v679_v1 = vadd.f32 %v678_v21, %v590_v20 }
 0x144   :  { %v787_v23 = vpop.f32.mrf.mxu3 }
 0x145   :  { %v788_v28 = vadd.f32 %v787_v23, %v699_v22 }
 0x146   :  { %v767_v27 = vpop.f32.mrf.mxu2  ;;  %v591_v30 = vpop.f32.mrf.mxu0 }
 0x147   :  { %v768_v29 = vadd.f32 %v767_v27, %v679_v1  ;;  %825 = vst [vmem:[%s1822_s3 + $0xe0] sm:$0xff] %v788_v28  ;;  %v680_v31 = vpop.f32.mrf.mxu1  ;;  %v592_v32 = vadd.f32 %v1545_v56, %v591_v30 }
 0x149   :  { %817 = vst [vmem:[%s1822_s3 + $0xa0] sm:$0xff] %v768_v29  ;;  %v681_v36 = vadd.f32 %v680_v31, %v592_v32 }
 0x14c   :  { %v789_v37 = vpop.f32.mrf.mxu3 }
 0x14d   :  { %v790_v39 = vadd.f32 %v789_v37, %v701_v8 }
 0x14e   :  { %v769_v38 = vpop.f32.mrf.mxu2  ;;  %v594_v42 = vpop.f32.mrf.mxu0 }
 0x14f   :  { %v770_v40 = vadd.f32 %v769_v38, %v681_v36  ;;  %826 = vst [vmem:[%s1822_s3 + $0xe8] sm:$0xff] %v790_v39  ;;  %v595_v43 = vadd.f32 %v1545_v56, %v594_v42  ;;  %v683_v17 = vpop.f32.mrf.mxu1 }
 0x151   :  { %818 = vst [vmem:[%s1822_s3 + $0xa8] sm:$0xff] %v770_v40  ;;  %v684_v44 = vadd.f32 %v683_v17, %v595_v43 }
 0x154   :  { %v792_v46 = vpop.f32.mrf.mxu3 }
 0x155   :  { %v793_v49 = vadd.f32 %v792_v46, %v704_v45 }
 0x156   :  { %v772_v47 = vpop.f32.mrf.mxu2  ;;  %v596_v52 = vpop.f32.mrf.mxu0 }
 0x157   :  { %v773_v51 = vadd.f32 %v772_v47, %v684_v44  ;;  %827 = vst [vmem:[%s1822_s3 + $0xf0] sm:$0xff] %v793_v49  ;;  %v597_v53 = vadd.f32 %v1545_v56, %v596_v52  ;;  %v685_v9 = vpop.f32.mrf.mxu1 }
 0x159   :  { %819 = vst [vmem:[%s1822_s3 + $0xb0] sm:$0xff] %v773_v51  ;;  %v686_v41 = vadd.f32 %v685_v9, %v597_v53 }
 0x15c   :  { %v794_v54 = vpop.f32.mrf.mxu3 }
 0x15d   :  { %v795_v58 = vadd.f32 %v794_v54, %v706_v25 }
 0x15e   :  { %v774_v55 = vpop.f32.mrf.mxu2 }
 0x15f   :  { %v775_v59 = vadd.f32 %v774_v55, %v686_v41  ;;  %828 = vst [vmem:[%s1822_s3 + $0xf8] sm:$0xff] %v795_v58 }
 0x161   :  { %820 = vst [vmem:[%s1822_s3 + $0xb8] sm:$0xff] %v775_v59 }

</bundles_post_ra>
